<compile_context>
chip_gen: v5e
topology: v5e:2x2
jax: 0.10.0
libtpu: 0.0.40
codegen_flags: <defaults>
</compile_context>

<pallas_src>
import functools
import math

import jax
import jax.numpy as jnp
from jax.experimental import pallas as pl
from jax.experimental.pallas import tpu as pltpu

LN_EPS = 1e-5


# ----------------------------------------------------------------------------
# Pallas kernel: one batch element per grid step (full encoder layer)
# ----------------------------------------------------------------------------
def _encoder_layer_kernel(nhead,
                          x_ref,
                          wqkv_ref, bqkv_ref, wo_ref, bo_ref,
                          ln_ref,
                          wff1_ref, bff1_ref, wff2_ref, bff2_ref,
                          gmy_ref, gmx_ref, gmu_ref, gmb_ref,
                          gfy_ref, gfx_ref, gfu_ref, gfb_ref,
                          o_ref):
    S, E = x_ref.shape
    Dh = E // nhead
    cdt = wqkv_ref.dtype                       # MXU operand dtype (f32 or bf16)
    low_precision = jnp.dtype(cdt) == jnp.dtype(jnp.bfloat16)

    x = x_ref[...]                             # (S, E) f32

    def layer_norm(v, g, b):                   # g, b: (1, E)
        mu = jnp.mean(v, axis=-1, keepdims=True)
        var = jnp.mean(jnp.square(v - mu), axis=-1, keepdims=True)
        return (v - mu) * jax.lax.rsqrt(var + LN_EPS) * g + b

    def mm(a, w_ref):                          # wide, f32-accumulated MXU matmul
        return jnp.dot(a.astype(cdt), w_ref[...],
                       preferred_element_type=jnp.float32)

    def gru_gate(xg, y, gy_ref, gx_ref, gu_ref, gb_ref):
        # gy: (E,3E) = [Wr^T|Wz^T|Wg^T], gx: (E,2E) = [Ur^T|Uz^T], gu: (E,E) = Ug^T
        ty = mm(y, gy_ref)                     # (S, 3E)
        tx = mm(xg, gx_ref)                    # (S, 2E)
        r = jax.nn.sigmoid(ty[:, 0:E] + tx[:, 0:E])
        z = jax.nn.sigmoid(ty[:, E:2 * E] + tx[:, E:2 * E] - gb_ref[...])
        h = jnp.tanh(ty[:, 2 * E:3 * E] + mm(r * xg, gu_ref))
        return (1.0 - z) * xg + z * h

    # ---------------- self-attention block ----------------
    src2 = layer_norm(x, ln_ref[0:1, :], ln_ref[1:2, :])
    # Fused (S,E)@(E,3E) projection; 1/sqrt(Dh) already folded into the Q slice.
    qkv = mm(src2, wqkv_ref) + bqkv_ref[...]

    ctx_parts = []
    for h in range(nhead):                     # static head loop on the shared QKV slab
        lo = h * Dh
        qh = qkv[:, lo:lo + Dh].astype(cdt)
        kh = qkv[:, E + lo:E + lo + Dh].astype(cdt)
        vh = qkv[:, 2 * E + lo:2 * E + lo + Dh].astype(cdt)
        s = jax.lax.dot_general(qh, kh, (((1,), (1,)), ((), ())),
                                preferred_element_type=jnp.float32)   # (S, S)
        m = jnp.max(s, axis=-1, keepdims=True)
        p = jnp.exp(s - m)
        denom = jnp.sum(p, axis=-1, keepdims=True)
        p = p * pl.reciprocal(denom, approx=low_precision)            # EUP slot
        ctx_parts.append(jnp.dot(p.astype(cdt), vh,
                                 preferred_element_type=jnp.float32))

    # concatenate head contexts in-register -> one lane-dense (S,E)@(E,E) proj
    ctx = jnp.concatenate(ctx_parts, axis=-1)                         # (S, E)
    attn = mm(ctx, wo_ref) + bo_ref[...]

    # gate_mha(src, relu(dropout1(attn)))   (dropout = identity in eval mode)
    src = gru_gate(x, jnp.maximum(attn, 0.0), gmy_ref, gmx_ref, gmu_ref, gmb_ref)

    # ---------------- feed-forward block ----------------
    src2 = layer_norm(src, ln_ref[2:3, :], ln_ref[3:4, :])
    hid = jnp.maximum(mm(src2, wff1_ref) + bff1_ref[...], 0.0)
    ffo = mm(hid, wff2_ref) + bff2_ref[...]

    # gate_mlp(src, relu(dropout2(ff)))
    out = gru_gate(src, jnp.maximum(ffo, 0.0), gfy_ref, gfx_ref, gfu_ref, gfb_ref)

    o_ref[...] = out.astype(o_ref.dtype)


# ----------------------------------------------------------------------------
# Wrapper: torch-convention params -> fused, lane-dense slabs -> pallas_call
# ----------------------------------------------------------------------------
def transformer_encoder_layer(src, params, nhead, *,
                              batch_first=False,
                              compute_dtype=jnp.float32):
    # Torch module is (S, B, E); pass batch_first=True to skip the boundary
    # transposes if your data is already token-major (B, S, E).
    x = src if batch_first else jnp.transpose(src, (1, 0, 2))
    x = x.astype(jnp.float32)
    B, S, E = x.shape
    p = params
    dff = p['ff_w1'].shape[0]

    def w(a):                                  # weights -> compute dtype (bf16 halves VMEM)
        return a.astype(compute_dtype)

    # Fold the attention query scale into the Q slice of the fused QKV weights
    # & bias (trace-time constant fold, removes an in-kernel VPU multiply).
    scale = 1.0 / math.sqrt(E // nhead)
    qkv_scale = jnp.concatenate([jnp.full((E,), scale, jnp.float32),
                                 jnp.ones((2 * E,), jnp.float32)])
    wqkv = w(p['in_w'].T * qkv_scale)                        # (E, 3E) = [Wq^T*s|Wk^T|Wv^T]
    bqkv = (p['in_b'] * qkv_scale).reshape(1, 3 * E).astype(jnp.float32)
    wo = w(p['out_w'].T)                                     # (E, E)
    bo = p['out_b'].reshape(1, E).astype(jnp.float32)
    ln = jnp.stack([p['n1_g'], p['n1_b'],
                    p['n2_g'], p['n2_b']]).astype(jnp.float32)          # (4, E)
    wff1 = w(p['ff_w1'].T)                                   # (E, dff)
    bff1 = p['ff_b1'].reshape(1, dff).astype(jnp.float32)
    wff2 = w(p['ff_w2'].T)                                   # (dff, E)
    bff2 = p['ff_b2'].reshape(1, E).astype(jnp.float32)

    def gate_slabs(g):
        gy = jnp.concatenate([g['wr'].T, g['wz'].T, g['wg'].T], axis=1)  # (E, 3E)
        gx = jnp.concatenate([g['ur'].T, g['uz'].T], axis=1)             # (E, 2E)
        gu = g['ug'].T                                                   # (E, E)
        gb = g['bg'].reshape(1, E).astype(jnp.float32)
        return w(gy), w(gx), w(gu), gb

    gmy, gmx, gmu, gmb = gate_slabs(p['gate_mha'])
    gfy, gfx, gfu, gfb = gate_slabs(p['gate_mlp'])

    operands = (wqkv, bqkv, wo, bo, ln, wff1, bff1, wff2, bff2,
                gmy, gmx, gmu, gmb, gfy, gfx, gfu, gfb)

    def resident(a):   # same block every grid step -> fetched once, stays in VMEM
        return pl.BlockSpec(a.shape, lambda b, _nd=a.ndim: (0,) * _nd)

    # VMEM budget: resident weights + double-buffered x/out blocks + in-kernel temps.
    weight_bytes = sum(int(a.size) * a.dtype.itemsize for a in operands)
    block_bytes = 2 * 2 * S * E * 4                    # in + out, double-buffered
    temp_bytes = 4 * S * max(3 * E, dff) * 4 + S * E * 4
    vmem_limit = int(min(max(1.5 * (weight_bytes + block_bytes + temp_bytes),
                             8 * 2 ** 20),
                         64 * 2 ** 20))                # stay within v7x physical VMEM

    kernel = functools.partial(_encoder_layer_kernel, nhead)
    out = pl.pallas_call(
        kernel,
        grid=(B,),
        out_shape=jax.ShapeDtypeStruct((B, S, E), jnp.float32),
        in_specs=[pl.BlockSpec((None, S, E), lambda b: (b, 0, 0))]
                 + [resident(a) for a in operands],
        out_specs=pl.BlockSpec((None, S, E), lambda b: (b, 0, 0)),
        compiler_params=pltpu.CompilerParams(
            dimension_semantics=("parallel",),
            vmem_limit_bytes=vmem_limit),
    )(x, *operands)

    return out if batch_first else jnp.transpose(out, (1, 0, 2))


# ----------------------------------------------------------------------------
# Pure-JAX reference (mirrors the PyTorch forward, eval mode)
# ----------------------------------------------------------------------------
def reference(src, p, nhead):
    S, B, E = src.shape
    Dh = E // nhead

    def ln(v, g, b):
        mu = v.mean(-1, keepdims=True)
        var = ((v - mu) ** 2).mean(-1, keepdims=True)
        return (v - mu) / jnp.sqrt(var + LN_EPS) * g + b

    def gate(x, y, g):
        r = jax.nn.sigmoid(y @ g['wr'].T + x @ g['ur'].T)
        z = jax.nn.sigmoid(y @ g['wz'].T + x @ g['uz'].T - g['bg'])
        h = jnp.tanh(y @ g['wg'].T + (r * x) @ g['ug'].T)
        return (1.0 - z) * x + z * h

    x2 = ln(src, p['n1_g'], p['n1_b'])
    qkv = x2 @ p['in_w'].T + p['in_b']
    q, k, v = jnp.split(qkv, 3, axis=-1)

    def heads(t):                                    # (S,B,E) -> (B,H,S,Dh)
        return jnp.transpose(t.reshape(S, B, nhead, Dh), (1, 2, 0, 3))

    qh = heads(q) * (1.0 / math.sqrt(Dh))
    kh, vh = heads(k), heads(v)
    s = jnp.einsum('bhqd,bhkd->bhqk', qh, kh)
    a = jax.nn.softmax(s, axis=-1)
    ctx = jnp.einsum('bhqk,bhkd->bhqd', a, vh)
    ctx = jnp.transpose(ctx, (2, 0, 1, 3)).reshape(S, B, E)
    attn_out = ctx @ p['out_w'].T + p['out_b']

    src = gate(src, jax.nn.relu(attn_out), p['gate_mha'])
    x2 = ln(src, p['n2_g'], p['n2_b'])
    ff = jax.nn.relu(x2 @ p['ff_w1'].T + p['ff_b1']) @ p['ff_w2'].T + p['ff_b2']
    src = gate(src, jax.nn.relu(ff), p['gate_mlp'])
    return src


# ----------------------------------------------------------------------------
# Deterministic parameter init (torch-convention shapes)
# ----------------------------------------------------------------------------
def init_params(key, E, dff):
    ks = iter(jax.random.split(key, 40))

    def w(shape, fan_in):
        return jax.random.normal(next(ks), shape, jnp.float32) / math.sqrt(fan_in)

    def gate_params():
        d = {n: w((E, E), E) for n in ('wr', 'ur', 'wz', 'uz', 'wg', 'ug')}
        d['bg'] = jnp.full((E,), 2.0, jnp.float32)
        return d

    return {
        'in_w': w((3 * E, E), E), 'in_b': 0.1 * jax.random.normal(next(ks), (3 * E,)),
        'out_w': w((E, E), E), 'out_b': 0.1 * jax.random.normal(next(ks), (E,)),
        'n1_g': jnp.ones((E,)) + 0.1 * jax.random.normal(next(ks), (E,)),
        'n1_b': 0.1 * jax.random.normal(next(ks), (E,)),
        'n2_g': jnp.ones((E,)) + 0.1 * jax.random.normal(next(ks), (E,)),
        'n2_b': 0.1 * jax.random.normal(next(ks), (E,)),
        'ff_w1': w((dff, E), E), 'ff_b1': 0.1 * jax.random.normal(next(ks), (dff,)),
        'ff_w2': w((E, dff), dff), 'ff_b2': 0.1 * jax.random.normal(next(ks), (E,)),
        'gate_mha': gate_params(),
        'gate_mlp': gate_params(),
    }


if __name__ == "__main__":
    # Small but lane-aligned shapes: E and dff multiples of 128 keep stores dense.
    S, B, E, NHEAD, DFF = 16, 2, 128, 4, 256
    key = jax.random.PRNGKey(0)
    kp, kx = jax.random.split(key)
    params = init_params(kp, E, DFF)
    src = jax.random.normal(kx, (S, B, E), jnp.float32)      # (seq, batch, embed)

    ref = jax.block_until_ready(reference(src, params, NHEAD))

    # f32 MXU operands: tight tolerance (budget covers multi-pass f32 MXU + rsqrt LN).
    out_f32 = jax.block_until_ready(
        transformer_encoder_layer(src, params, NHEAD, compute_dtype=jnp.float32))
    assert out_f32.shape == (S, B, E)
    err32 = float(jnp.max(jnp.abs(out_f32 - ref)))
    assert err32 < 1e-3, f"f32 kernel mismatch vs reference: {err32}"

    # bf16 MXU operands (perf path, halves weight VMEM): loose sanity tolerance.
    out_bf16 = jax.block_until_ready(
        transformer_encoder_layer(src, params, NHEAD, compute_dtype=jnp.bfloat16))
    errbf = float(jnp.max(jnp.abs(out_bf16 - ref)))
    assert errbf < 2e-1, f"bf16 kernel mismatch vs reference: {errbf}"

    print("KERNEL_OK")
</pallas_src>

<mosaic_0001>
module attributes {stable_mosaic.version = 11 : i64} {
  func.func @_encoder_layer_kernel(%arg0: i32, %arg1: memref<1x16x128xf32, #tpu.memory_space<vmem>>, %arg2: memref<128x384xf32, #tpu.memory_space<vmem>>, %arg3: memref<1x384xf32, #tpu.memory_space<vmem>>, %arg4: memref<128x128xf32, #tpu.memory_space<vmem>>, %arg5: memref<1x128xf32, #tpu.memory_space<vmem>>, %arg6: memref<4x128xf32, #tpu.memory_space<vmem>>, %arg7: memref<128x256xf32, #tpu.memory_space<vmem>>, %arg8: memref<1x256xf32, #tpu.memory_space<vmem>>, %arg9: memref<256x128xf32, #tpu.memory_space<vmem>>, %arg10: memref<1x128xf32, #tpu.memory_space<vmem>>, %arg11: memref<128x384xf32, #tpu.memory_space<vmem>>, %arg12: memref<128x256xf32, #tpu.memory_space<vmem>>, %arg13: memref<128x128xf32, #tpu.memory_space<vmem>>, %arg14: memref<1x128xf32, #tpu.memory_space<vmem>>, %arg15: memref<128x384xf32, #tpu.memory_space<vmem>>, %arg16: memref<128x256xf32, #tpu.memory_space<vmem>>, %arg17: memref<128x128xf32, #tpu.memory_space<vmem>>, %arg18: memref<1x128xf32, #tpu.memory_space<vmem>>, %arg19: memref<1x16x128xf32, #tpu.memory_space<vmem>>) attributes {dimension_semantics = [#tpu.dimension_semantics<parallel>], iteration_bounds = array<i64: 2>, scalar_prefetch = 0 : i64, scratch_operands = 0 : i64, tpu.core_type = #tpu.core_type<tc>, window_params = [{transform_indices = @transform_0, window_bounds = array<i64: 1, 16, 128>}, {pipeline_mode = #tpu.pipeline_mode<synchronous>, transform_indices = @transform_1, window_bounds = array<i64: 128, 384>}, {pipeline_mode = #tpu.pipeline_mode<synchronous>, transform_indices = @transform_2, window_bounds = array<i64: 1, 384>}, {pipeline_mode = #tpu.pipeline_mode<synchronous>, transform_indices = @transform_3, window_bounds = array<i64: 128, 128>}, {pipeline_mode = #tpu.pipeline_mode<synchronous>, transform_indices = @transform_4, window_bounds = array<i64: 1, 128>}, {pipeline_mode = #tpu.pipeline_mode<synchronous>, transform_indices = @transform_5, window_bounds = array<i64: 4, 128>}, {pipeline_mode = #tpu.pipeline_mode<synchronous>, transform_indices = @transform_6, window_bounds = array<i64: 128, 256>}, {pipeline_mode = #tpu.pipeline_mode<synchronous>, transform_indices = @transform_7, window_bounds = array<i64: 1, 256>}, {pipeline_mode = #tpu.pipeline_mode<synchronous>, transform_indices = @transform_8, window_bounds = array<i64: 256, 128>}, {pipeline_mode = #tpu.pipeline_mode<synchronous>, transform_indices = @transform_9, window_bounds = array<i64: 1, 128>}, {pipeline_mode = #tpu.pipeline_mode<synchronous>, transform_indices = @transform_10, window_bounds = array<i64: 128, 384>}, {pipeline_mode = #tpu.pipeline_mode<synchronous>, transform_indices = @transform_11, window_bounds = array<i64: 128, 256>}, {pipeline_mode = #tpu.pipeline_mode<synchronous>, transform_indices = @transform_12, window_bounds = array<i64: 128, 128>}, {pipeline_mode = #tpu.pipeline_mode<synchronous>, transform_indices = @transform_13, window_bounds = array<i64: 1, 128>}, {pipeline_mode = #tpu.pipeline_mode<synchronous>, transform_indices = @transform_14, window_bounds = array<i64: 128, 384>}, {pipeline_mode = #tpu.pipeline_mode<synchronous>, transform_indices = @transform_15, window_bounds = array<i64: 128, 256>}, {pipeline_mode = #tpu.pipeline_mode<synchronous>, transform_indices = @transform_16, window_bounds = array<i64: 128, 128>}, {pipeline_mode = #tpu.pipeline_mode<synchronous>, transform_indices = @transform_17, window_bounds = array<i64: 1, 128>}, {transform_indices = @transform_18, window_bounds = array<i64: 1, 16, 128>}]} {
    %c0 = arith.constant 0 : index
    %c0_0 = arith.constant 0 : index
    %c0_1 = arith.constant 0 : index
    %0 = vector.load %arg1[%c0, %c0_0, %c0_1] : memref<1x16x128xf32, #tpu.memory_space<vmem>>, vector<1x16x128xf32>
    %1 = vector.shape_cast %0 : vector<1x16x128xf32> to vector<16x128xf32>
    %c0_2 = arith.constant 0 : index
    %c0_3 = arith.constant 0 : index
    %2 = vector.load %arg6[%c0_2, %c0_3] : memref<4x128xf32, #tpu.memory_space<vmem>>, vector<1x128xf32>
    %c1 = arith.constant 1 : index
    %c0_4 = arith.constant 0 : index
    %3 = vector.load %arg6[%c1, %c0_4] : memref<4x128xf32, #tpu.memory_space<vmem>>, vector<1x128xf32>
    %cst = arith.constant dense<0.000000e+00> : vector<16xf32>
    %4 = vector.multi_reduction <add>, %1, %cst [1] : vector<16x128xf32> to vector<16xf32>
    %5 = vector.shape_cast %4 : vector<16xf32> to vector<16x1xf32>
    %cst_5 = arith.constant 1.280000e+02 : f32
    %6 = vector.broadcast %cst_5 : f32 to vector<16x1xf32>
    %7 = arith.divf %5, %6 : vector<16x1xf32>
    %8 = vector.broadcast %7 : vector<16x1xf32> to vector<16x128xf32>
    %9 = arith.subf %1, %8 : vector<16x128xf32>
    %10 = arith.mulf %9, %9 : vector<16x128xf32>
    %cst_6 = arith.constant dense<0.000000e+00> : vector<16xf32>
    %11 = vector.multi_reduction <add>, %10, %cst_6 [1] : vector<16x128xf32> to vector<16xf32>
    %12 = vector.shape_cast %11 : vector<16xf32> to vector<16x1xf32>
    %cst_7 = arith.constant 1.280000e+02 : f32
    %13 = vector.broadcast %cst_7 : f32 to vector<16x1xf32>
    %14 = arith.divf %12, %13 : vector<16x1xf32>
    %15 = vector.broadcast %7 : vector<16x1xf32> to vector<16x128xf32>
    %16 = arith.subf %1, %15 : vector<16x128xf32>
    %cst_8 = arith.constant 9.99999974E-6 : f32
    %17 = vector.broadcast %cst_8 : f32 to vector<16x1xf32>
    %18 = arith.addf %14, %17 : vector<16x1xf32>
    %19 = math.rsqrt %18 : vector<16x1xf32>
    %20 = vector.broadcast %19 : vector<16x1xf32> to vector<16x128xf32>
    %21 = arith.mulf %16, %20 : vector<16x128xf32>
    %22 = vector.broadcast %2 : vector<1x128xf32> to vector<16x128xf32>
    %23 = arith.mulf %21, %22 : vector<16x128xf32>
    %24 = vector.broadcast %3 : vector<1x128xf32> to vector<16x128xf32>
    %25 = arith.addf %23, %24 : vector<16x128xf32>
    %c0_9 = arith.constant 0 : index
    %c0_10 = arith.constant 0 : index
    %26 = vector.load %arg2[%c0_9, %c0_10] : memref<128x384xf32, #tpu.memory_space<vmem>>, vector<128x384xf32>
    %cst_11 = arith.constant dense<0.000000e+00> : vector<16x384xf32>
    %27 = tpu.matmul %25, %26, %cst_11 {dimension_numbers = #tpu.dot_dimension_numbers<[1], [0], [0], [1], [0, 0, 1, 1], [], []>} : vector<16x128xf32>, vector<128x384xf32>, vector<16x384xf32> -> vector<16x384xf32>
    %c0_12 = arith.constant 0 : index
    %c0_13 = arith.constant 0 : index
    %28 = vector.load %arg3[%c0_12, %c0_13] : memref<1x384xf32, #tpu.memory_space<vmem>>, vector<1x384xf32>
    %29 = vector.broadcast %28 : vector<1x384xf32> to vector<16x384xf32>
    %30 = arith.addf %27, %29 : vector<16x384xf32>
    %31 = vector.extract_strided_slice %30 {offsets = [0, 0], sizes = [16, 32], strides = [1, 1]} : vector<16x384xf32> to vector<16x32xf32>
    %32 = vector.extract_strided_slice %30 {offsets = [0, 128], sizes = [16, 32], strides = [1, 1]} : vector<16x384xf32> to vector<16x32xf32>
    %33 = vector.extract_strided_slice %30 {offsets = [0, 256], sizes = [16, 32], strides = [1, 1]} : vector<16x384xf32> to vector<16x32xf32>
    %cst_14 = arith.constant dense<0.000000e+00> : vector<16x16xf32>
    %34 = tpu.matmul %31, %32, %cst_14 {dimension_numbers = #tpu.dot_dimension_numbers<[1], [1], [0], [0], [0, 0, 1, 0], [], []>} : vector<16x32xf32>, vector<16x32xf32>, vector<16x16xf32> -> vector<16x16xf32>
    %cst_15 = arith.constant dense<0xFF800000> : vector<16xf32>
    %35 = vector.multi_reduction <maximumf>, %34, %cst_15 [1] : vector<16x16xf32> to vector<16xf32>
    %36 = vector.shape_cast %35 : vector<16xf32> to vector<16x1xf32>
    %37 = vector.broadcast %36 : vector<16x1xf32> to vector<16x16xf32>
    %38 = arith.subf %34, %37 : vector<16x16xf32>
    %39 = math.exp %38 : vector<16x16xf32>
    %cst_16 = arith.constant dense<0.000000e+00> : vector<16xf32>
    %40 = vector.multi_reduction <add>, %39, %cst_16 [1] : vector<16x16xf32> to vector<16xf32>
    %41 = vector.shape_cast %40 : vector<16xf32> to vector<16x1xf32>
    %42 = tpu.reciprocal %41 : vector<16x1xf32> -> vector<16x1xf32>
    %43 = vector.broadcast %42 : vector<16x1xf32> to vector<16x16xf32>
    %44 = arith.mulf %39, %43 : vector<16x16xf32>
    %cst_17 = arith.constant dense<0.000000e+00> : vector<16x32xf32>
    %45 = tpu.matmul %44, %33, %cst_17 {dimension_numbers = #tpu.dot_dimension_numbers<[1], [0], [0], [1], [0, 0, 1, 1], [], []>} : vector<16x16xf32>, vector<16x32xf32>, vector<16x32xf32> -> vector<16x32xf32>
    %46 = vector.extract_strided_slice %30 {offsets = [0, 32], sizes = [16, 32], strides = [1, 1]} : vector<16x384xf32> to vector<16x32xf32>
    %47 = vector.extract_strided_slice %30 {offsets = [0, 160], sizes = [16, 32], strides = [1, 1]} : vector<16x384xf32> to vector<16x32xf32>
    %48 = vector.extract_strided_slice %30 {offsets = [0, 288], sizes = [16, 32], strides = [1, 1]} : vector<16x384xf32> to vector<16x32xf32>
    %cst_18 = arith.constant dense<0.000000e+00> : vector<16x16xf32>
    %49 = tpu.matmul %46, %47, %cst_18 {dimension_numbers = #tpu.dot_dimension_numbers<[1], [1], [0], [0], [0, 0, 1, 0], [], []>} : vector<16x32xf32>, vector<16x32xf32>, vector<16x16xf32> -> vector<16x16xf32>
    %cst_19 = arith.constant dense<0xFF800000> : vector<16xf32>
    %50 = vector.multi_reduction <maximumf>, %49, %cst_19 [1] : vector<16x16xf32> to vector<16xf32>
    %51 = vector.shape_cast %50 : vector<16xf32> to vector<16x1xf32>
    %52 = vector.broadcast %51 : vector<16x1xf32> to vector<16x16xf32>
    %53 = arith.subf %49, %52 : vector<16x16xf32>
    %54 = math.exp %53 : vector<16x16xf32>
    %cst_20 = arith.constant dense<0.000000e+00> : vector<16xf32>
    %55 = vector.multi_reduction <add>, %54, %cst_20 [1] : vector<16x16xf32> to vector<16xf32>
    %56 = vector.shape_cast %55 : vector<16xf32> to vector<16x1xf32>
    %57 = tpu.reciprocal %56 : vector<16x1xf32> -> vector<16x1xf32>
    %58 = vector.broadcast %57 : vector<16x1xf32> to vector<16x16xf32>
    %59 = arith.mulf %54, %58 : vector<16x16xf32>
    %cst_21 = arith.constant dense<0.000000e+00> : vector<16x32xf32>
    %60 = tpu.matmul %59, %48, %cst_21 {dimension_numbers = #tpu.dot_dimension_numbers<[1], [0], [0], [1], [0, 0, 1, 1], [], []>} : vector<16x16xf32>, vector<16x32xf32>, vector<16x32xf32> -> vector<16x32xf32>
    %61 = vector.extract_strided_slice %30 {offsets = [0, 64], sizes = [16, 32], strides = [1, 1]} : vector<16x384xf32> to vector<16x32xf32>
    %62 = vector.extract_strided_slice %30 {offsets = [0, 192], sizes = [16, 32], strides = [1, 1]} : vector<16x384xf32> to vector<16x32xf32>
    %63 = vector.extract_strided_slice %30 {offsets = [0, 320], sizes = [16, 32], strides = [1, 1]} : vector<16x384xf32> to vector<16x32xf32>
    %cst_22 = arith.constant dense<0.000000e+00> : vector<16x16xf32>
    %64 = tpu.matmul %61, %62, %cst_22 {dimension_numbers = #tpu.dot_dimension_numbers<[1], [1], [0], [0], [0, 0, 1, 0], [], []>} : vector<16x32xf32>, vector<16x32xf32>, vector<16x16xf32> -> vector<16x16xf32>
    %cst_23 = arith.constant dense<0xFF800000> : vector<16xf32>
    %65 = vector.multi_reduction <maximumf>, %64, %cst_23 [1] : vector<16x16xf32> to vector<16xf32>
    %66 = vector.shape_cast %65 : vector<16xf32> to vector<16x1xf32>
    %67 = vector.broadcast %66 : vector<16x1xf32> to vector<16x16xf32>
    %68 = arith.subf %64, %67 : vector<16x16xf32>
    %69 = math.exp %68 : vector<16x16xf32>
    %cst_24 = arith.constant dense<0.000000e+00> : vector<16xf32>
    %70 = vector.multi_reduction <add>, %69, %cst_24 [1] : vector<16x16xf32> to vector<16xf32>
    %71 = vector.shape_cast %70 : vector<16xf32> to vector<16x1xf32>
    %72 = tpu.reciprocal %71 : vector<16x1xf32> -> vector<16x1xf32>
    %73 = vector.broadcast %72 : vector<16x1xf32> to vector<16x16xf32>
    %74 = arith.mulf %69, %73 : vector<16x16xf32>
    %cst_25 = arith.constant dense<0.000000e+00> : vector<16x32xf32>
    %75 = tpu.matmul %74, %63, %cst_25 {dimension_numbers = #tpu.dot_dimension_numbers<[1], [0], [0], [1], [0, 0, 1, 1], [], []>} : vector<16x16xf32>, vector<16x32xf32>, vector<16x32xf32> -> vector<16x32xf32>
    %76 = vector.extract_strided_slice %30 {offsets = [0, 96], sizes = [16, 32], strides = [1, 1]} : vector<16x384xf32> to vector<16x32xf32>
    %77 = vector.extract_strided_slice %30 {offsets = [0, 224], sizes = [16, 32], strides = [1, 1]} : vector<16x384xf32> to vector<16x32xf32>
    %78 = vector.extract_strided_slice %30 {offsets = [0, 352], sizes = [16, 32], strides = [1, 1]} : vector<16x384xf32> to vector<16x32xf32>
    %cst_26 = arith.constant dense<0.000000e+00> : vector<16x16xf32>
    %79 = tpu.matmul %76, %77, %cst_26 {dimension_numbers = #tpu.dot_dimension_numbers<[1], [1], [0], [0], [0, 0, 1, 0], [], []>} : vector<16x32xf32>, vector<16x32xf32>, vector<16x16xf32> -> vector<16x16xf32>
    %cst_27 = arith.constant dense<0xFF800000> : vector<16xf32>
    %80 = vector.multi_reduction <maximumf>, %79, %cst_27 [1] : vector<16x16xf32> to vector<16xf32>
    %81 = vector.shape_cast %80 : vector<16xf32> to vector<16x1xf32>
    %82 = vector.broadcast %81 : vector<16x1xf32> to vector<16x16xf32>
    %83 = arith.subf %79, %82 : vector<16x16xf32>
    %84 = math.exp %83 : vector<16x16xf32>
    %cst_28 = arith.constant dense<0.000000e+00> : vector<16xf32>
    %85 = vector.multi_reduction <add>, %84, %cst_28 [1] : vector<16x16xf32> to vector<16xf32>
    %86 = vector.shape_cast %85 : vector<16xf32> to vector<16x1xf32>
    %87 = tpu.reciprocal %86 : vector<16x1xf32> -> vector<16x1xf32>
    %88 = vector.broadcast %87 : vector<16x1xf32> to vector<16x16xf32>
    %89 = arith.mulf %84, %88 : vector<16x16xf32>
    %cst_29 = arith.constant dense<0.000000e+00> : vector<16x32xf32>
    %90 = tpu.matmul %89, %78, %cst_29 {dimension_numbers = #tpu.dot_dimension_numbers<[1], [0], [0], [1], [0, 0, 1, 1], [], []>} : vector<16x16xf32>, vector<16x32xf32>, vector<16x32xf32> -> vector<16x32xf32>
    %91 = tpu.concatenate %45, %60, %75, %90 in 1 : vector<16x32xf32>, vector<16x32xf32>, vector<16x32xf32>, vector<16x32xf32> -> vector<16x128xf32>
    %c0_30 = arith.constant 0 : index
    %c0_31 = arith.constant 0 : index
    %92 = vector.load %arg4[%c0_30, %c0_31] : memref<128x128xf32, #tpu.memory_space<vmem>>, vector<128x128xf32>
    %cst_32 = arith.constant dense<0.000000e+00> : vector<16x128xf32>
    %93 = tpu.matmul %91, %92, %cst_32 {dimension_numbers = #tpu.dot_dimension_numbers<[1], [0], [0], [1], [0, 0, 1, 1], [], []>} : vector<16x128xf32>, vector<128x128xf32>, vector<16x128xf32> -> vector<16x128xf32>
    %c0_33 = arith.constant 0 : index
    %c0_34 = arith.constant 0 : index
    %94 = vector.load %arg5[%c0_33, %c0_34] : memref<1x128xf32, #tpu.memory_space<vmem>>, vector<1x128xf32>
    %95 = vector.broadcast %94 : vector<1x128xf32> to vector<16x128xf32>
    %96 = arith.addf %93, %95 : vector<16x128xf32>
    %cst_35 = arith.constant 0.000000e+00 : f32
    %97 = vector.broadcast %cst_35 : f32 to vector<16x128xf32>
    %98 = arith.maximumf %96, %97 : vector<16x128xf32>
    %c0_36 = arith.constant 0 : index
    %c0_37 = arith.constant 0 : index
    %99 = vector.load %arg11[%c0_36, %c0_37] : memref<128x384xf32, #tpu.memory_space<vmem>>, vector<128x384xf32>
    %cst_38 = arith.constant dense<0.000000e+00> : vector<16x384xf32>
    %100 = tpu.matmul %98, %99, %cst_38 {dimension_numbers = #tpu.dot_dimension_numbers<[1], [0], [0], [1], [0, 0, 1, 1], [], []>} : vector<16x128xf32>, vector<128x384xf32>, vector<16x384xf32> -> vector<16x384xf32>
    %c0_39 = arith.constant 0 : index
    %c0_40 = arith.constant 0 : index
    %101 = vector.load %arg12[%c0_39, %c0_40] : memref<128x256xf32, #tpu.memory_space<vmem>>, vector<128x256xf32>
    %cst_41 = arith.constant dense<0.000000e+00> : vector<16x256xf32>
    %102 = tpu.matmul %1, %101, %cst_41 {dimension_numbers = #tpu.dot_dimension_numbers<[1], [0], [0], [1], [0, 0, 1, 1], [], []>} : vector<16x128xf32>, vector<128x256xf32>, vector<16x256xf32> -> vector<16x256xf32>
    %103 = vector.extract_strided_slice %100 {offsets = [0, 0], sizes = [16, 128], strides = [1, 1]} : vector<16x384xf32> to vector<16x128xf32>
    %104 = vector.extract_strided_slice %102 {offsets = [0, 0], sizes = [16, 128], strides = [1, 1]} : vector<16x256xf32> to vector<16x128xf32>
    %105 = arith.addf %103, %104 : vector<16x128xf32>
    %106 = arith.negf %105 : vector<16x128xf32>
    %107 = math.exp %106 : vector<16x128xf32>
    %cst_42 = arith.constant 1.000000e+00 : f32
    %108 = vector.broadcast %cst_42 : f32 to vector<16x128xf32>
    %109 = arith.addf %108, %107 : vector<16x128xf32>
    %110 = arith.divf %108, %109 : vector<16x128xf32>
    %111 = vector.extract_strided_slice %100 {offsets = [0, 128], sizes = [16, 128], strides = [1, 1]} : vector<16x384xf32> to vector<16x128xf32>
    %112 = vector.extract_strided_slice %102 {offsets = [0, 128], sizes = [16, 128], strides = [1, 1]} : vector<16x256xf32> to vector<16x128xf32>
    %113 = arith.addf %111, %112 : vector<16x128xf32>
    %c0_43 = arith.constant 0 : index
    %c0_44 = arith.constant 0 : index
    %114 = vector.load %arg14[%c0_43, %c0_44] : memref<1x128xf32, #tpu.memory_space<vmem>>, vector<1x128xf32>
    %115 = vector.broadcast %114 : vector<1x128xf32> to vector<16x128xf32>
    %116 = arith.subf %113, %115 : vector<16x128xf32>
    %117 = arith.negf %116 : vector<16x128xf32>
    %118 = math.exp %117 : vector<16x128xf32>
    %cst_45 = arith.constant 1.000000e+00 : f32
    %119 = vector.broadcast %cst_45 : f32 to vector<16x128xf32>
    %120 = arith.addf %119, %118 : vector<16x128xf32>
    %121 = arith.divf %119, %120 : vector<16x128xf32>
    %122 = vector.extract_strided_slice %100 {offsets = [0, 256], sizes = [16, 128], strides = [1, 1]} : vector<16x384xf32> to vector<16x128xf32>
    %123 = arith.mulf %110, %1 : vector<16x128xf32>
    %c0_46 = arith.constant 0 : index
    %c0_47 = arith.constant 0 : index
    %124 = vector.load %arg13[%c0_46, %c0_47] : memref<128x128xf32, #tpu.memory_space<vmem>>, vector<128x128xf32>
    %cst_48 = arith.constant dense<0.000000e+00> : vector<16x128xf32>
    %125 = tpu.matmul %123, %124, %cst_48 {dimension_numbers = #tpu.dot_dimension_numbers<[1], [0], [0], [1], [0, 0, 1, 1], [], []>} : vector<16x128xf32>, vector<128x128xf32>, vector<16x128xf32> -> vector<16x128xf32>
    %126 = arith.addf %122, %125 : vector<16x128xf32>
    %127 = math.tanh %126 : vector<16x128xf32>
    %cst_49 = arith.constant 1.000000e+00 : f32
    %128 = vector.broadcast %cst_49 : f32 to vector<16x128xf32>
    %129 = arith.subf %128, %121 : vector<16x128xf32>
    %130 = arith.mulf %129, %1 : vector<16x128xf32>
    %131 = arith.mulf %121, %127 : vector<16x128xf32>
    %132 = arith.addf %130, %131 : vector<16x128xf32>
    %c2 = arith.constant 2 : index
    %c0_50 = arith.constant 0 : index
    %133 = vector.load %arg6[%c2, %c0_50] : memref<4x128xf32, #tpu.memory_space<vmem>>, vector<1x128xf32>
    %c3 = arith.constant 3 : index
    %c0_51 = arith.constant 0 : index
    %134 = vector.load %arg6[%c3, %c0_51] : memref<4x128xf32, #tpu.memory_space<vmem>>, vector<1x128xf32>
    %cst_52 = arith.constant dense<0.000000e+00> : vector<16xf32>
    %135 = vector.multi_reduction <add>, %132, %cst_52 [1] : vector<16x128xf32> to vector<16xf32>
    %136 = vector.shape_cast %135 : vector<16xf32> to vector<16x1xf32>
    %cst_53 = arith.constant 1.280000e+02 : f32
    %137 = vector.broadcast %cst_53 : f32 to vector<16x1xf32>
    %138 = arith.divf %136, %137 : vector<16x1xf32>
    %139 = vector.broadcast %138 : vector<16x1xf32> to vector<16x128xf32>
    %140 = arith.subf %132, %139 : vector<16x128xf32>
    %141 = arith.mulf %140, %140 : vector<16x128xf32>
    %cst_54 = arith.constant dense<0.000000e+00> : vector<16xf32>
    %142 = vector.multi_reduction <add>, %141, %cst_54 [1] : vector<16x128xf32> to vector<16xf32>
    %143 = vector.shape_cast %142 : vector<16xf32> to vector<16x1xf32>
    %cst_55 = arith.constant 1.280000e+02 : f32
    %144 = vector.broadcast %cst_55 : f32 to vector<16x1xf32>
    %145 = arith.divf %143, %144 : vector<16x1xf32>
    %146 = vector.broadcast %138 : vector<16x1xf32> to vector<16x128xf32>
    %147 = arith.subf %132, %146 : vector<16x128xf32>
    %cst_56 = arith.constant 9.99999974E-6 : f32
    %148 = vector.broadcast %cst_56 : f32 to vector<16x1xf32>
    %149 = arith.addf %145, %148 : vector<16x1xf32>
    %150 = math.rsqrt %149 : vector<16x1xf32>
    %151 = vector.broadcast %150 : vector<16x1xf32> to vector<16x128xf32>
    %152 = arith.mulf %147, %151 : vector<16x128xf32>
    %153 = vector.broadcast %133 : vector<1x128xf32> to vector<16x128xf32>
    %154 = arith.mulf %152, %153 : vector<16x128xf32>
    %155 = vector.broadcast %134 : vector<1x128xf32> to vector<16x128xf32>
    %156 = arith.addf %154, %155 : vector<16x128xf32>
    %c0_57 = arith.constant 0 : index
    %c0_58 = arith.constant 0 : index
    %157 = vector.load %arg7[%c0_57, %c0_58] : memref<128x256xf32, #tpu.memory_space<vmem>>, vector<128x256xf32>
    %cst_59 = arith.constant dense<0.000000e+00> : vector<16x256xf32>
    %158 = tpu.matmul %156, %157, %cst_59 {dimension_numbers = #tpu.dot_dimension_numbers<[1], [0], [0], [1], [0, 0, 1, 1], [], []>} : vector<16x128xf32>, vector<128x256xf32>, vector<16x256xf32> -> vector<16x256xf32>
    %c0_60 = arith.constant 0 : index
    %c0_61 = arith.constant 0 : index
    %159 = vector.load %arg8[%c0_60, %c0_61] : memref<1x256xf32, #tpu.memory_space<vmem>>, vector<1x256xf32>
    %160 = vector.broadcast %159 : vector<1x256xf32> to vector<16x256xf32>
    %161 = arith.addf %158, %160 : vector<16x256xf32>
    %cst_62 = arith.constant 0.000000e+00 : f32
    %162 = vector.broadcast %cst_62 : f32 to vector<16x256xf32>
    %163 = arith.maximumf %161, %162 : vector<16x256xf32>
    %c0_63 = arith.constant 0 : index
    %c0_64 = arith.constant 0 : index
    %164 = vector.load %arg9[%c0_63, %c0_64] : memref<256x128xf32, #tpu.memory_space<vmem>>, vector<256x128xf32>
    %cst_65 = arith.constant dense<0.000000e+00> : vector<16x128xf32>
    %165 = tpu.matmul %163, %164, %cst_65 {dimension_numbers = #tpu.dot_dimension_numbers<[1], [0], [0], [1], [0, 0, 1, 1], [], []>} : vector<16x256xf32>, vector<256x128xf32>, vector<16x128xf32> -> vector<16x128xf32>
    %c0_66 = arith.constant 0 : index
    %c0_67 = arith.constant 0 : index
    %166 = vector.load %arg10[%c0_66, %c0_67] : memref<1x128xf32, #tpu.memory_space<vmem>>, vector<1x128xf32>
    %167 = vector.broadcast %166 : vector<1x128xf32> to vector<16x128xf32>
    %168 = arith.addf %165, %167 : vector<16x128xf32>
    %cst_68 = arith.constant 0.000000e+00 : f32
    %169 = vector.broadcast %cst_68 : f32 to vector<16x128xf32>
    %170 = arith.maximumf %168, %169 : vector<16x128xf32>
    %c0_69 = arith.constant 0 : index
    %c0_70 = arith.constant 0 : index
    %171 = vector.load %arg15[%c0_69, %c0_70] : memref<128x384xf32, #tpu.memory_space<vmem>>, vector<128x384xf32>
    %cst_71 = arith.constant dense<0.000000e+00> : vector<16x384xf32>
    %172 = tpu.matmul %170, %171, %cst_71 {dimension_numbers = #tpu.dot_dimension_numbers<[1], [0], [0], [1], [0, 0, 1, 1], [], []>} : vector<16x128xf32>, vector<128x384xf32>, vector<16x384xf32> -> vector<16x384xf32>
    %c0_72 = arith.constant 0 : index
    %c0_73 = arith.constant 0 : index
    %173 = vector.load %arg16[%c0_72, %c0_73] : memref<128x256xf32, #tpu.memory_space<vmem>>, vector<128x256xf32>
    %cst_74 = arith.constant dense<0.000000e+00> : vector<16x256xf32>
    %174 = tpu.matmul %132, %173, %cst_74 {dimension_numbers = #tpu.dot_dimension_numbers<[1], [0], [0], [1], [0, 0, 1, 1], [], []>} : vector<16x128xf32>, vector<128x256xf32>, vector<16x256xf32> -> vector<16x256xf32>
    %175 = vector.extract_strided_slice %172 {offsets = [0, 0], sizes = [16, 128], strides = [1, 1]} : vector<16x384xf32> to vector<16x128xf32>
    %176 = vector.extract_strided_slice %174 {offsets = [0, 0], sizes = [16, 128], strides = [1, 1]} : vector<16x256xf32> to vector<16x128xf32>
    %177 = arith.addf %175, %176 : vector<16x128xf32>
    %178 = arith.negf %177 : vector<16x128xf32>
    %179 = math.exp %178 : vector<16x128xf32>
    %cst_75 = arith.constant 1.000000e+00 : f32
    %180 = vector.broadcast %cst_75 : f32 to vector<16x128xf32>
    %181 = arith.addf %180, %179 : vector<16x128xf32>
    %182 = arith.divf %180, %181 : vector<16x128xf32>
    %183 = vector.extract_strided_slice %172 {offsets = [0, 128], sizes = [16, 128], strides = [1, 1]} : vector<16x384xf32> to vector<16x128xf32>
    %184 = vector.extract_strided_slice %174 {offsets = [0, 128], sizes = [16, 128], strides = [1, 1]} : vector<16x256xf32> to vector<16x128xf32>
    %185 = arith.addf %183, %184 : vector<16x128xf32>
    %c0_76 = arith.constant 0 : index
    %c0_77 = arith.constant 0 : index
    %186 = vector.load %arg18[%c0_76, %c0_77] : memref<1x128xf32, #tpu.memory_space<vmem>>, vector<1x128xf32>
    %187 = vector.broadcast %186 : vector<1x128xf32> to vector<16x128xf32>
    %188 = arith.subf %185, %187 : vector<16x128xf32>
    %189 = arith.negf %188 : vector<16x128xf32>
    %190 = math.exp %189 : vector<16x128xf32>
    %cst_78 = arith.constant 1.000000e+00 : f32
    %191 = vector.broadcast %cst_78 : f32 to vector<16x128xf32>
    %192 = arith.addf %191, %190 : vector<16x128xf32>
    %193 = arith.divf %191, %192 : vector<16x128xf32>
    %194 = vector.extract_strided_slice %172 {offsets = [0, 256], sizes = [16, 128], strides = [1, 1]} : vector<16x384xf32> to vector<16x128xf32>
    %195 = arith.mulf %182, %132 : vector<16x128xf32>
    %c0_79 = arith.constant 0 : index
    %c0_80 = arith.constant 0 : index
    %196 = vector.load %arg17[%c0_79, %c0_80] : memref<128x128xf32, #tpu.memory_space<vmem>>, vector<128x128xf32>
    %cst_81 = arith.constant dense<0.000000e+00> : vector<16x128xf32>
    %197 = tpu.matmul %195, %196, %cst_81 {dimension_numbers = #tpu.dot_dimension_numbers<[1], [0], [0], [1], [0, 0, 1, 1], [], []>} : vector<16x128xf32>, vector<128x128xf32>, vector<16x128xf32> -> vector<16x128xf32>
    %198 = arith.addf %194, %197 : vector<16x128xf32>
    %199 = math.tanh %198 : vector<16x128xf32>
    %cst_82 = arith.constant 1.000000e+00 : f32
    %200 = vector.broadcast %cst_82 : f32 to vector<16x128xf32>
    %201 = arith.subf %200, %193 : vector<16x128xf32>
    %202 = arith.mulf %201, %132 : vector<16x128xf32>
    %203 = arith.mulf %193, %199 : vector<16x128xf32>
    %204 = arith.addf %202, %203 : vector<16x128xf32>
    %c0_83 = arith.constant 0 : index
    %c0_84 = arith.constant 0 : index
    %c0_85 = arith.constant 0 : index
    %205 = vector.load %arg19[%c0_83, %c0_84, %c0_85] : memref<1x16x128xf32, #tpu.memory_space<vmem>>, vector<1x16x128xf32>
    %206 = vector.shape_cast %205 : vector<1x16x128xf32> to vector<16x128xf32>
    %207 = vector.shape_cast %204 : vector<16x128xf32> to vector<1x16x128xf32>
    tpu.vector_store %arg19[%c0_83, %c0_84, %c0_85], %207 {strides = array<i32>} : memref<1x16x128xf32, #tpu.memory_space<vmem>>, vector<1x16x128xf32>,
    return
  }
  func.func @transform_0(%arg0: i32) -> (i32, i32, i32) {
    %c0_i32 = arith.constant 0 : i32
    %c0_i32_0 = arith.constant 0 : i32
    %c0_i32_1 = arith.constant 0 : i32
    return %arg0, %c0_i32, %c0_i32_0 : i32, i32, i32
  }
  func.func @transform_1(%arg0: i32) -> (i32, i32) {
    %c0_i32 = arith.constant 0 : i32
    %c0_i32_0 = arith.constant 0 : i32
    %c0_i32_1 = arith.constant 0 : i32
    return %c0_i32, %c0_i32_0 : i32, i32
  }
  func.func @transform_2(%arg0: i32) -> (i32, i32) {
    %c0_i32 = arith.constant 0 : i32
    %c0_i32_0 = arith.constant 0 : i32
    %c0_i32_1 = arith.constant 0 : i32
    return %c0_i32, %c0_i32_0 : i32, i32
  }
  func.func @transform_3(%arg0: i32) -> (i32, i32) {
    %c0_i32 = arith.constant 0 : i32
    %c0_i32_0 = arith.constant 0 : i32
    %c0_i32_1 = arith.constant 0 : i32
    return %c0_i32, %c0_i32_0 : i32, i32
  }
  func.func @transform_4(%arg0: i32) -> (i32, i32) {
    %c0_i32 = arith.constant 0 : i32
    %c0_i32_0 = arith.constant 0 : i32
    %c0_i32_1 = arith.constant 0 : i32
    return %c0_i32, %c0_i32_0 : i32, i32
  }
  func.func @transform_5(%arg0: i32) -> (i32, i32) {
    %c0_i32 = arith.constant 0 : i32
    %c0_i32_0 = arith.constant 0 : i32
    %c0_i32_1 = arith.constant 0 : i32
    return %c0_i32, %c0_i32_0 : i32, i32
  }
  func.func @transform_6(%arg0: i32) -> (i32, i32) {
    %c0_i32 = arith.constant 0 : i32
    %c0_i32_0 = arith.constant 0 : i32
    %c0_i32_1 = arith.constant 0 : i32
    return %c0_i32, %c0_i32_0 : i32, i32
  }
  func.func @transform_7(%arg0: i32) -> (i32, i32) {
    %c0_i32 = arith.constant 0 : i32
    %c0_i32_0 = arith.constant 0 : i32
    %c0_i32_1 = arith.constant 0 : i32
    return %c0_i32, %c0_i32_0 : i32, i32
  }
  func.func @transform_8(%arg0: i32) -> (i32, i32) {
    %c0_i32 = arith.constant 0 : i32
    %c0_i32_0 = arith.constant 0 : i32
    %c0_i32_1 = arith.constant 0 : i32
    return %c0_i32, %c0_i32_0 : i32, i32
  }
  func.func @transform_9(%arg0: i32) -> (i32, i32) {
    %c0_i32 = arith.constant 0 : i32
    %c0_i32_0 = arith.constant 0 : i32
    %c0_i32_1 = arith.constant 0 : i32
    return %c0_i32, %c0_i32_0 : i32, i32
  }
  func.func @transform_10(%arg0: i32) -> (i32, i32) {
    %c0_i32 = arith.constant 0 : i32
    %c0_i32_0 = arith.constant 0 : i32
    %c0_i32_1 = arith.constant 0 : i32
    return %c0_i32, %c0_i32_0 : i32, i32
  }
  func.func @transform_11(%arg0: i32) -> (i32, i32) {
    %c0_i32 = arith.constant 0 : i32
    %c0_i32_0 = arith.constant 0 : i32
    %c0_i32_1 = arith.constant 0 : i32
    return %c0_i32, %c0_i32_0 : i32, i32
  }
  func.func @transform_12(%arg0: i32) -> (i32, i32) {
    %c0_i32 = arith.constant 0 : i32
    %c0_i32_0 = arith.constant 0 : i32
    %c0_i32_1 = arith.constant 0 : i32
    return %c0_i32, %c0_i32_0 : i32, i32
  }
  func.func @transform_13(%arg0: i32) -> (i32, i32) {
    %c0_i32 = arith.constant 0 : i32
    %c0_i32_0 = arith.constant 0 : i32
    %c0_i32_1 = arith.constant 0 : i32
    return %c0_i32, %c0_i32_0 : i32, i32
  }
  func.func @transform_14(%arg0: i32) -> (i32, i32) {
    %c0_i32 = arith.constant 0 : i32
    %c0_i32_0 = arith.constant 0 : i32
    %c0_i32_1 = arith.constant 0 : i32
    return %c0_i32, %c0_i32_0 : i32, i32
  }
  func.func @transform_15(%arg0: i32) -> (i32, i32) {
    %c0_i32 = arith.constant 0 : i32
    %c0_i32_0 = arith.constant 0 : i32
    %c0_i32_1 = arith.constant 0 : i32
    return %c0_i32, %c0_i32_0 : i32, i32
  }
  func.func @transform_16(%arg0: i32) -> (i32, i32) {
    %c0_i32 = arith.constant 0 : i32
    %c0_i32_0 = arith.constant 0 : i32
    %c0_i32_1 = arith.constant 0 : i32
    return %c0_i32, %c0_i32_0 : i32, i32
  }
  func.func @transform_17(%arg0: i32) -> (i32, i32) {
    %c0_i32 = arith.constant 0 : i32
    %c0_i32_0 = arith.constant 0 : i32
    %c0_i32_1 = arith.constant 0 : i32
    return %c0_i32, %c0_i32_0 : i32, i32
  }
  func.func @transform_18(%arg0: i32) -> (i32, i32, i32) {
    %c0_i32 = arith.constant 0 : i32
    %c0_i32_0 = arith.constant 0 : i32
    %c0_i32_1 = arith.constant 0 : i32
    return %arg0, %c0_i32, %c0_i32_0 : i32, i32, i32
  }
}

</mosaic_0001>

<bundles_post_ra>
// kernel: tpu_custom_call.1
= control target key start
LH: loop header
LB: loop body
LE: loop exit
PB: predicated region body
PF: predicated region fallthrough
CT: control target
= control target key end

     0   :  { %s4070_s0 = inlined_call_operand.hbm [shape: f32[2,16,128], index: 0, kind: input, shape index: {}]   ;;  %s4071_s1 = inlined_call_operand.hbm [shape: f32[128,384], index: 1, kind: input, shape index: {}]   ;;  %s4072_s2 = inlined_call_operand.hbm [shape: f32[1,384], index: 2, kind: input, shape index: {}]   ;;  %s4073_s3 = inlined_call_operand.hbm [shape: f32[128,128], index: 3, kind: input, shape index: {}]   ;;  %s4074_s4 = inlined_call_operand.hbm [shape: f32[1,128], index: 4, kind: input, shape index: {}]   ;;  %s4075_s5 = inlined_call_operand.vmem [shape: f32[4,128], index: 5, kind: input, shape index: {}]   ;;  %s4076_s6 = inlined_call_operand.hbm [shape: f32[128,256], index: 6, kind: input, shape index: {}]   ;;  %s4077_s7 = inlined_call_operand.vmem [shape: f32[1,256], index: 7, kind: input, shape index: {}]   ;;  %s4078_s8 = inlined_call_operand.hbm [shape: f32[256,128], index: 8, kind: input, shape index: {}]   ;;  %s4079_s9 = inlined_call_operand.vmem [shape: f32[1,128], index: 9, kind: input, shape index: {}]   ;;  %s4080_s10 = inlined_call_operand.hbm [shape: f32[128,384], index: 10, kind: input, shape index: {}]   ;;  %s4081_s11 = inlined_call_operand.hbm [shape: f32[128,256], index: 11, kind: input, shape index: {}]   ;;  %s4082_s12 = inlined_call_operand.hbm [shape: f32[128,128], index: 12, kind: input, shape index: {}]   ;;  %s4083_s13 = inlined_call_operand.vmem [shape: f32[1,128], index: 13, kind: input, shape index: {}]   ;;  %s4084_s14 = inlined_call_operand.hbm [shape: f32[128,384], index: 14, kind: input, shape index: {}]   ;;  %s4085_s15 = inlined_call_operand.hbm [shape: f32[128,256], index: 15, kind: input, shape index: {}]   ;;  %s4086_s16 = inlined_call_operand.hbm [shape: f32[128,128], index: 16, kind: input, shape index: {}]   ;;  %s4087_s17 = inlined_call_operand.vmem [shape: f32[1,128], index: 17, kind: input, shape index: {}]   ;;  %s4088_s18 = inlined_call_operand.hbm [shape: f32[2,16,128], index: 18, kind: output, shape index: {}]  }
   0x1   :  { %4103 = sst [smem:[#allocation32_spill]] %s4070_s0 }
   0x2   :  { %4104 = sst [smem:[#allocation33_spill]] %s4071_s1 }
   0x3   :  { %4105 = sst [smem:[#allocation34_spill]] %s4072_s2 }
   0x4   :  { %4106 = sst [smem:[#allocation35_spill]] %s4073_s3 }
   0x5   :  { %4107 = sst [smem:[#allocation36_spill]] %s4074_s4 }
   0x6   :  { %4108 = sst [smem:[#allocation37_spill]] %s4075_s5 }
   0x7   :  { %4109 = sst [smem:[#allocation38_spill]] %s4076_s6 }
   0x8   :  { %4110 = sst [smem:[#allocation39_spill]] %s4077_s7 }
   0x9   :  { %4111 = sst [smem:[#allocation40_spill]] %s4078_s8 }
   0xa   :  { %4112 = sst [smem:[#allocation41_spill]] %s4079_s9 }
   0xb   :  { %4113 = sst [smem:[#allocation42_spill]] %s4080_s10 }
   0xc   :  { %4114 = sst [smem:[#allocation43_spill]] %s4081_s11 }
   0xd   :  { %4115 = sst [smem:[#allocation44_spill]] %s4082_s12 }
   0xe   :  { %4116 = sst [smem:[#allocation45_spill]] %s4083_s13 }
   0xf   :  { %4117 = sst [smem:[#allocation46_spill]] %s4087_s17 }
  0x10   :  { %4118 = sst [smem:[#allocation47_spill]] %s4088_s18 }
  0x11   :  { %23 = vsyncpa [#allocation3], 0 }
  0x12   :  { %25 = vsyncpa [#allocation3 + $0x1], 0 }
  0x13   :  { %26 = vsyncpa [#allocation6], 0 }
  0x14   :  { %27 = vsyncpa [#allocation9], 0 }
  0x15   :  { %28 = vsyncpa [#allocation12], 0 }
  0x16   :  { %29 = vsyncpa [#allocation15], 0 }
  0x17   :  { %30 = vsyncpa [#allocation18], 0 }
  0x18   :  { %31 = vsyncpa [#allocation21], 0 }
  0x19   :  { %32 = vsyncpa [#allocation4], 0 }
  0x1a   :  { %34 = vsyncpa [#allocation4 + $0x1], 0  ;;  %s3583_s27 = smov 0   ;;  %s3585_s28 = smov 0  }
  0x1b   :  { %s3587_s29 = smov 0   ;;  %s3589_s30 = smov 0  }
  0x1c LB: > { %s4119_s1 = sld [smem:[#allocation33_spill]]  ;;  %s3607_s21 = sadd.s32 4294967295, %s3462_s30   ;;  %s3462_s30 = sphi %s3589_s30, %s4154_s30   ;;  %s3458_s29 = sphi %s3587_s29, %s4153_s29   ;;  %s3454_s28 = sphi %s3585_s28, %s4152_s28   ;;  %s3450_s27 = sphi %s3583_s27, %s4151_s27  }
  0x1d   : > { %p2625_p0 = scmp.ge.s32.totalorder %s3462_s30, 1  ;;  %p61_p1 = scmp.eq.s32.totalorder %s3607_s21, 0 }
  0x1e   : > { %p454_p2 = scmp.lt.s32.totalorder %s3462_s30, 3  ;;  %s3464_s2 = smov [#allocation5]  }
  0x1f   : > { %s467_s23 = sshll.u32 %s3464_s2, 4  ;;  %s4121_s3 = sld [smem:[#allocation35_spill]]  ;;  %s468_s23 = int_to_ptr.vmem [resolvable:$true] %s467_s23 }
  0x20   : > { %p3612_p3 = pnand %p2625_p0, %p454_p2  ;;  %s3465_s19 = smov [#allocation8]  }
  0x21   : > { %s4092_s2 = smov 384   ;;  %s4102_s18 = smov 24  }
  0x22   : > { %s465_s20 = sshll.u32 %s4119_s1, 4  ;;  %p2748_p4 = pneg %p3612_p3  ;;  %s466_s20 = int_to_ptr.hbm [resolvable:$true] %s465_s20 }
  0x23   : > { %s493_s1 = sshll.u32 %s3465_s19, 4  ;;  %s4094_s24 = smov 128   ;;  %s494_s1 = int_to_ptr.vmem [resolvable:$true] %s493_s1 }
  0x24   : > { %p3624_p6 = pnand %p2748_p4, %p61_p1  ;;  %s4096_s25 = smov 8  }
  0x25   : > { %s491_s26 = sshll.u32 %s4121_s3, 4  ;;  %s4123_s6 = sld [smem:[#allocation38_spill]]  ;;  %s492_s26 = int_to_ptr.hbm [resolvable:$true] %s491_s26 }
  0x26   : > { %2751 = dma.hbm_to_vmem [thread:$0]  (!%p3624_p6), %s466_s20, 6144, %s468_s23, [#allocation6], %s4092_s2, %s4092_s2, %s4102_s18  }
  0x27   : > { %2757 = dma.hbm_to_vmem [thread:$0]  (!%p3624_p6), %s492_s26, 2048, %s494_s1, [#allocation9], %s4094_s24, %s4094_s24, %s4096_s25  }
  0x28   : > { %s3470_s9 = smov [#allocation11]   ;;  %s4124_s10 = sld [smem:[#allocation42_spill]] }
  0x29   : > { %s522_s7 = sshll.u32 %s3470_s9, 4  ;;  %s4098_s23 = smov 256   ;;  %s523_s7 = int_to_ptr.vmem [resolvable:$true] %s522_s7 }
  0x2a   : > { %s4100_s2 = smov 16   ;;  %s3473_s3 = smov [#allocation14]  }
  0x2b   : > { %s520_s19 = sshll.u32 %s4123_s6, 4  ;;  %s556_s17 = sshll.u32 %s3473_s3, 4  ;;  %s521_s19 = int_to_ptr.hbm [resolvable:$true] %s520_s19  ;;  %s557_s17 = int_to_ptr.vmem [resolvable:$true] %s556_s17 }
  0x2c   : > { %2763 = dma.hbm_to_vmem [thread:$0]  (!%p3624_p6), %s521_s19, 4096, %s523_s7, [#allocation12], %s4098_s23, %s4098_s23, %s4100_s2  }
  0x2d   : > { %s4125_s12 = sld [smem:[#allocation44_spill]]  ;;  %s4126_s5 = smov 384  }
  0x2e   : > { %s554_s20 = sshll.u32 %s4124_s10, 4  ;;  %s613_s25 = sshll.u32 %s4085_s15, 4  ;;  %s555_s20 = int_to_ptr.hbm [resolvable:$true] %s554_s20  ;;  %s614_s25 = int_to_ptr.hbm [resolvable:$true] %s613_s25 }
  0x2f   : > { %2769 = dma.hbm_to_vmem [thread:$0]  (!%p3624_p6), %s555_s20, 6144, %s557_s17, [#allocation15], %s4126_s5, %s4126_s5, %s4102_s18  }
  0x30   : > { %s3474_s7 = smov [#allocation17]   ;;  %s4127_s3 = smov 8  }
  0x31   : > { %s584_s19 = sshll.u32 %s3474_s7, 4  ;;  %s4128_s26 = smov 128   ;;  %s585_s19 = int_to_ptr.vmem [resolvable:$true] %s584_s19 }
  0x32   : > { %s3475_s1 = smov [#allocation20]   ;;  %s4129_s10 = sld [smem:[#allocation34_spill]] }
  0x33   : > { %s582_s9 = sshll.u32 %s4125_s12, 4  ;;  %s615_s23 = sshll.u32 %s3475_s1, 4  ;;  %s583_s9 = int_to_ptr.hbm [resolvable:$true] %s582_s9  ;;  %s616_s23 = int_to_ptr.vmem [resolvable:$true] %s615_s23 }
  0x34   : > { %2775 = dma.hbm_to_vmem [thread:$0]  (!%p3624_p6), %s583_s9, 2048, %s585_s19, [#allocation18], %s4128_s26, %s4128_s26, %s4127_s3  }
  0x35   : > { %s4130_s24 = smov 16   ;;  %s4131_s17 = smov 256  }
  0x36   : > { %2781 = dma.hbm_to_vmem [thread:$0]  (!%p3624_p6), %s614_s25, 4096, %s616_s23, [#allocation21], %s4131_s17, %s4131_s17, %s4130_s24  }
  0x37   : > { %s4132_s4 = sld [smem:[#allocation36_spill]]  ;;  %s3476_s12 = smov [#allocation7]  }
  0x38   : > { %s480_s20 = sshll.u32 %s4129_s10, 4  ;;  %s482_s9 = sshll.u32 %s3476_s12, 4  ;;  %s481_s20 = int_to_ptr.hbm [resolvable:$true] %s480_s20  ;;  %s483_s9 = int_to_ptr.vmem [resolvable:$true] %s482_s9 }
  0x39   : > { %2754 = dma.hbm_to_vmem [thread:$0]  (!%p3624_p6), %s481_s20, 48, %s483_s9, [#allocation6]  }
  0x3a   : > { %s3477_s6 = smov [#allocation10]   ;;  %s4133_s8 = sld [smem:[#allocation40_spill]] }
  0x3b   : > { %s508_s10 = sshll.u32 %s3477_s6, 4  ;;  %s4134_s11 = sld [smem:[#allocation43_spill]]  ;;  %s509_s10 = int_to_ptr.vmem [resolvable:$true] %s508_s10 }
  0x3c   : > { %s3478_s12 = smov [#allocation13]   ;;  %s3479_s20 = smov [#allocation16]  }
  0x3d   : > { %s506_s18 = sshll.u32 %s4132_s4, 4  ;;  %s539_s7 = sshll.u32 %s3478_s12, 4  ;;  %s507_s18 = int_to_ptr.hbm [resolvable:$true] %s506_s18  ;;  %s540_s7 = int_to_ptr.vmem [resolvable:$true] %s539_s7 }
  0x3e   : > { %2760 = dma.hbm_to_vmem [thread:$0]  (!%p3624_p6), %s507_s18, 16, %s509_s10, [#allocation9]  }
  0x3f   : > { %s570_s9 = sshll.u32 %s3479_s20, 4  ;;  %s599_s10 = sshll.u32 %s4084_s14, 4  ;;  %s571_s9 = int_to_ptr.vmem [resolvable:$true] %s570_s9  ;;  %s600_s10 = int_to_ptr.hbm [resolvable:$true] %s599_s10 }
  0x40   : > { %s537_s1 = sshll.u32 %s4133_s8, 4  ;;  %s3480_s25 = smov [#allocation19]   ;;  %s538_s1 = int_to_ptr.hbm [resolvable:$true] %s537_s1 }
  0x41   : > { %s568_s13 = sshll.u32 %s4134_s11, 4  ;;  %s601_s23 = sshll.u32 %s3480_s25, 4  ;;  %s569_s13 = int_to_ptr.hbm [resolvable:$true] %s568_s13  ;;  %s602_s23 = int_to_ptr.vmem [resolvable:$true] %s601_s23 }
  0x42   : > { %2766 = dma.hbm_to_vmem [thread:$0]  (!%p3624_p6), %s538_s1, 4096, %s540_s7, [#allocation12], %s4128_s26, %s4128_s26, %s4127_s3  }
  0x43   : > { %2772 = dma.hbm_to_vmem [thread:$0]  (!%p3624_p6), %s569_s13, 4096, %s571_s9, [#allocation15], %s4131_s17, %s4131_s17, %s4130_s24  }
  0x44   : > { %s627_s1 = sshll.u32 %s4086_s16, 4  ;;  %s4135_s12 = smov 24   ;;  %s628_s1 = int_to_ptr.hbm [resolvable:$true] %s627_s1 }
  0x45   : > { %2778 = dma.hbm_to_vmem [thread:$0]  (!%p3624_p6), %s600_s10, 6144, %s602_s23, [#allocation18], %s4126_s5, %s4126_s5, %s4135_s12  }
  0x46   : > { %s3481_s24 = smov [#allocation22]   ;;  %s2624_s13 = sadd.s32 4294967294, %s3462_s30  }
  0x47   : > { %s629_s17 = sshll.u32 %s3481_s24, 4  ;;  %s3714_s7 = sadd.s32 1, %s3462_s30   ;;  %s630_s17 = int_to_ptr.vmem [resolvable:$true] %s629_s17 }
  0x48   : > { %2784 = dma.hbm_to_vmem [thread:$0]  (!%p3624_p6), %s628_s1, 2048, %s630_s17, [#allocation21], %s4128_s26, %s4128_s26, %s4127_s3  }
  0x49   : > { %s44_s20 = ssub.s32 %s3462_s30, %s3714_s7  ;;  %s47_s9 = sadd.s32 1, %s3458_s29 }
  0x4a   : > { %p45_p7 = scmp.eq.s32.totalorder %s44_s20, 0  ;;  %p54_p8 = scmp.ne.s32.totalorder %s3458_s29, %s3454_s28 }
  0x4b   : > { %p55_p9 = scmp.eq.s32.totalorder %s3462_s30, 0  ;;  %p60_p10 = scmp.ne.s32.totalorder %s3454_s28, %s3450_s27 }
  0x4c   : > { %s3725_s5 = scalar_select %p45_p7, %s3458_s29, %s47_s9  }
  0x4d   : > { %p3727_p11 = por %p55_p9, %p54_p8  ;;  %p3733_p12 = por %p61_p1, %p60_p10 }
  0x4e   : > { %p441_p13 = scmp.eq.s32.totalorder %s3607_s21, 1  ;;  %p447_p0 = scmp.eq.s32.totalorder %s2624_s13, 1 }
  0x4f   : > { %p2805_p2 = scmp.lt.s32.totalorder %s3462_s30, 2  ;;  %s646_s18 = sand.u32 1, %s3458_s29  }
  0x50   : > { %p3740_p4 = por %p441_p13, %p54_p8  ;;  %p3744_p6 = por %p447_p0, %p60_p10 }
  0x51   : > { %s2639_s19 = sshll.u32 %s646_s18, 4  ;;  %s2694_s1 = sshll.u32 %s3462_s30, 4 }
  0x52   : > { %s4140_s12 = sld [smem:[#allocation32_spill]]  ;;  %s650_s17 = scalar_lea.vmem [#allocation2], %s2639_s19 }
  0x53   : > { %s658_s20 = sshll.u32 %s650_s17, 4  ;;  %p3754_p7 = pnand %p2805_p2, %p3727_p11  ;;  %s659_s20 = int_to_ptr.vmem [resolvable:$true] %s658_s20 }
  0x54   : > { %s647_s4 = scalar_lea.sflag [#allocation3], %s646_s18 }
  0x55   : > { %p3346_p9 = pneg %p3754_p7 }
  0x58   : > { %s655_s24 = scalar_lea.hbm %s4140_s12, %s2694_s1  ;;  %s3349_s25 = scalar_lea.hbm %s4140_s12, 32 }
  0x59   : > { %s656_s9 = sshll.u32 %s655_s24, 4  ;;  %s657_s9 = int_to_ptr.hbm [resolvable:$true] %s656_s9 }
  0x5a   : > { %s3342_s8 = sshra.s32 %s657_s9, 4  ;;  %s3343_s8 = int_to_ptr.hbm [resolvable:$true] %s3342_s8 }
  0x5b   : > { %s3344_s11 = scalar_lea.hbm %s3343_s8, 16  ;;  %p3350_p11 = scmp.lt.s32.totalorder %s3343_s8, %s4140_s12 }
  0x5c   : > { %p3345_p8 = scmp.ne.s32.totalorder %s3343_s8, %s3344_s11  ;;  %p3351_p0 = scmp.lt.s32.totalorder %s3349_s25, %s3344_s11 }
  0x5e   : > { %p3347_p10 = pnand %p3346_p9, %p3345_p8  ;;  %p3352_p2 = por %p3351_p0, %p3350_p11 }
  0x60   : > { %p3348_p13 = pneg %p3347_p10 }
  0x62   : > { %p3353_p5 = pnand %p3352_p2, %p3348_p13 }
  0x64   : > { %3356 = shalt.err (!%p3353_p5)
}
  0x65   : > { %2788 = dma.hbm_to_vmem [thread:$0]  (!%p3754_p7), %s657_s9, 256, %s659_s20, %s647_s4, %s4128_s26, %s4128_s26, %s4127_s3  }
  0x66   : > { %670 = sbr.rel (%p3612_p3) target bundleno = 2889 (0xb49), region = 92  ;;  %s3774_s18 = sand.u32 (!%p3612_p3), 1, %s3454_s28  }
  0x67   : > { %s2643_s8 = sshll.u32 (!%p3612_p3), %s3774_s18, 4  ;;  %s673_s11 = scalar_lea.sflag (!%p3612_p3), [#allocation3], %s3774_s18 }
  0x68   : > { %s3780_s24 = scalar_lea.vmem (!%p3612_p3), [#allocation2], %s2643_s8 }
  0x6b   : > { %3417 = dma.done.wait (%p3733_p12), %s673_s11, 256  }
  0x6c   : > { %3419 = vsyncadd (%p3733_p12), %s673_s11, 4294967040 }
  0x6d   : > { %3421 = dma.done.wait (%p61_p1), [#allocation6], 6192  }
  0x6e   : > { %3423 = vsyncadd (%p61_p1), [#allocation6], 4294961104 }
  0x6f   : > { %3425 = dma.done.wait (%p61_p1), [#allocation9], 2064  }
  0x70   : > { %3427 = vsyncadd (%p61_p1), [#allocation9], 4294965232 }
  0x71   : > { %3429 = dma.done.wait (%p61_p1), [#allocation12], 8192  }
  0x72   : > { %3431 = vsyncadd (%p61_p1), [#allocation12], 4294959104 }
  0x73   : > { %3433 = dma.done.wait (%p61_p1), [#allocation15], 10240  }
  0x74   : > { %3435 = vsyncadd (%p61_p1), [#allocation15], 4294957056 }
  0x75   : > { %3437 = dma.done.wait (%p61_p1), [#allocation18], 8192  }
  0x76   : > { %3439 = vsyncadd (%p61_p1), [#allocation18], 4294959104 }
  0x77   : > { %3441 = dma.done.wait (%p61_p1), [#allocation21], 6144  }
  0x78   : > { %3443 = vsyncadd (%p61_p1), [#allocation21], 4294961152  ;;  %v790_v0 = vld [vmem:[%s3780_s24] sm:$0xff]  ;;  %v791_v1 = vld [vmem:[%s3780_s24 + $0x8] sm:$0xff]  ;;  %v3482_v2 = vmov 128.0   ;;  %s4142_s3 = sld [smem:[#allocation37_spill]] }
  0x79   : > { %794 = vadd.xlane.f32.xlu0 %v790_v0  ;;  %2898 = vrcp.f32 %v3482_v2  ;;  %v892_v5 = vld [vmem:[#allocation5 + $0x168] sm:$0xff]  ;;  %v893_v6 = vld [vmem:[#allocation5 + $0x170] sm:$0xff]  ;;  %v894_v7 = vld [vmem:[#allocation5 + $0x178] sm:$0xff]  ;;  %s3483_s17 = smov 96   ;;  %vm972_vm7 = vcmask 261120   ;;  %vm1008_vm8 = vcmask 130048  }
  0x7a   : > { %903 = vmatpush.msra.mxu0 %v892_v5  ;;  %926 = vmatpush.msra.mxu1 %v893_v6  ;;  %v889_v8 = vld [vmem:[#allocation5 + $0x150] sm:$0xff]  ;;  %v890_v9 = vld [vmem:[#allocation5 + $0x158] sm:$0xff]  ;;  %v891_v10 = vld [vmem:[#allocation5 + $0x160] sm:$0xff]  ;;  %s3484_s20 = smov 64   ;;  %s3485_s9 = smov 32  }
  0x7b   : > { %949 = vmatpush.msra.mxu2 %v894_v7  ;;  %v886_v23 = vld [vmem:[#allocation5 + $0x138] sm:$0xff]  ;;  %v887_v24 = vld [vmem:[#allocation5 + $0x140] sm:$0xff]  ;;  %v888_v25 = vld [vmem:[#allocation5 + $0x148] sm:$0xff]  ;;  %s4145_s1 = sld [smem:[#allocation45_spill]]  ;;  %s2695_s19 = sshll.u32 %s3607_s21, 4 }
  0x7c   : > { %904 = vmatpush.msra.mxu0 %v889_v8  ;;  %927 = vmatpush.msra.mxu1 %v890_v9  ;;  %v883_v26 = vld [vmem:[#allocation5 + $0x120] sm:$0xff]  ;;  %v884_v27 = vld [vmem:[#allocation5 + $0x128] sm:$0xff]  ;;  %v885_v28 = vld [vmem:[#allocation5 + $0x130] sm:$0xff]  ;;  %s4146_s22 = sld [smem:[#allocation39_spill]]  ;;  %s789_s11 = scalar_lea.vmem [#allocation23], %s2643_s8 }
  0x7d   : > { %950 = vmatpush.msra.mxu2 %v891_v10  ;;  %v880_v29 = vld [vmem:[#allocation5 + $0x108] sm:$0xff]  ;;  %v881_v30 = vld [vmem:[#allocation5 + $0x110] sm:$0xff]  ;;  %v882_v31 = vld [vmem:[#allocation5 + $0x118] sm:$0xff]  ;;  %s4148_s13 = sld [smem:[#allocation46_spill]]  ;;  %s2422_s21 = scalar_lea.sflag [#allocation4], %s3774_s18 }
  0x7e   : > { %905 = vmatpush.msra.mxu0 %v886_v23  ;;  %928 = vmatpush.msra.mxu1 %v887_v24  ;;  %v877_v32 = vld [vmem:[#allocation5 + $0xf0] sm:$0xff]  ;;  %v878_v33 = vld [vmem:[#allocation5 + $0xf8] sm:$0xff]  ;;  %v879_v34 = vld [vmem:[#allocation5 + $0x100] sm:$0xff]  ;;  %s4149_s23 = sld [smem:[#allocation47_spill]] }
  0x7f   : > { %v2899_v3 = vpop.eup %2898  ;;  %951 = vmatpush.msra.mxu2 %v888_v25  ;;  %v874_v35 = vld [vmem:[#allocation5 + $0xd8] sm:$0xff]  ;;  %v875_v36 = vld [vmem:[#allocation5 + $0xe0] sm:$0xff]  ;;  %v876_v37 = vld [vmem:[#allocation5 + $0xe8] sm:$0xff] }
  0x80   : > { %v799_v4 = vmul.f32 128.0, %v2899_v3  ;;  %vm803_vm0 = vweird.f32 %v2899_v3  ;;  %906 = vmatpush.msra.mxu0 %v883_v26  ;;  %929 = vmatpush.msra.mxu1 %v884_v27  ;;  %v871_v38 = vld [vmem:[#allocation5 + $0xc0] sm:$0xff]  ;;  %v872_v39 = vld [vmem:[#allocation5 + $0xc8] sm:$0xff]  ;;  %v873_v40 = vld [vmem:[#allocation5 + $0xd0] sm:$0xff] }
  0x81   : > { %796 = vadd.xlane.f32.xlu0 %v791_v1  ;;  %952 = vmatpush.msra.mxu2 %v885_v28  ;;  %v868_v41 = vld [vmem:[#allocation5 + $0xa8] sm:$0xff]  ;;  %v869_v42 = vld [vmem:[#allocation5 + $0xb0] sm:$0xff]  ;;  %v870_v43 = vld [vmem:[#allocation5 + $0xb8] sm:$0xff] }
  0x82   : > { %v800_v11 = vsub.f32 1.0, %v799_v4  ;;  %907 = vmatpush.msra.mxu0 %v880_v29  ;;  %930 = vmatpush.msra.mxu1 %v881_v30  ;;  %v865_v44 = vld [vmem:[#allocation5 + $0x90] sm:$0xff]  ;;  %v866_v45 = vld [vmem:[#allocation5 + $0x98] sm:$0xff]  ;;  %v867_v46 = vld [vmem:[#allocation5 + $0xa0] sm:$0xff] }
  0x83   : > { %953 = vmatpush.msra.mxu2 %v882_v31  ;;  %v862_v47 = vld [vmem:[#allocation5 + $0x78] sm:$0xff]  ;;  %v863_v48 = vld [vmem:[#allocation5 + $0x80] sm:$0xff]  ;;  %v864_v49 = vld [vmem:[#allocation5 + $0x88] sm:$0xff] }
  0x84   : > { %v801_v12 = vmul.f32 %v2899_v3, %v800_v11  ;;  %908 = vmatpush.msra.mxu0 %v877_v32  ;;  %931 = vmatpush.msra.mxu1 %v878_v33  ;;  %v859_v50 = vld [vmem:[#allocation5 + $0x60] sm:$0xff]  ;;  %v860_v51 = vld [vmem:[#allocation5 + $0x68] sm:$0xff]  ;;  %v861_v52 = vld [vmem:[#allocation5 + $0x70] sm:$0xff]  ;;  %s2433_s0 = scalar_lea.hbm %s4149_s23, %s2695_s19 }
  0x85   : > { %954 = vmatpush.msra.mxu2 %v879_v34  ;;  %v856_v53 = vld [vmem:[#allocation5 + $0x48] sm:$0xff]  ;;  %v857_v54 = vld [vmem:[#allocation5 + $0x50] sm:$0xff]  ;;  %v858_v55 = vld [vmem:[#allocation5 + $0x58] sm:$0xff]  ;;  %s2436_s4 = sshll.u32 %s2433_s0, 4  ;;  %s2437_s4 = int_to_ptr.hbm [resolvable:$true] %s2436_s4 }
  0x86   : > { %v802_v13 = vadd.f32 %v2899_v3, %v801_v12  ;;  %909 = vmatpush.msra.mxu0 %v874_v35  ;;  %932 = vmatpush.msra.mxu1 %v875_v36  ;;  %v853_v56 = vld [vmem:[#allocation5 + $0x30] sm:$0xff]  ;;  %v854_v57 = vld [vmem:[#allocation5 + $0x38] sm:$0xff]  ;;  %v855_v58 = vld [vmem:[#allocation5 + $0x40] sm:$0xff] }
  0x87   : > { %955 = vmatpush.msra.mxu2 %v876_v37  ;;  %v850_v59 = vld [vmem:[#allocation5 + $0x18] sm:$0xff]  ;;  %v851_v60 = vld [vmem:[#allocation5 + $0x20] sm:$0xff]  ;;  %v852_v61 = vld [vmem:[#allocation5 + $0x28] sm:$0xff] }
  0x88   : > { %v3812_v14 = vsel %vm803_vm0, %v2899_v3, %v802_v13  ;;  %910 = vmatpush.msra.mxu0 %v871_v38  ;;  %933 = vmatpush.msra.mxu1 %v872_v39  ;;  %v847_v62 = vld [vmem:[#allocation5] sm:$0xff]  ;;  %v848_v63 = vld [vmem:[#allocation5 + $0x8] sm:$0xff] }
  0x89   : > { %956 = vmatpush.msra.mxu2 %v873_v40  ;;  %v895_v31 = vld [vmem:[#allocation7] sm:$0x7] }
  0x8a   : > { %911 = vmatpush.msra.mxu0 %v868_v41  ;;  %934 = vmatpush.msra.mxu1 %v869_v42  ;;  %v897_v32 = vperm.slane %v895_v31, 0  ;;  %v898_v33 = vperm.slane %v895_v31, 1  ;;  %v899_v40 = vperm.slane %v895_v31, 2 }
  0x8b   : > { %957 = vmatpush.msra.mxu2 %v870_v43 }
  0x8c   : > { %912 = vmatpush.msra.mxu0 %v865_v44  ;;  %935 = vmatpush.msra.mxu1 %v866_v45 }
  0x8d   : > { %958 = vmatpush.msra.mxu2 %v867_v46 }
  0x8e   : > { %913 = vmatpush.msra.mxu0 %v862_v47  ;;  %936 = vmatpush.msra.mxu1 %v863_v48 }
  0x8f   : > { %959 = vmatpush.msra.mxu2 %v864_v49 }
  0x90   : > { %914 = vmatpush.msra.mxu0 %v859_v50  ;;  %937 = vmatpush.msra.mxu1 %v860_v51 }
  0x91   : > { %960 = vmatpush.msra.mxu2 %v861_v52 }
  0x92   : > { %915 = vmatpush.msra.mxu0 %v856_v53  ;;  %938 = vmatpush.msra.mxu1 %v857_v54 }
  0x93   : > { %961 = vmatpush.msra.mxu2 %v858_v55 }
  0x94   : > { %916 = vmatpush.msra.mxu0 %v853_v56  ;;  %939 = vmatpush.msra.mxu1 %v854_v57 }
  0x95   : > { %962 = vmatpush.msra.mxu2 %v855_v58 }
  0x96   : > { %917 = vmatpush.msra.mxu0 %v850_v59  ;;  %940 = vmatpush.msra.mxu1 %v851_v60 }
  0x97   : > { %963 = vmatpush.msra.mxu2 %v852_v61 }
  0x98   : > { %918 = vmatpush.msra.mxu0 %v847_v62  ;;  %941 = vmatpush.msra.mxu1 %v848_v63 }
  0xec   : > { %v795_v15 = vpop.xlane.xlu0 %794 }
  0xed   : > { %v805_v16 = vmul.f32 %v3812_v14, %v795_v15 }
  0xef   : > { %v3815_v17 = vsub.f32 %v790_v0, %v805_v16  ;;  %v849_v0 = vld [vmem:[#allocation5 + $0x10] sm:$0xff]  ;;  %v2890_v16 = vld [vmem:[%s4142_s3] ss:$0 sm:$0xff] }
  0xf0   : > { %964 = vmatpush.msra.mxu2 %v849_v0 }
  0xf1   : > { %v809_v18 = vmul.f32 %v3815_v17, %v3815_v17 }
  0xf3   : > { %811 = vadd.xlane.f32.xlu1 %v809_v18 }
  0xf4   : > { %v797_v19 = vpop.xlane.xlu0 %796 }
  0xf5   : > { %v806_v20 = vmul.f32 %v3812_v14, %v797_v19 }
  0xf7   : > { %v3820_v21 = vsub.f32 %v791_v1, %v806_v20 }
  0xf9   : > { %v810_v22 = vmul.f32 %v3820_v21, %v3820_v21 }
  0xfb   : > { %813 = vadd.xlane.f32.xlu1 %v810_v22  ;;  %v2891_v22 = vld [vmem:[%s4142_s3 + $0x1] ss:$0 sm:$0xff] }
 0x166   : > { %v812_v1 = vpop.xlane.xlu1 %811 }
 0x167   : > { %v815_v2 = vmul.f32 %v812_v1, %v3812_v14 }
 0x169   : > { %v817_v3 = vadd.f32 1e-05, %v815_v2 }
 0x16b   : > { %2900 = vrsqrt.f32 %v817_v3  ;;  %vm825_vm2 = vweird.f32 %v817_v3 }
 0x16e   : > { %v814_v4 = vpop.xlane.xlu1 %813 }
 0x16f   : > { %v816_v5 = vmul.f32 %v814_v4, %v3812_v14 }
 0x171   : > { %v2901_v6 = vpop.eup %2900  ;;  %v818_v7 = vadd.f32 1e-05, %v816_v5 }
 0x172   : > { %v820_v8 = vmul.f32 %v2901_v6, %v817_v3  ;;  %vm826_vm1 = vweird.f32 %v2901_v6 }
 0x173   : > { %2902 = vrsqrt.f32 %v818_v7  ;;  %vm827_vm3 = vmor %vm825_vm2, %vm826_vm1  ;;  %vm835_vm5 = vweird.f32 %v818_v7 }
 0x174   : > { %v821_v9 = vmul.f32 %v2901_v6, %v820_v8 }
 0x176   : > { %v822_v10 = vmul.f32 0.5, %v821_v9 }
 0x178   : > { %v823_v11 = vsub.f32 1.5, %v822_v10 }
 0x179   : > { %v2903_v12 = vpop.eup %2902 }
 0x17a   : > { %v824_v13 = vmul.f32 %v2901_v6, %v823_v11  ;;  %v830_v15 = vmul.f32 %v2903_v12, %v818_v7  ;;  %vm836_vm4 = vweird.f32 %v2903_v12 }
 0x17b   : > { %vm837_vm6 = vmor %vm835_vm5, %vm836_vm4 }
 0x17c   : > { %v828_v18 = vsel %vm827_vm3, %v2901_v6, %v824_v13  ;;  %v831_v19 = vmul.f32 %v2903_v12, %v830_v15 }
 0x17d   : > { %v839_v20 = vmul.f32 %v828_v18, %v3815_v17 }
 0x17e   : > { %v832_v23 = vmul.f32 0.5, %v831_v19 }
 0x17f   : > { %v842_v24 = vmul.f32 %v2890_v16, %v839_v20 }
 0x180   : > { %v833_v25 = vsub.f32 1.5, %v832_v23 }
 0x181   : > { %v845_v26 = vadd.f32 %v2891_v22, %v842_v24 }
 0x182   : > { %v834_v27 = vmul.f32 %v2903_v12, %v833_v25 }
 0x183   : > { %919 = vmatmul.f32.vlgmr.msra.gmra.mxu0 %v845_v26  ;;  %942 = vmatmul.f32.vlgmr.msra.gmra.mxu1 %v845_v26 }
 0x184   : > { %v838_v28 = vsel %vm837_vm6, %v2903_v12, %v834_v27  ;;  %965 = vmatmul.f32.vlgmr.msra.gmra.mxu2 %v845_v26 }
 0x185   : > { %v840_v29 = vmul.f32 %v838_v28, %v3820_v21 }
 0x187   : > { %v843_v30 = vmul.f32 %v2890_v16, %v840_v29 }
 0x189   : > { %v846_v17 = vadd.f32 %v2891_v22, %v843_v30 }
 0x18b   : > { %922 = vmatmul.f32.gmra.mxu0 %v846_v17  ;;  %945 = vmatmul.f32.gmra.mxu1 %v846_v17 }
 0x18c   : > { %968 = vmatmul.f32.gmra.mxu2 %v846_v17 }
 0x200   : > { %v920_v34 = vpop.f32.mrf.mxu0  ;;  %v943_v35 = vpop.f32.mrf.mxu1 }
 0x201   : > { %v921_v36 = vadd.f32 %v920_v34, %v897_v32  ;;  %v944_v37 = vadd.f32 %v943_v35, %v898_v33 }
 0x203   : > { %1090 = vrot.lane.b32.xlu0 %v944_v37, %s3483_s17  ;;  %1086 = vrot.lane.b32.xlu1 %v921_v36, %s3483_s17 }
 0x207   : > { %v966_v38 = vpop.f32.mrf.mxu2 }
 0x208   : > { %v946_v39 = vpop.f32.mrf.mxu1  ;;  %v967_v42 = vadd.f32 %v966_v38, %v899_v40  ;;  %v923_v45 = vpop.f32.mrf.mxu0 }
 0x209   : > { %v947_v21 = vadd.f32 %v946_v39, %v898_v33  ;;  %v924_v46 = vadd.f32 %v923_v45, %v897_v32 }
 0x20b   : > { %2657 = vmatpush.xpose.msk.msra.mxu3 %vm972_vm7, %v947_v21 }
 0x20f   : > { %v969_v41 = vpop.f32.mrf.mxu2  ;;  %2658 = vmatpush.xpose.msk.msra.mxu3 %vm972_vm7, %v944_v37 }
 0x210   : > { %v970_v43 = vadd.f32 %v969_v41, %v899_v40 }
 0x212   : > { %v3838_v44 = vpack.i.bf16 %v967_v42, %v970_v43  ;;  %2659 = vmatmul.msk.f32.vlgmr.msra.gmra.mxu3 %vm972_vm7, %v921_v36 }
 0x213   : > { %1077 = vmatpush.msrb.mxu3 %v970_v43 }
 0x215   : > { %1078 = vmatpush.msrb.mxu3 %v967_v42 }
 0x21a   : > { %2660 = vmatmul.msk.f32.gmra.mxu3 %vm972_vm7, %v924_v46 }
 0x275   : > { %v1091_v61 = vpop.permute.xlu0 %1090  ;;  %v1087_v0 = vpop.permute.xlu1 %1086 }
 0x295   : > { %v1002_v47 = vpop.f32.mrf.mxu3 }
 0x296   : > { %v1009_v48 = vsel %vm1008_vm8, %v1002_v47, -inf }
 0x297   : > { %1010 = vmax.xlane.f32.xlu2 %v1009_v48 }
 0x29d   : > { %v1005_v49 = vpop.f32.mrf.mxu3 }
 0x29e   : > { %v1012_v50 = vsel %vm1008_vm8, %v1005_v49, -inf }
 0x29f   : > { %1013 = vmax.xlane.f32.xlu2 %v1012_v50 }
 0x2b7   : > { %1092 = vrot.lane.b32.xlu2 %v947_v21, %s3483_s17 }
 0x2bf   : > { %1216 = vrot.lane.b32.xlu2 %v947_v21, %s3484_s20 }
 0x2c7   : > { %1088 = vrot.lane.b32.xlu2 %v924_v46, %s3483_s17 }
 0x2cf   : > { %1336 = vrot.lane.b32.xlu2 %v944_v37, %s3485_s9 }
 0x2d7   : > { %1334 = vrot.lane.b32.xlu2 %v924_v46, %s3485_s9 }
 0x30a   : > { %v1011_v51 = vpop.xlane.xlu2 %1010 }
 0x30b   : > { %v1015_v52 = vsub.f32 %v1002_v47, %v1011_v51 }
 0x30d   : > { %v1017_v53 = vmul.f32 1.442695, %v1015_v52 }
 0x30f   : > { %2904 = vpow2.f32 %v1017_v53 }
 0x312   : > { %v1014_v54 = vpop.xlane.xlu2 %1013 }
 0x313   : > { %v1016_v55 = vsub.f32 %v1005_v49, %v1014_v54 }
 0x315   : > { %v2905_v56 = vpop.eup %2904  ;;  %v1019_v57 = vmul.f32 1.442695, %v1016_v55 }
 0x316   : > { %v1021_v58 = vsel %vm1008_vm8, %v2905_v56, 0.0 }
 0x317   : > { %2906 = vpow2.f32 %v1019_v57  ;;  %1022 = vadd.xlane.f32.xlu0 %v1021_v58 }
 0x31a   : > { %v1093_v59 = vpop.permute.xlu2 %1092 }
 0x31b   : > { %2663 = vmatpush.xpose.msk.msra.mxu3 %vm972_vm7, %v1093_v59 }
 0x31d   : > { %v2907_v60 = vpop.eup %2906 }
 0x31e   : > { %v1024_v62 = vsel %vm1008_vm8, %v2907_v60, 0.0 }
 0x31f   : > { %1025 = vadd.xlane.f32.xlu1 %v1024_v62  ;;  %2664 = vmatpush.xpose.msk.msra.mxu3 %vm972_vm7, %v1091_v61 }
 0x322   : > { %v1217_v63 = vpop.permute.xlu2 %1216 }
 0x323   : > { %2669 = vmatpush.xpose.msk.msrb.mxu2 %vm972_vm7, %v1217_v63 }
 0x32a   : > { %v1089_v24 = vpop.permute.xlu2 %1088 }
 0x32b   : > { %1214 = vrot.lane.b32.xlu0 %v944_v37, %s3484_s20 }
 0x332   : > { %v1337_v17 = vpop.permute.xlu2 %1336 }
 0x333   : > { %1338 = vrot.lane.b32.xlu0 %v947_v21, %s3485_s9 }
 0x338   : > { %1210 = vrot.lane.b32.xlu1 %v921_v36, %s3484_s20 }
 0x33a   : > { %v1335_v34 = vpop.permute.xlu2 %1334 }
 0x33b   : > { %1212 = vrot.lane.b32.xlu0 %v924_v46, %s3484_s20 }
 0x340   : > { %1332 = vrot.lane.b32.xlu1 %v921_v36, %s3485_s9 }
 0x38a   : > { %v1023_v1 = vpop.xlane.xlu0 %1022 }
 0x38b   : > { %2908 = vrcp.f32 %v1023_v1  ;;  %v1038_v6 = vand.u32 2147483648, %v1023_v1  ;;  %v1036_v8 = vand.u32 2147483647, %v1023_v1  ;;  %vm1032_vm10 = vweird.f32 %v1023_v1 }
 0x38d   : > { %v1039_v11 = vor.u32 1.1754944e-38, %v1038_v6  ;;  %vm1037_vm12 = vcmp.eq.f32.partialorder %v1036_v8, 8.507059e+37 }
 0x391   : > { %v2909_v2 = vpop.eup %2908 }
 0x392   : > { %v1028_v3 = vmul.f32 %v2909_v2, %v1023_v1  ;;  %v1026_v4 = vpop.xlane.xlu1 %1025  ;;  %vm1033_vm9 = vweird.f32 %v2909_v2 }
 0x393   : > { %2910 = vrcp.f32 %v1026_v4  ;;  %vm1034_vm11 = vmor %vm1032_vm10, %vm1033_vm9  ;;  %v1052_v19 = vand.u32 2147483648, %v1026_v4  ;;  %v1050_v23 = vand.u32 2147483647, %v1026_v4  ;;  %vm1046_vm14 = vweird.f32 %v1026_v4 }
 0x394   : > { %v1029_v5 = vsub.f32 1.0, %v1028_v3 }
 0x395   : > { %v1053_v26 = vor.u32 1.1754944e-38, %v1052_v19  ;;  %vm1051_vm0 = vcmp.eq.f32.partialorder %v1050_v23, 8.507059e+37 }
 0x396   : > { %v1030_v7 = vmul.f32 %v2909_v2, %v1029_v5 }
 0x398   : > { %v1031_v9 = vadd.f32 %v2909_v2, %v1030_v7 }
 0x399   : > { %v2911_v10 = vpop.eup %2910 }
 0x39a   : > { %v1042_v12 = vmul.f32 %v2911_v10, %v1026_v4  ;;  %v1035_v13 = vsel %vm1034_vm11, %v2909_v2, %v1031_v9  ;;  %vm1047_vm13 = vweird.f32 %v2911_v10 }
 0x39b   : > { %v1040_v15 = vsel %vm1037_vm12, %v1039_v11, %v1035_v13  ;;  %vm1048_vm15 = vmor %vm1046_vm14, %vm1047_vm13 }
 0x39c   : > { %v1043_v16 = vsub.f32 1.0, %v1042_v12  ;;  %v1055_v18 = vmul.f32 %v2905_v56, %v1040_v15 }
 0x39d   : > { %v1215_v20 = vpop.permute.xlu0 %1214 }
 0x39e   : > { %v1044_v22 = vmul.f32 %v2911_v10, %v1043_v16  ;;  %2661 = vmatmul.msk.f32.vlgmr.msrb.gmra.mxu3 %vm1008_vm8, %v1055_v18  ;;  %2670 = vmatpush.xpose.msk.msrb.mxu2 %vm972_vm7, %v1215_v20 }
 0x3a0   : > { %v1045_v25 = vadd.f32 %v2911_v10, %v1044_v22 }
 0x3a2   : > { %v1049_v27 = vsel %vm1048_vm15, %v2911_v10, %v1045_v25 }
 0x3a3   : > { %v1054_v28 = vsel %vm1051_vm0, %v1053_v26, %v1049_v27 }
 0x3a4   : > { %v1056_v29 = vmul.f32 %v2907_v60, %v1054_v28 }
 0x3a5   : > { %v1339_v30 = vpop.permute.xlu0 %1338 }
 0x3a6   : > { %2662 = vmatmul.msk.f32.gmra.mxu3 %vm1008_vm8, %v1056_v29 }
 0x3a7   : > { %2675 = vmatpush.xpose.msk.msrb.mxu3 %vm972_vm7, %v1339_v30 }
 0x3aa   : > { %v1211_v31 = vpop.permute.xlu1 %1210 }
 0x3ab   : > { %2676 = vmatpush.xpose.msk.msrb.mxu3 %vm972_vm7, %v1337_v17  ;;  %2671 = vmatmul.msk.f32.vlgmr.msrb.gmra.mxu2 %vm972_vm7, %v1211_v31 }
 0x3ad   : > { %v1213_v32 = vpop.permute.xlu0 %1212 }
 0x3ae   : > { %2665 = vmatmul.msk.f32.vlgmr.msra.gmra.mxu3 %vm972_vm7, %v1087_v0 }
 0x3b2   : > { %v1333_v33 = vpop.permute.xlu1 %1332 }
 0x3b3   : > { %2672 = vmatmul.msk.f32.gmra.mxu2 %vm972_vm7, %v1213_v32 }
 0x3b6   : > { %2666 = vmatmul.msk.f32.gmra.mxu3 %vm972_vm7, %v1089_v24 }
 0x3be   : > { %2677 = vmatmul.msk.f32.vlgmr.msrb.gmra.mxu3 %vm972_vm7, %v1333_v33 }
 0x3c6   : > { %2678 = vmatmul.msk.f32.gmra.mxu3 %vm972_vm7, %v1335_v34 }
 0x421   : > { %v3870_v35 = vpop.f32.mrf.mxu3 }
 0x429   : > { %v3872_v36 = vpop.f32.mrf.mxu3 }
 0x42e   : > { %v1243_v37 = vpop.f32.mrf.mxu2 }
 0x42f   : > { %v1249_v38 = vsel %vm1008_vm8, %v1243_v37, -inf }
 0x430   : > { %1250 = vmax.xlane.f32.xlu2 %v1249_v38 }
 0x431   : > { %v1119_v39 = vpop.f32.mrf.mxu3 }
 0x432   : > { %v1125_v21 = vsel %vm1008_vm8, %v1119_v39, -inf }
 0x433   : > { %1126 = vmax.xlane.f32.xlu1 %v1125_v21 }
 0x436   : > { %v1246_v42 = vpop.f32.mrf.mxu2 }
 0x437   : > { %v1252_v46 = vsel %vm1008_vm8, %v1246_v42, -inf }
 0x439   : > { %v1122_v40 = vpop.f32.mrf.mxu3 }
 0x43a   : > { %v1128_v41 = vsel %vm1008_vm8, %v1122_v40, -inf }
 0x43b   : > { %1129 = vmax.xlane.f32.xlu0 %v1128_v41 }
 0x441   : > { %v1365_v43 = vpop.f32.mrf.mxu3 }
 0x442   : > { %v1371_v45 = vsel %vm1008_vm8, %v1365_v43, -inf }
 0x443   : > { %1372 = vmax.xlane.f32.xlu1 %v1371_v45  ;;  %1253 = vmax.xlane.f32.xlu0 %v1252_v46 }
 0x449   : > { %v1368_v47 = vpop.f32.mrf.mxu3 }
 0x44a   : > { %v1374_v48 = vsel %vm1008_vm8, %v1368_v47, -inf }
 0x44b   : > { %1375 = vmax.xlane.f32.xlu2 %v1374_v48 }
 0x4a3   : > { %v1251_v49 = vpop.xlane.xlu2 %1250 }
 0x4a4   : > { %v1255_v50 = vsub.f32 %v1243_v37, %v1251_v49 }
 0x4a6   : > { %v1257_v51 = vmul.f32 1.442695, %v1255_v50  ;;  %v1127_v52 = vpop.xlane.xlu1 %1126 }
 0x4a7   : > { %v1131_v53 = vsub.f32 %v1119_v39, %v1127_v52 }
 0x4a8   : > { %2912 = vpow2.f32 %v1257_v51 }
 0x4a9   : > { %v1133_v54 = vmul.f32 1.442695, %v1131_v53 }
 0x4ab   : > { %2914 = vpow2.f32 %v1133_v54 }
 0x4ae   : > { %v3880_v55 = vpop.eup %2912  ;;  %v1130_v56 = vpop.xlane.xlu0 %1129 }
 0x4af   : > { %v1132_v57 = vsub.f32 %v1122_v40, %v1130_v56  ;;  %v1261_v58 = vsel %vm1008_vm8, %v3880_v55, 0.0 }
 0x4b0   : > { %1262 = vadd.xlane.f32.xlu2 %v1261_v58 }
 0x4b1   : > { %v3884_v59 = vpop.eup %2914  ;;  %v1135_v60 = vmul.f32 1.442695, %v1132_v57 }
 0x4b2   : > { %v1137_v61 = vsel %vm1008_vm8, %v3884_v59, 0.0 }
 0x4b3   : > { %2916 = vpow2.f32 %v1135_v60  ;;  %1138 = vadd.xlane.f32.xlu1 %v1137_v61 }
 0x4b6   : > { %v1373_v62 = vpop.xlane.xlu1 %1372  ;;  %v1254_v63 = vpop.xlane.xlu0 %1253 }
 0x4b7   : > { %v1377_v0 = vsub.f32 %v1365_v43, %v1373_v62  ;;  %v1256_v1 = vsub.f32 %v1246_v42, %v1254_v63 }
 0x4b9   : > { %v3888_v2 = vpop.eup %2916  ;;  %v1379_v3 = vmul.f32 1.442695, %v1377_v0  ;;  %v1259_v4 = vmul.f32 1.442695, %v1256_v1 }
 0x4ba   : > { %v1140_v5 = vsel %vm1008_vm8, %v3888_v2, 0.0 }
 0x4bb   : > { %2918 = vpow2.f32 %v1379_v3  ;;  %1141 = vadd.xlane.f32.xlu0 %v1140_v5 }
 0x4bc   : > { %2920 = vpow2.f32 %v1259_v4 }
 0x4be   : > { %v1376_v6 = vpop.xlane.xlu2 %1375 }
 0x4bf   : > { %v1378_v7 = vsub.f32 %v1368_v47, %v1376_v6 }
 0x4c1   : > { %v3892_v8 = vpop.eup %2918  ;;  %v1381_v9 = vmul.f32 1.442695, %v1378_v7 }
 0x4c2   : > { %v3894_v10 = vpop.eup %2920  ;;  %v1383_v11 = vsel %vm1008_vm8, %v3892_v8, 0.0 }
 0x4c3   : > { %2922 = vpow2.f32 %v1381_v9  ;;  %1384 = vadd.xlane.f32.xlu1 %v1383_v11  ;;  %v1264_v12 = vsel %vm1008_vm8, %v3894_v10, 0.0 }
 0x4c4   : > { %1265 = vadd.xlane.f32.xlu2 %v1264_v12 }
 0x4c9   : > { %v3900_v13 = vpop.eup %2922 }
 0x4ca   : > { %v1386_v15 = vsel %vm1008_vm8, %v3900_v13, 0.0 }
 0x4cb   : > { %1387 = vadd.xlane.f32.xlu1 %v1386_v15 }
 0x4cf   : > { %2876 = vrot.lane.b32.xlu0 %v3838_v44, %s3483_s17 }
 0x4dc   : > { %2881 = vrot.lane.b32.xlu2 %v3838_v44, %s3484_s20 }
 0x4e4   : > { %2886 = vrot.lane.b32.xlu1 %v3838_v44, %s3485_s9 }
 0x523   : > { %v1263_v16 = vpop.xlane.xlu2 %1262 }
 0x524   : > { %2924 = vrcp.f32 %v1263_v16  ;;  %v1278_v32 = vand.u32 2147483648, %v1263_v16  ;;  %vm1272_vm2 = vweird.f32 %v1263_v16  ;;  %v1276_v33 = vand.u32 2147483647, %v1263_v16 }
 0x526   : > { %v1139_v18 = vpop.xlane.xlu1 %1138  ;;  %v1279_v39 = vor.u32 1.1754944e-38, %v1278_v32  ;;  %vm1277_vm5 = vcmp.eq.f32.partialorder %v1276_v33, 8.507059e+37 }
 0x527   : > { %2926 = vrcp.f32 %v1139_v18  ;;  %v1152_v21 = vand.u32 2147483647, %v1139_v18  ;;  %v1154_v40 = vand.u32 2147483648, %v1139_v18  ;;  %vm1148_vm6 = vweird.f32 %v1139_v18 }
 0x529   : > { %vm1153_vm10 = vcmp.eq.f32.partialorder %v1152_v21, 8.507059e+37  ;;  %v1155_v49 = vor.u32 1.1754944e-38, %v1154_v40  ;;  %v1501_v40 = vld [vmem:[#allocation8 + $0x78] sm:$0xff] }
 0x52a   : > { %v2925_v19 = vpop.eup %2924  ;;  %1506 = vmatpush.msrb.mxu1 %v1501_v40  ;;  %v1664_v40 = vld [vmem:[#allocation16 + $0x80] sm:$0xff] }
 0x52b   : > { %v1268_v20 = vmul.f32 %v2925_v19, %v1263_v16  ;;  %vm1273_vm1 = vweird.f32 %v2925_v19 }
 0x52c   : > { %vm1274_vm3 = vmor %vm1272_vm2, %vm1273_vm1 }
 0x52d   : > { %v2927_v22 = vpop.eup %2926  ;;  %v1269_v24 = vsub.f32 1.0, %v1268_v20 }
 0x52e   : > { %v3910_v23 = vpop.xlane.xlu0 %1141  ;;  %v1144_v25 = vmul.f32 %v2927_v22, %v1139_v18  ;;  %vm1149_vm4 = vweird.f32 %v2927_v22 }
 0x52f   : > { %2928 = vrcp.f32 %v3910_v23  ;;  %v1270_v26 = vmul.f32 %v2925_v19, %v1269_v24  ;;  %vm3920_vm9 = vmor %vm1148_vm6, %vm1149_vm4  ;;  %vm1162_vm13 = vweird.f32 %v3910_v23  ;;  %v1168_v1 = vand.u32 2147483648, %v3910_v23 }
 0x530   : > { %v1145_v27 = vsub.f32 1.0, %v1144_v25  ;;  %v1166_v6 = vand.u32 2147483647, %v3910_v23 }
 0x531   : > { %v1271_v44 = vadd.f32 %v2925_v19, %v1270_v26  ;;  %v1169_v12 = vor.u32 1.1754944e-38, %v1168_v1  ;;  %v1570_v1 = vld [vmem:[#allocation14 + $0x138] sm:$0xff] }
 0x532   : > { %v1146_v30 = vmul.f32 %v2927_v22, %v1145_v27  ;;  %vm1167_vm2 = vcmp.eq.f32.partialorder %v1166_v6, 8.507059e+37  ;;  %v1575_v6 = vld [vmem:[#allocation14 + $0x160] sm:$0xff] }
 0x533   : > { %v1275_v34 = vsel %vm1274_vm3, %v2925_v19, %v1271_v44 }
 0x534   : > { %v1147_v37 = vadd.f32 %v2927_v22, %v1146_v30  ;;  %v1280_v42 = vsel %vm1277_vm5, %v1279_v39, %v1275_v34 }
 0x535   : > { %v3913_v28 = vpop.eup %2928  ;;  %v1295_v57 = vmul.f32 %v3880_v55, %v1280_v42  ;;  %v1499_v42 = vld [vmem:[#allocation8 + $0x68] sm:$0xff] }
 0x536   : > { %v3915_v29 = vpop.xlane.xlu1 %1384  ;;  %v1158_v17 = vmul.f32 %v3913_v28, %v3910_v23  ;;  %v1151_v48 = vsel %vm3920_vm9, %v2927_v22, %v1147_v37  ;;  %vm1163_vm11 = vweird.f32 %v3913_v28 }
 0x537   : > { %v1266_v31 = vpop.xlane.xlu2 %1265  ;;  %v1156_v61 = vsel %vm1153_vm10, %v1155_v49, %v1151_v48  ;;  %vm1164_vm15 = vmor %vm1162_vm13, %vm1163_vm11  ;;  %v1400_v26 = vand.u32 2147483648, %v3915_v29  ;;  %vm1394_vm4 = vweird.f32 %v3915_v29  ;;  %v1398_v27 = vand.u32 2147483647, %v3915_v29  ;;  %v1495_v48 = vld [vmem:[#allocation8 + $0x48] sm:$0xff] }
 0x538   : > { %2930 = vrcp.f32 %v1266_v31  ;;  %v1159_v38 = vsub.f32 1.0, %v1158_v17  ;;  %v1292_v54 = vand.u32 2147483648, %v1266_v31  ;;  %v1290_v62 = vand.u32 2147483647, %v1266_v31 }
 0x539   : > { %2932 = vrcp.f32 %v3915_v29  ;;  %vm1286_vm14 = vweird.f32 %v1266_v31  ;;  %v1171_v4 = vmul.f32 %v3884_v59, %v1156_v61  ;;  %v1401_v44 = vor.u32 1.1754944e-38, %v1400_v26  ;;  %v1487_v61 = vld [vmem:[#allocation8 + $0x8] sm:$0xff] }
 0x53a   : > { %v1160_v45 = vmul.f32 %v3913_v28, %v1159_v38  ;;  %v1293_v7 = vor.u32 1.1754944e-38, %v1292_v54  ;;  %vm1291_vm1 = vcmp.eq.f32.partialorder %v1290_v62, 8.507059e+37  ;;  %vm1399_vm6 = vcmp.eq.f32.partialorder %v1398_v27, 8.507059e+37  ;;  %v1492_v54 = vld [vmem:[#allocation8 + $0x30] sm:$0xff]  ;;  %v1486_v62 = vld [vmem:[#allocation8] sm:$0xff] }
 0x53b   : > { %v1672_v26 = vld [vmem:[#allocation16 + $0xc0] sm:$0xff]  ;;  %vm1483_vm13 = vcmask 785408  }
 0x53c   : > { %v1161_v0 = vadd.f32 %v3913_v28, %v1160_v45 }
 0x53e   : > { %v2931_v41 = vpop.eup %2930  ;;  %v3927_v50 = vpop.xlane.xlu1 %1387  ;;  %v1165_v11 = vsel %vm1164_vm15, %v3913_v28, %v1161_v0  ;;  %v1573_v0 = vld [vmem:[#allocation14 + $0x150] sm:$0xff] }
 0x53f   : > { %v1282_v46 = vmul.f32 %v2931_v41, %v1266_v31  ;;  %v2882_v47 = vpop.permute.xlu2 %2881  ;;  %v2933_v52 = vpop.eup %2932  ;;  %2934 = vrcp.f32 %v3927_v50  ;;  %vm1287_vm12 = vweird.f32 %v2931_v41  ;;  %v1170_v18 = vsel %vm1167_vm2, %v1169_v12, %v1165_v11  ;;  %v1564_v11 = vld [vmem:[#allocation14 + $0x108] sm:$0xff] }
 0x540   : > { %v2883_v51 = vunpack.i.l.bf16 %v2882_v47  ;;  %v2884_v58 = vunpack.i.h.bf16 %v2882_v47  ;;  %v1390_v3 = vmul.f32 %v2933_v52, %v3915_v29  ;;  %vm1288_vm0 = vmor %vm1286_vm14, %vm1287_vm12  ;;  %v1172_v23 = vmul.f32 %v3888_v2, %v1170_v18  ;;  %v1496_v47 = vld [vmem:[#allocation8 + $0x50] sm:$0xff] }
 0x541   : > { %v1283_v53 = vsub.f32 1.0, %v1282_v46  ;;  %v2877_v56 = vpop.permute.xlu0 %2876  ;;  %vm1395_vm3 = vweird.f32 %v2933_v52  ;;  %v1414_v32 = vand.u32 2147483648, %v3927_v50  ;;  %vm1408_vm10 = vweird.f32 %v3927_v50  ;;  %v1497_v46 = vld [vmem:[#allocation8 + $0x58] sm:$0xff]  ;;  %v1568_v12 = vld [vmem:[#allocation14 + $0x128] sm:$0xff] }
 0x542   : > { %1323 = vmatpush.msra.mxu2 %v2883_v51  ;;  %v2878_v60 = vunpack.i.l.bf16 %v2877_v56  ;;  %v2879_v55 = vunpack.i.h.bf16 %v2877_v56  ;;  %v1391_v15 = vsub.f32 1.0, %v1390_v3  ;;  %vm1396_vm5 = vmor %vm1394_vm4, %vm1395_vm3  ;;  %v1412_v29 = vand.u32 2147483647, %v3927_v50  ;;  %v1491_v56 = vld [vmem:[#allocation8 + $0x28] sm:$0xff]  ;;  %v1577_v3 = vld [vmem:[#allocation14 + $0x170] sm:$0xff] }
 0x543   : > { %v1284_v63 = vmul.f32 %v2931_v41, %v1283_v53  ;;  %v1415_v38 = vor.u32 1.1754944e-38, %v1414_v32  ;;  %v1493_v53 = vld [vmem:[#allocation8 + $0x38] sm:$0xff]  ;;  %1602 = vmatpush.msra.mxu3 %v1577_v3  ;;  %v1668_v32 = vld [vmem:[#allocation16 + $0xa0] sm:$0xff]  ;;  %v1677_v3 = vld [vmem:[#allocation16 + $0xe8] sm:$0xff] }
 0x544   : > { %1324 = vmatpush.msra.mxu2 %v2884_v58  ;;  %1201 = vmatpush.msrb.mxu0 %v2878_v60  ;;  %v1392_v20 = vmul.f32 %v2933_v52, %v1391_v15  ;;  %vm1413_vm12 = vcmp.eq.f32.partialorder %v1412_v29, 8.507059e+37  ;;  %v1489_v58 = vld [vmem:[#allocation8 + $0x18] sm:$0xff]  ;;  %v1488_v60 = vld [vmem:[#allocation8 + $0x10] sm:$0xff] }
 0x545   : > { %2673 = vmatmul.msk.f32.vlgmr.msra.gmra.mxu2 %vm1008_vm8, %v1295_v57  ;;  %v1285_v5 = vadd.f32 %v2931_v41, %v1284_v63  ;;  %v2935_v59 = vpop.eup %2934  ;;  %v1490_v57 = vld [vmem:[#allocation8 + $0x20] sm:$0xff]  ;;  %v1576_v63 = vld [vmem:[#allocation14 + $0x168] sm:$0xff]  ;;  %v1678_v15 = vld [vmem:[#allocation16 + $0xf0] sm:$0xff] }
 0x546   : > { %1202 = vmatpush.msrb.mxu0 %v2879_v55  ;;  %v1404_v22 = vmul.f32 %v2935_v59, %v3927_v50  ;;  %v1393_v24 = vadd.f32 %v2933_v52, %v1392_v20  ;;  %vm1409_vm9 = vweird.f32 %v2935_v59  ;;  %1579 = vmatpush.msrb.mxu2 %v1576_v63  ;;  %v1578_v55 = vld [vmem:[#allocation14 + $0x178] sm:$0xff]  ;;  %v1561_v18 = vld [vmem:[#allocation14 + $0xf0] sm:$0xff] }
 0x547   : > { %2667 = vmatmul.msk.f32.vlgmr.msrb.gmra.mxu0 %vm1008_vm8, %v1171_v4  ;;  %v1289_v9 = vsel %vm1288_vm0, %v2931_v41, %v1285_v5  ;;  %vm1410_vm11 = vmor %vm1408_vm10, %vm1409_vm9  ;;  %v1500_v41 = vld [vmem:[#allocation8 + $0x70] sm:$0xff]  ;;  %v1574_v4 = vld [vmem:[#allocation14 + $0x158] sm:$0xff] }
 0x548   : > { %v1294_v16 = vsel %vm1291_vm1, %v1293_v7, %v1289_v9  ;;  %v1405_v25 = vsub.f32 1.0, %v1404_v22  ;;  %1507 = vmatpush.msrb.mxu1 %v1500_v41  ;;  %1580 = vmatpush.msrb.mxu2 %v1573_v0  ;;  %v1567_v5 = vld [vmem:[#allocation14 + $0x120] sm:$0xff]  ;;  %v1572_v9 = vld [vmem:[#allocation14 + $0x148] sm:$0xff]  ;;  %v1566_v20 = vld [vmem:[#allocation14 + $0x118] sm:$0xff] }
 0x549   : > { %v1296_v19 = vmul.f32 %v3894_v10, %v1294_v16  ;;  %v1397_v10 = vsel %vm1396_vm5, %v2933_v52, %v1393_v24  ;;  %v1494_v52 = vld [vmem:[#allocation8 + $0x40] sm:$0xff]  ;;  %1603 = vmatpush.msra.mxu3 %v1574_v4  ;;  %v1569_v16 = vld [vmem:[#allocation14 + $0x130] sm:$0xff]  ;;  %v1673_v4 = vld [vmem:[#allocation16 + $0xc8] sm:$0xff] }
 0x54a   : > { %v1406_v28 = vmul.f32 %v2935_v59, %v1405_v25  ;;  %v1402_v17 = vsel %vm1399_vm6, %v1401_v44, %v1397_v10  ;;  %1508 = vmatpush.msrb.mxu1 %v1499_v42  ;;  %v1571_v7 = vld [vmem:[#allocation14 + $0x140] sm:$0xff]  ;;  %1581 = vmatpush.msrb.mxu2 %v1570_v1  ;;  %v1674_v22 = vld [vmem:[#allocation16 + $0xd0] sm:$0xff]  ;;  %v1562_v24 = vld [vmem:[#allocation14 + $0xf8] sm:$0xff] }
 0x54b   : > { %v1417_v34 = vmul.f32 %v3892_v8, %v1402_v17  ;;  %v1498_v8 = vld [vmem:[#allocation8 + $0x60] sm:$0xff]  ;;  %1604 = vmatpush.msra.mxu3 %v1571_v7  ;;  %v1560_v44 = vld [vmem:[#allocation14 + $0xe8] sm:$0xff]  ;;  %v1658_v7 = vld [vmem:[#allocation16 + $0x50] sm:$0xff] }
 0x54c   : > { %v1407_v2 = vadd.f32 %v2935_v59, %v1406_v28  ;;  %1509 = vmatpush.msrb.mxu1 %v1498_v8  ;;  %1582 = vmatpush.msrb.mxu2 %v1567_v5  ;;  %v1563_v25 = vld [vmem:[#allocation14 + $0x100] sm:$0xff]  ;;  %v1552_v17 = vld [vmem:[#allocation14 + $0xa8] sm:$0xff]  ;;  %v1554_v29 = vld [vmem:[#allocation14 + $0xb8] sm:$0xff] }
 0x54d   : > { %2674 = vmatmul.msk.f32.gmra.mxu2 %vm1008_vm8, %v1296_v19  ;;  %v1565_v19 = vld [vmem:[#allocation14 + $0x110] sm:$0xff]  ;;  %1605 = vmatpush.msra.mxu3 %v1568_v12  ;;  %v1555_v10 = vld [vmem:[#allocation14 + $0xc0] sm:$0xff]  ;;  %v1671_v5 = vld [vmem:[#allocation16 + $0xb8] sm:$0xff] }
 0x54e   : > { %v1411_v37 = vsel %vm1410_vm11, %v2935_v59, %v1407_v2  ;;  %1510 = vmatpush.msrb.mxu1 %v1497_v46  ;;  %v1676_v59 = vld [vmem:[#allocation16 + $0xe0] sm:$0xff]  ;;  %1583 = vmatpush.msrb.mxu2 %v1564_v11  ;;  %v1557_v2 = vld [vmem:[#allocation14 + $0xd0] sm:$0xff]  ;;  %v1548_v46 = vld [vmem:[#allocation14 + $0x88] sm:$0xff] }
 0x54f   : > { %2668 = vmatmul.msk.f32.gmra.mxu0 %vm1008_vm8, %v1172_v23  ;;  %v1416_v39 = vsel %vm1413_vm12, %v1415_v38, %v1411_v37  ;;  %v1558_v23 = vld [vmem:[#allocation14 + $0xd8] sm:$0xff]  ;;  %1606 = vmatpush.msra.mxu3 %v1565_v19  ;;  %v1559_v28 = vld [vmem:[#allocation14 + $0xe0] sm:$0xff]  ;;  %v1666_v37 = vld [vmem:[#allocation16 + $0x90] sm:$0xff] }
 0x550   : > { %v1418_v21 = vmul.f32 %v3900_v13, %v1416_v39  ;;  %1511 = vmatpush.msrb.mxu1 %v1496_v47  ;;  %1584 = vmatpush.msrb.mxu2 %v1561_v18  ;;  %v1546_v38 = vld [vmem:[#allocation14 + $0x78] sm:$0xff]  ;;  %v1543_v8 = vld [vmem:[#allocation14 + $0x60] sm:$0xff]  ;;  %v1536_v12 = vld [vmem:[#allocation14 + $0x28] sm:$0xff] }
 0x551   : > { %1607 = vmatpush.msra.mxu3 %v1562_v24  ;;  %v1550_v39 = vld [vmem:[#allocation14 + $0x98] sm:$0xff]  ;;  %v1535_v11 = vld [vmem:[#allocation14 + $0x20] sm:$0xff]  ;;  %v1533_v18 = vld [vmem:[#allocation14 + $0x10] sm:$0xff] }
 0x552   : > { %1512 = vmatpush.msrb.mxu1 %v1495_v48  ;;  %1585 = vmatpush.msrb.mxu2 %v1558_v23  ;;  %v1540_v48 = vld [vmem:[#allocation14 + $0x48] sm:$0xff]  ;;  %v1654_v19 = vld [vmem:[#allocation16 + $0x30] sm:$0xff]  ;;  %v1663_v23 = vld [vmem:[#allocation16 + $0x78] sm:$0xff] }
 0x553   : > { %1608 = vmatpush.msra.mxu3 %v1559_v28  ;;  %v1650_v24 = vld [vmem:[#allocation16 + $0x10] sm:$0xff] }
 0x554   : > { %1513 = vmatpush.msrb.mxu1 %v1494_v52  ;;  %1586 = vmatpush.msrb.mxu2 %v1555_v10  ;;  %v1537_v52 = vld [vmem:[#allocation14 + $0x30] sm:$0xff]  ;;  %v1657_v10 = vld [vmem:[#allocation16 + $0x48] sm:$0xff] }
 0x555   : > { %v3974_v28 = vld [vmem:[%s3780_s24] sm:$0xff] }
 0x556   : > { %v2887_v30 = vpop.permute.xlu1 %2886  ;;  %1514 = vmatpush.msrb.mxu1 %v1493_v53  ;;  %1587 = vmatpush.msrb.mxu2 %v1552_v17  ;;  %v1541_v53 = vld [vmem:[#allocation14 + $0x50] sm:$0xff]  ;;  %v1651_v17 = vld [vmem:[#allocation16 + $0x18] sm:$0xff] }
 0x557   : > { %v2888_v31 = vunpack.i.l.bf16 %v2887_v30  ;;  %v2889_v33 = vunpack.i.h.bf16 %v2887_v30  ;;  %v1670_v30 = vld [vmem:[#allocation16 + $0xb0] sm:$0xff] }
 0x558   : > { %1515 = vmatpush.msrb.mxu1 %v1492_v54  ;;  %v1660_v54 = vld [vmem:[#allocation16 + $0x60] sm:$0xff] }
 0x559   : > { %1445 = vmatpush.msra.mxu0 %v2888_v31  ;;  %v1556_v31 = vld [vmem:[#allocation14 + $0xc8] sm:$0xff] }
 0x55a   : > { %1516 = vmatpush.msrb.mxu1 %v1491_v56  ;;  %1609 = vmatpush.msra.mxu3 %v1556_v31  ;;  %v1534_v56 = vld [vmem:[#allocation14 + $0x18] sm:$0xff]  ;;  %v1649_v31 = vld [vmem:[#allocation16 + $0x8] sm:$0xff] }
 0x55b   : > { %1446 = vmatpush.msra.mxu0 %v2889_v33  ;;  %v1549_v33 = vld [vmem:[#allocation14 + $0x90] sm:$0xff] }
 0x55c   : > { %2679 = vmatmul.msk.f32.vlgmr.msra.gmra.mxu0 %vm1008_vm8, %v1417_v34  ;;  %1517 = vmatpush.msrb.mxu1 %v1490_v57  ;;  %v1553_v34 = vld [vmem:[#allocation14 + $0xb0] sm:$0xff] }
 0x55d   : > { %1625 = vmatpush.msrb.mxu0 %v1578_v55  ;;  %1588 = vmatpush.msrb.mxu2 %v1549_v33  ;;  %v1675_v55 = vld [vmem:[#allocation16 + $0xd8] sm:$0xff] }
 0x55e   : > { %1518 = vmatpush.msrb.mxu1 %v1489_v58  ;;  %1610 = vmatpush.msra.mxu3 %v1553_v34  ;;  %v1531_v58 = vld [vmem:[#allocation14] sm:$0xff] }
 0x55f   : > { %1626 = vmatpush.msrb.mxu0 %v1575_v6  ;;  %1589 = vmatpush.msrb.mxu2 %v1546_v38  ;;  %v1538_v6 = vld [vmem:[#allocation14 + $0x38] sm:$0xff] }
 0x560   : > { %1519 = vmatpush.msrb.mxu1 %v1488_v60  ;;  %1611 = vmatpush.msra.mxu3 %v1550_v39 }
 0x561   : > { %1627 = vmatpush.msrb.mxu0 %v1572_v9  ;;  %1590 = vmatpush.msrb.mxu2 %v1543_v8  ;;  %v1669_v9 = vld [vmem:[#allocation16 + $0xa8] sm:$0xff]  ;;  %v1825_v8 = vld [vmem:[#allocation17 + $0x58] sm:$0xff] }
 0x562   : > { %1520 = vmatpush.msrb.mxu1 %v1487_v61 }
 0x563   : > { %1628 = vmatpush.msrb.mxu0 %v1569_v16  ;;  %1591 = vmatpush.msrb.mxu2 %v1540_v48  ;;  %v1667_v16 = vld [vmem:[#allocation16 + $0x98] sm:$0xff]  ;;  %v1820_v48 = vld [vmem:[#allocation17 + $0x30] sm:$0xff] }
 0x564   : > { %2680 = vmatmul.msk.f32.gmra.mxu0 %vm1008_vm8, %v1418_v21  ;;  %1521 = vmatpush.msrb.mxu1 %v1486_v62  ;;  %vm1480_vm8 = vcmask 523264   ;;  %v1551_v21 = vld [vmem:[#allocation14 + $0xa0] sm:$0xff]  ;;  %v1679_v62 = vld [vmem:[#allocation16 + $0xf8] sm:$0xff] }
 0x565   : > { %1629 = vmatpush.msrb.mxu0 %v1566_v20  ;;  %1592 = vmatpush.msrb.mxu2 %v1537_v52  ;;  %v1665_v20 = vld [vmem:[#allocation16 + $0x88] sm:$0xff]  ;;  %v1816_v52 = vld [vmem:[#allocation17 + $0x10] sm:$0xff] }
 0x566   : > { %1680 = vmatpush.msra.mxu1 %v1678_v15  ;;  %v1656_v15 = vld [vmem:[#allocation16 + $0x40] sm:$0xff] }
 0x567   : > { %1630 = vmatpush.msrb.mxu0 %v1563_v25  ;;  %1593 = vmatpush.msrb.mxu2 %v1534_v56  ;;  %v1661_v25 = vld [vmem:[#allocation16 + $0x68] sm:$0xff] }
 0x568   : > { %1681 = vmatpush.msra.mxu1 %v1676_v59  ;;  %v1532_v59 = vld [vmem:[#allocation14 + $0x8] sm:$0xff] }
 0x569   : > { %1631 = vmatpush.msrb.mxu0 %v1560_v44  ;;  %1594 = vmatpush.msrb.mxu2 %v1531_v58  ;;  %v1655_v44 = vld [vmem:[#allocation16 + $0x38] sm:$0xff] }
 0x56a   : > { %1682 = vmatpush.msra.mxu1 %v1674_v22  ;;  %v1652_v22 = vld [vmem:[#allocation16 + $0x20] sm:$0xff] }
 0x56b   : > { %1632 = vmatpush.msrb.mxu0 %v1557_v2  ;;  %1703 = vmatpush.msra.mxu2 %v1679_v62  ;;  %v3978_v2 = vld [vmem:[%s3780_s24 + $0x8] sm:$0xff]  ;;  %s2434_s24 = sshll.u32 %s789_s11, 4  ;;  %s2435_s24 = int_to_ptr.vmem [resolvable:$true] %s2434_s24 }
 0x56c   : > { %1683 = vmatpush.msra.mxu1 %v1672_v26  ;;  %v1648_v26 = vld [vmem:[#allocation16] sm:$0xff] }
 0x56d   : > { %1633 = vmatpush.msrb.mxu0 %v1554_v29  ;;  %1704 = vmatpush.msra.mxu2 %v1677_v3 }
 0x56e   : > { %1684 = vmatpush.msra.mxu1 %v1670_v30  ;;  %v1653_v30 = vld [vmem:[#allocation16 + $0x28] sm:$0xff] }
 0x56f   : > { %1634 = vmatpush.msrb.mxu0 %v1551_v21  ;;  %1705 = vmatpush.msra.mxu2 %v1675_v55  ;;  %v1829_v21 = vld [vmem:[#allocation17 + $0x78] sm:$0xff] }
 0x570   : > { %1685 = vmatpush.msra.mxu1 %v1668_v32  ;;  %v2892_v32 = vld [vmem:[#allocation10] ss:$0 sm:$0xff] }
 0x571   : > { %1635 = vmatpush.msrb.mxu0 %v1548_v46  ;;  %1706 = vmatpush.msra.mxu2 %v1673_v4  ;;  %v1822_v46 = vld [vmem:[#allocation17 + $0x40] sm:$0xff] }
 0x572   : > { %1686 = vmatpush.msra.mxu1 %v1666_v37 }
 0x573   : > { %1707 = vmatpush.msra.mxu2 %v1671_v5 }
 0x574   : > { %1687 = vmatpush.msra.mxu1 %v1664_v40  ;;  %v1828_v40 = vld [vmem:[#allocation17 + $0x70] sm:$0xff] }
 0x575   : > { %1708 = vmatpush.msra.mxu2 %v1669_v9 }
 0x577   : > { %1709 = vmatpush.msra.mxu2 %v1667_v16 }
 0x579   : > { %1710 = vmatpush.msra.mxu2 %v1665_v20 }
 0x57b   : > { %1711 = vmatpush.msra.mxu2 %v1663_v23 }
 0x57d   : > { %1712 = vmatpush.msra.mxu2 %v1661_v25 }
 0x5c4   : > { %v1204_v43 = vpop.f32.mrf.mxu0 }
 0x5c8   : > { %v1326_v45 = vpop.f32.mrf.mxu2 }
 0x5c9   : > { %1464 = vrot.lane.b32.xlu0 %v1326_v45, %s3484_s20 }
 0x5cc   : > { %v1207_v49 = vpop.f32.mrf.mxu0 }
 0x5d0   : > { %v1329_v13 = vpop.f32.mrf.mxu2 }
 0x5d1   : > { %1466 = vrot.lane.b32.xlu1 %v1329_v13, %s3484_s20  ;;  %1456 = vrot.lane.b32.xlu0 %v1204_v43, %s3485_s9  ;;  %v1547_v43 = vld [vmem:[#allocation14 + $0x80] sm:$0xff]  ;;  %v1544_v13 = vld [vmem:[#allocation14 + $0x68] sm:$0xff] }
 0x5d2   : > { %1612 = vmatpush.msra.mxu3 %v1547_v43  ;;  %v1824_v43 = vld [vmem:[#allocation17 + $0x50] sm:$0xff] }
 0x5d4   : > { %1613 = vmatpush.msra.mxu3 %v1544_v13  ;;  %v1819_v13 = vld [vmem:[#allocation17 + $0x28] sm:$0xff] }
 0x5d6   : > { %1614 = vmatpush.msra.mxu3 %v1541_v53  ;;  %v1815_v53 = vld [vmem:[#allocation17 + $0x8] sm:$0xff] }
 0x5d8   : > { %1615 = vmatpush.msra.mxu3 %v1538_v6 }
 0x5d9   : > { %1458 = vrot.lane.b32.xlu0 %v1207_v49, %s3485_s9  ;;  %v1448_v50 = vpop.f32.mrf.mxu0 }
 0x5da   : > { %1472 = vrot.lane.b32.xlu2 %v1448_v50, %s3483_s17  ;;  %v1545_v50 = vld [vmem:[#allocation14 + $0x70] sm:$0xff]  ;;  %1616 = vmatpush.msra.mxu3 %v1535_v11 }
 0x5db   : > { %1636 = vmatpush.msrb.mxu0 %v1545_v50  ;;  %v1817_v50 = vld [vmem:[#allocation17 + $0x18] sm:$0xff] }
 0x5dc   : > { %1617 = vmatpush.msra.mxu3 %v1532_v59 }
 0x5de   : > { %1830 = vmatpush.msrb.mxu3 %v1829_v21 }
 0x5e0   : > { %1831 = vmatpush.msrb.mxu3 %v1828_v40 }
 0x5e1   : > { %v1451_v51 = vpop.f32.mrf.mxu0 }
 0x5e2   : > { %1474 = vrot.lane.b32.xlu2 %v1451_v51, %s3483_s17  ;;  %v1662_v51 = vld [vmem:[#allocation16 + $0x70] sm:$0xff]  ;;  %s4147_s17 = sld [smem:[#allocation41_spill]] }
 0x5e3   : > { %1688 = vmatpush.msra.mxu1 %v1662_v51 }
 0x5e5   : > { %1689 = vmatpush.msra.mxu1 %v1660_v54  ;;  %v1814_v54 = vld [vmem:[#allocation17] sm:$0xff] }
 0x5e7   : > { %1690 = vmatpush.msra.mxu1 %v1658_v7 }
 0x5e9   : > { %1691 = vmatpush.msra.mxu1 %v1656_v15 }
 0x5eb   : > { %1692 = vmatpush.msra.mxu1 %v1654_v19 }
 0x5ed   : > { %1693 = vmatpush.msra.mxu1 %v1652_v22 }
 0x5ef   : > { %1694 = vmatpush.msra.mxu1 %v1650_v24 }
 0x5f1   : > { %1695 = vmatpush.msra.mxu1 %v1648_v26 }
 0x634   : > { %v1473_v41 = vpop.permute.xlu2 %1472 }
 0x63b   : > { %v1465_v27 = vpop.permute.xlu0 %1464 }
 0x63c   : > { %v1475_v63 = vpop.permute.xlu2 %1474 }
 0x643   : > { %v1457_v42 = vpop.permute.xlu0 %1456  ;;  %v1467_v60 = vpop.permute.xlu1 %1466 }
 0x644   : > { %v1478_v45 = vsel %vm972_vm7, %v3870_v35, %v1457_v42  ;;  %v1542_v35 = vld [vmem:[#allocation14 + $0x58] sm:$0xff]  ;;  %v1826_v42 = vld [vmem:[#allocation17 + $0x60] sm:$0xff] }
 0x645   : > { %v1481_v47 = vsel %vm1480_vm8, %v1478_v45, %v1465_v27  ;;  %1637 = vmatpush.msrb.mxu0 %v1542_v35  ;;  %v1659_v27 = vld [vmem:[#allocation16 + $0x58] sm:$0xff]  ;;  %v1823_v45 = vld [vmem:[#allocation17 + $0x48] sm:$0xff] }
 0x646   : > { %v1484_v49 = vsel %vm1483_vm13, %v1481_v47, %v1473_v41  ;;  %1713 = vmatpush.msra.mxu2 %v1659_v27  ;;  %v1827_v41 = vld [vmem:[#allocation17 + $0x68] sm:$0xff]  ;;  %v1821_v47 = vld [vmem:[#allocation17 + $0x38] sm:$0xff] }
 0x647   : > { %1522 = vmatmul.f32.vlgmr.msrb.gmra.mxu1 %v1484_v49  ;;  %1832 = vmatpush.msrb.mxu3 %v1827_v41  ;;  %v1818_v49 = vld [vmem:[#allocation17 + $0x20] sm:$0xff] }
 0x648   : > { %1714 = vmatpush.msra.mxu2 %v1657_v10 }
 0x649   : > { %1833 = vmatpush.msrb.mxu3 %v1826_v42 }
 0x64a   : > { %1715 = vmatpush.msra.mxu2 %v1655_v44 }
 0x64b   : > { %v1459_v57 = vpop.permute.xlu0 %1458  ;;  %1834 = vmatpush.msrb.mxu3 %v1825_v8 }
 0x64c   : > { %v1479_v61 = vsel %vm972_vm7, %v3872_v36, %v1459_v57  ;;  %v1539_v36 = vld [vmem:[#allocation14 + $0x40] sm:$0xff]  ;;  %1716 = vmatpush.msra.mxu2 %v1653_v30 }
 0x64d   : > { %v1482_v0 = vsel %vm1480_vm8, %v1479_v61, %v1467_v60  ;;  %1638 = vmatpush.msrb.mxu0 %v1539_v36  ;;  %1835 = vmatpush.msrb.mxu3 %v1824_v43 }
 0x64e   : > { %v1485_v1 = vsel %vm1483_vm13, %v1482_v0, %v1475_v63  ;;  %1717 = vmatpush.msra.mxu2 %v1651_v17 }
 0x64f   : > { %1525 = vmatmul.f32.gmra.mxu1 %v1485_v1  ;;  %1639 = vmatpush.msrb.mxu0 %v1536_v12 }
 0x650   : > { %1718 = vmatpush.msra.mxu2 %v1649_v31  ;;  %1836 = vmatpush.msrb.mxu3 %v1823_v45  ;;  %v2893_v31 = vld [vmem:[%s4145_s1] ss:$0 sm:$0xff] }
 0x651   : > { %1640 = vmatpush.msrb.mxu0 %v1533_v18 }
 0x652   : > { %1837 = vmatpush.msrb.mxu3 %v1822_v46 }
 0x654   : > { %1838 = vmatpush.msrb.mxu3 %v1821_v47 }
 0x656   : > { %1839 = vmatpush.msrb.mxu3 %v1820_v48 }
 0x657   : > { %1696 = vmatmul.f32.vlgmr.msra.gmra.mxu1 %v3974_v28 }
 0x658   : > { %1840 = vmatpush.msrb.mxu3 %v1819_v13 }
 0x65a   : > { %1841 = vmatpush.msrb.mxu3 %v1818_v49 }
 0x65c   : > { %1842 = vmatpush.msrb.mxu3 %v1817_v50 }
 0x65e   : > { %1843 = vmatpush.msrb.mxu3 %v1816_v52 }
 0x65f   : > { %1699 = vmatmul.f32.gmra.mxu1 %v3978_v2 }
 0x660   : > { %1844 = vmatpush.msrb.mxu3 %v1815_v53 }
 0x662   : > { %1845 = vmatpush.msrb.mxu3 %v1814_v54 }
 0x6c4   : > { %v1523_v33 = vpop.f32.mrf.mxu1 }
 0x6c5   : > { %v1524_v34 = vadd.f32 %v2892_v32, %v1523_v33 }
 0x6c7   : > { %v1529_v29 = vmax.f32 %v1524_v34, 0.0 }
 0x6c9   : > { %1595 = vmatmul.f32.vlgmr.msrb.gmra.mxu2 %v1529_v29  ;;  %1618 = vmatmul.f32.vlgmr.msra.gmra.mxu3 %v1529_v29 }
 0x6ca   : > { %1641 = vmatmul.f32.vlgmr.msrb.gmra.mxu0 %v1529_v29 }
 0x6cc   : > { %v1526_v37 = vpop.f32.mrf.mxu1 }
 0x6cd   : > { %v1527_v38 = vadd.f32 %v2892_v32, %v1526_v37 }
 0x6cf   : > { %v1530_v39 = vmax.f32 %v1527_v38, 0.0 }
 0x6d1   : > { %1598 = vmatmul.f32.gmra.mxu2 %v1530_v39  ;;  %1621 = vmatmul.f32.gmra.mxu3 %v1530_v39 }
 0x6d2   : > { %1644 = vmatmul.f32.gmra.mxu0 %v1530_v39 }
 0x6d4   : > { %v1697_v51 = vpop.f32.mrf.mxu1 }
 0x6d9   : > { %1719 = vmatmul.f32.vlgmr.msra.gmra.mxu2 %v3974_v28 }
 0x6dc   : > { %v1700_v58 = vpop.f32.mrf.mxu1 }
 0x6e1   : > { %1722 = vmatmul.f32.gmra.mxu2 %v3978_v2 }
 0x74c   : > { %v1596_v35 = vpop.f32.mrf.mxu2  ;;  %v1619_v30 = vpop.f32.mrf.mxu3 }
 0x74d   : > { %v1726_v56 = vadd.f32 %v1697_v51, %v1596_v35  ;;  %v1642_v51 = vpop.f32.mrf.mxu0 }
 0x74f   : > { %v2681_v57 = vmul.f32 -1.442695, %v1726_v56 }
 0x751   : > { %2936 = vpow2.f32 %v2681_v57 }
 0x754   : > { %v1599_v60 = vpop.f32.mrf.mxu2  ;;  %v1622_v34 = vpop.f32.mrf.mxu3 }
 0x755   : > { %v1727_v61 = vadd.f32 %v1700_v58, %v1599_v60 }
 0x757   : > { %v2937_v62 = vpop.eup %2936  ;;  %v2682_v63 = vmul.f32 -1.442695, %v1727_v61 }
 0x758   : > { %v1734_v0 = vadd.f32 1.0, %v2937_v62 }
 0x759   : > { %2938 = vpow2.f32 %v2682_v63 }
 0x75a   : > { %2940 = vrcp.f32 %v1734_v0  ;;  %v1747_v6 = vand.u32 2147483648, %v1734_v0  ;;  %v1745_v7 = vand.u32 2147483647, %v1734_v0  ;;  %vm1741_vm14 = vweird.f32 %v1734_v0 }
 0x75c   : > { %v1748_v12 = vor.u32 1.1754944e-38, %v1747_v6  ;;  %vm1746_vm0 = vcmp.eq.f32.partialorder %v1745_v7, 8.507059e+37  ;;  %v1720_v44 = vpop.f32.mrf.mxu2 }
 0x75d   : > { %v1766_v17 = vadd.f32 %v1720_v44, %v1619_v30  ;;  %v1939_v44 = vld [vmem:[#allocation11 + $0xd0] sm:$0xff]  ;;  %v1940_v30 = vld [vmem:[#allocation11 + $0xd8] sm:$0xff] }
 0x75f   : > { %v2939_v1 = vpop.eup %2938  ;;  %v1772_v32 = vsub.f32 %v1766_v17, %v2893_v31  ;;  %v1937_v17 = vld [vmem:[#allocation11 + $0xc0] sm:$0xff] }
 0x760   : > { %v2941_v3 = vpop.eup %2940  ;;  %v1735_v55 = vadd.f32 1.0, %v2939_v1 }
 0x761   : > { %v1737_v4 = vmul.f32 %v2941_v3, %v1734_v0  ;;  %vm1742_vm7 = vweird.f32 %v2941_v3  ;;  %v2683_v29 = vmul.f32 -1.442695, %v1772_v32  ;;  %v1645_v0 = vpop.f32.mrf.mxu0  ;;  %v1935_v32 = vld [vmem:[#allocation11 + $0xb0] sm:$0xff] }
 0x762   : > { %2942 = vrcp.f32 %v1735_v55  ;;  %vm1743_vm15 = vmor %vm1741_vm14, %vm1742_vm7  ;;  %v1762_v20 = vand.u32 2147483648, %v1735_v55  ;;  %v1760_v23 = vand.u32 2147483647, %v1735_v55  ;;  %vm1756_vm2 = vweird.f32 %v1735_v55 }
 0x763   : > { %v1738_v5 = vsub.f32 1.0, %v1737_v4  ;;  %2944 = vpow2.f32 %v2683_v29  ;;  %v1934_v29 = vld [vmem:[#allocation11 + $0xa8] sm:$0xff] }
 0x764   : > { %v1763_v25 = vor.u32 1.1754944e-38, %v1762_v20  ;;  %vm1761_vm4 = vcmp.eq.f32.partialorder %v1760_v23, 8.507059e+37  ;;  %v1723_v33 = vpop.f32.mrf.mxu2  ;;  %v1942_v20 = vld [vmem:[#allocation11 + $0xe8] sm:$0xff] }
 0x765   : > { %v1739_v36 = vmul.f32 %v2941_v3, %v1738_v5  ;;  %v1767_v37 = vadd.f32 %v1723_v33, %v1622_v34  ;;  %v1936_v33 = vld [vmem:[#allocation11 + $0xb8] sm:$0xff]  ;;  %v1933_v34 = vld [vmem:[#allocation11 + $0xa0] sm:$0xff] }
 0x767   : > { %v1740_v9 = vadd.f32 %v2941_v3, %v1739_v36  ;;  %v1773_v38 = vsub.f32 %v1767_v37, %v2893_v31  ;;  %v1938_v31 = vld [vmem:[#allocation11 + $0xc8] sm:$0xff]  ;;  %v1931_v37 = vld [vmem:[#allocation11 + $0x90] sm:$0xff] }
 0x768   : > { %v2943_v11 = vpop.eup %2942 }
 0x769   : > { %v1744_v15 = vsel %vm1743_vm15, %v2941_v3, %v1740_v9  ;;  %v1752_v16 = vmul.f32 %v2943_v11, %v1735_v55  ;;  %vm1757_vm1 = vweird.f32 %v2943_v11  ;;  %v2684_v39 = vmul.f32 -1.442695, %v1773_v38  ;;  %v2945_v21 = vpop.eup %2944  ;;  %v1932_v38 = vld [vmem:[#allocation11 + $0x98] sm:$0xff] }
 0x76a   : > { %v1749_v59 = vsel %vm1746_vm0, %v1748_v12, %v1744_v15  ;;  %vm1758_vm3 = vmor %vm1756_vm2, %vm1757_vm1  ;;  %v1780_v40 = vadd.f32 1.0, %v2945_v21  ;;  %v1930_v21 = vld [vmem:[#allocation11 + $0x88] sm:$0xff] }
 0x76b   : > { %v1812_v18 = vmul.f32 %v3974_v28, %v1749_v59  ;;  %v1753_v19 = vsub.f32 1.0, %v1752_v16  ;;  %2946 = vpow2.f32 %v2684_v39  ;;  %v1929_v39 = vld [vmem:[#allocation11 + $0x80] sm:$0xff] }
 0x76c   : > { %2948 = vrcp.f32 %v1780_v40  ;;  %v1793_v50 = vand.u32 2147483648, %v1780_v40  ;;  %vm1787_vm6 = vweird.f32 %v1780_v40  ;;  %v1791_v52 = vand.u32 2147483647, %v1780_v40 }
 0x76d   : > { %1846 = vmatmul.f32.vlgmr.msrb.gmra.mxu3 %v1812_v18  ;;  %v1754_v22 = vmul.f32 %v2943_v11, %v1753_v19  ;;  %v1943_v18 = vld [vmem:[#allocation11 + $0xf0] sm:$0xff]  ;;  %v1944_v19 = vld [vmem:[#allocation11 + $0xf8] sm:$0xff] }
 0x76e   : > { %v1794_v56 = vor.u32 1.1754944e-38, %v1793_v50  ;;  %vm1792_vm10 = vcmp.eq.f32.partialorder %v1791_v52, 8.507059e+37  ;;  %1951 = vmatpush.msra.mxu0 %v1943_v18  ;;  %1974 = vmatpush.msrb.mxu1 %v1944_v19  ;;  %v1918_v50 = vld [vmem:[#allocation11 + $0x28] sm:$0xff]  ;;  %v1916_v52 = vld [vmem:[#allocation11 + $0x18] sm:$0xff]  ;;  %v2011_v18 = vld [vmem:[#allocation13 + $0x50] sm:$0xff] }
 0x76f   : > { %v1755_v24 = vadd.f32 %v2943_v11, %v1754_v22  ;;  %v2025_v19 = vld [vmem:[#allocation13 + $0xc0] sm:$0xff] }
 0x770   : > { %1975 = vmatpush.msrb.mxu1 %v1942_v20 }
 0x771   : > { %v1759_v26 = vsel %vm1758_vm3, %v2943_v11, %v1755_v24  ;;  %v2947_v41 = vpop.eup %2946 }
 0x772   : > { %v1764_v27 = vsel %vm1761_vm4, %v1763_v25, %v1759_v26  ;;  %v1781_v42 = vadd.f32 1.0, %v2947_v41  ;;  %v2949_v8 = vpop.eup %2948  ;;  %1976 = vmatpush.msrb.mxu1 %v1940_v30  ;;  %v1928_v41 = vld [vmem:[#allocation11 + $0x78] sm:$0xff] }
 0x773   : > { %v1813_v10 = vmul.f32 %v3978_v2, %v1764_v27  ;;  %v1783_v43 = vmul.f32 %v2949_v8, %v1780_v40  ;;  %vm1788_vm5 = vweird.f32 %v2949_v8  ;;  %v1927_v40 = vld [vmem:[#allocation11 + $0x70] sm:$0xff]  ;;  %v2008_v30 = vld [vmem:[#allocation13 + $0x38] sm:$0xff] }
 0x774   : > { %2950 = vrcp.f32 %v1781_v42  ;;  %vm1789_vm9 = vmor %vm1787_vm6, %vm1788_vm5  ;;  %v1808_v61 = vand.u32 2147483648, %v1781_v42  ;;  %vm1802_vm12 = vweird.f32 %v1781_v42  ;;  %v1806_v63 = vand.u32 2147483647, %v1781_v42  ;;  %1977 = vmatpush.msrb.mxu1 %v1938_v31 }
 0x775   : > { %1849 = vmatmul.f32.gmra.mxu3 %v1813_v10  ;;  %v1784_v45 = vsub.f32 1.0, %v1783_v43  ;;  %v1923_v43 = vld [vmem:[#allocation11 + $0x50] sm:$0xff] }
 0x776   : > { %v1809_v4 = vor.u32 1.1754944e-38, %v1808_v61  ;;  %vm1807_vm13 = vcmp.eq.f32.partialorder %v1806_v63, 8.507059e+37  ;;  %1978 = vmatpush.msrb.mxu1 %v1936_v33  ;;  %v2030_v61 = vld [vmem:[#allocation13 + $0xe8] sm:$0xff]  ;;  %v2895_v33 = vld [vmem:[%s4142_s3 + $0x3] ss:$0 sm:$0xff] }
 0x777   : > { %v1785_v48 = vmul.f32 %v2949_v8, %v1784_v45  ;;  %v1924_v45 = vld [vmem:[#allocation11 + $0x58] sm:$0xff] }
 0x778   : > { %1979 = vmatpush.msrb.mxu1 %v1934_v29  ;;  %v2007_v29 = vld [vmem:[#allocation13 + $0x30] sm:$0xff] }
 0x779   : > { %v1786_v49 = vadd.f32 %v2949_v8, %v1785_v48  ;;  %v1919_v48 = vld [vmem:[#allocation11 + $0x30] sm:$0xff] }
 0x77a   : > { %v2951_v46 = vpop.eup %2950  ;;  %1980 = vmatpush.msrb.mxu1 %v1932_v38 }
 0x77b   : > { %v1798_v47 = vmul.f32 %v2951_v46, %v1781_v42  ;;  %v1790_v53 = vsel %vm1789_vm9, %v2949_v8, %v1786_v49  ;;  %vm1803_vm11 = vweird.f32 %v2951_v46  ;;  %v1925_v42 = vld [vmem:[#allocation11 + $0x60] sm:$0xff]  ;;  %v1926_v8 = vld [vmem:[#allocation11 + $0x68] sm:$0xff] }
 0x77c   : > { %v1795_v58 = vsel %vm1792_vm10, %v1794_v56, %v1790_v53  ;;  %vm1804_vm8 = vmor %vm1802_vm12, %vm1803_vm11  ;;  %1981 = vmatpush.msrb.mxu1 %v1930_v21  ;;  %v1917_v49 = vld [vmem:[#allocation11 + $0x20] sm:$0xff]  ;;  %v2006_v21 = vld [vmem:[#allocation13 + $0x28] sm:$0xff] }
 0x77d   : > { %v1799_v13 = vsub.f32 1.0, %v1798_v47  ;;  %v1857_v62 = vsub.f32 1.0, %v1795_v58  ;;  %v1922_v47 = vld [vmem:[#allocation11 + $0x48] sm:$0xff]  ;;  %v1913_v53 = vld [vmem:[#allocation11] sm:$0xff] }
 0x77e   : > { %1982 = vmatpush.msrb.mxu1 %v1928_v41 }
 0x77f   : > { %v1800_v54 = vmul.f32 %v2951_v46, %v1799_v13  ;;  %v1859_v6 = vmul.f32 %v3974_v28, %v1857_v62  ;;  %v1941_v28 = vld [vmem:[#allocation11 + $0xe0] sm:$0xff]  ;;  %v1920_v13 = vld [vmem:[#allocation11 + $0x38] sm:$0xff] }
 0x780   : > { %1952 = vmatpush.msra.mxu0 %v1941_v28  ;;  %1983 = vmatpush.msrb.mxu1 %v1926_v8  ;;  %v2016_v62 = vld [vmem:[#allocation13 + $0x78] sm:$0xff]  ;;  %v2010_v28 = vld [vmem:[#allocation13 + $0x48] sm:$0xff]  ;;  %v2005_v8 = vld [vmem:[#allocation13 + $0x20] sm:$0xff] }
 0x781   : > { %v1801_v60 = vadd.f32 %v2951_v46, %v1800_v54  ;;  %2037 = vmatpush.msrb.mxu2 %v2016_v62  ;;  %v2216_v62 = vld [vmem:[#allocation20 + $0x70] sm:$0xff] }
 0x782   : > { %1953 = vmatpush.msra.mxu0 %v1939_v44  ;;  %1984 = vmatpush.msrb.mxu1 %v1924_v45  ;;  %v2023_v44 = vld [vmem:[#allocation13 + $0xb0] sm:$0xff]  ;;  %v2004_v45 = vld [vmem:[#allocation13 + $0x18] sm:$0xff] }
 0x783   : > { %v1805_v1 = vsel %vm1804_vm8, %v2951_v46, %v1801_v60  ;;  %v1921_v46 = vld [vmem:[#allocation11 + $0x40] sm:$0xff]  ;;  %v2031_v60 = vld [vmem:[#allocation13 + $0xf0] sm:$0xff] }
 0x784   : > { %v1810_v7 = vsel %vm1807_vm13, %v1809_v4, %v1805_v1  ;;  %1954 = vmatpush.msra.mxu0 %v1937_v17  ;;  %1985 = vmatpush.msrb.mxu1 %v1922_v47 }
 0x785   : > { %v1858_v11 = vsub.f32 1.0, %v1810_v7 }
 0x786   : > { %1955 = vmatpush.msra.mxu0 %v1935_v32  ;;  %1986 = vmatpush.msrb.mxu1 %v1920_v13 }
 0x787   : > { %v1860_v15 = vmul.f32 %v3978_v2, %v1858_v11  ;;  %v2027_v11 = vld [vmem:[#allocation13 + $0xd0] sm:$0xff] }
 0x788   : > { %1956 = vmatpush.msra.mxu0 %v1933_v34  ;;  %1987 = vmatpush.msrb.mxu1 %v1918_v50  ;;  %v2022_v34 = vld [vmem:[#allocation13 + $0xa8] sm:$0xff] }
 0x78a   : > { %1957 = vmatpush.msra.mxu0 %v1931_v37  ;;  %1988 = vmatpush.msrb.mxu1 %v1916_v52  ;;  %v2230_v52 = vld [vmem:[#allocation20 + $0xe0] sm:$0xff] }
 0x78c   : > { %1958 = vmatpush.msra.mxu0 %v1929_v39  ;;  %v2021_v39 = vld [vmem:[#allocation13 + $0xa0] sm:$0xff] }
 0x78e   : > { %1959 = vmatpush.msra.mxu0 %v1927_v40 }
 0x790   : > { %1960 = vmatpush.msra.mxu0 %v1925_v42  ;;  %v2020_v42 = vld [vmem:[#allocation13 + $0x98] sm:$0xff] }
 0x792   : > { %1961 = vmatpush.msra.mxu0 %v1923_v43  ;;  %v2019_v43 = vld [vmem:[#allocation13 + $0x90] sm:$0xff] }
 0x794   : > { %1962 = vmatpush.msra.mxu0 %v1921_v46 }
 0x796   : > { %1963 = vmatpush.msra.mxu0 %v1919_v48  ;;  %v2018_v48 = vld [vmem:[#allocation13 + $0x88] sm:$0xff] }
 0x798   : > { %1964 = vmatpush.msra.mxu0 %v1917_v49  ;;  %v2017_v49 = vld [vmem:[#allocation13 + $0x80] sm:$0xff] }
 0x7f0   : > { %v1847_v35 = vpop.f32.mrf.mxu3 }
 0x7f1   : > { %v1853_v57 = vadd.f32 %v1847_v35, %v1642_v51  ;;  %v1915_v51 = vld [vmem:[#allocation11 + $0x10] sm:$0xff]  ;;  %v1914_v35 = vld [vmem:[#allocation11 + $0x8] sm:$0xff] }
 0x7f2   : > { %1965 = vmatpush.msra.mxu0 %v1915_v51  ;;  %1989 = vmatpush.msrb.mxu1 %v1914_v35  ;;  %v2232_v51 = vld [vmem:[#allocation20 + $0xf0] sm:$0xff]  ;;  %v2226_v35 = vld [vmem:[#allocation20 + $0xc0] sm:$0xff] }
 0x7f3   : > { %2952 = vtanh.f32 %v1853_v57 }
 0x7f4   : > { %1966 = vmatpush.msra.mxu0 %v1913_v53  ;;  %v2228_v53 = vld [vmem:[#allocation20 + $0xd0] sm:$0xff] }
 0x7f8   : > { %v1850_v3 = vpop.f32.mrf.mxu3 }
 0x7f9   : > { %v2953_v55 = vpop.eup %2952  ;;  %v1854_v5 = vadd.f32 %v1850_v3, %v1645_v0  ;;  %v2015_v0 = vld [vmem:[#allocation13 + $0x70] sm:$0xff]  ;;  %v2029_v3 = vld [vmem:[#allocation13 + $0xe0] sm:$0xff] }
 0x7fa   : > { %v1861_v36 = vmul.f32 %v2953_v55, %v1795_v58  ;;  %v2032_v58 = vld [vmem:[#allocation13 + $0xf8] sm:$0xff]  ;;  %v2014_v55 = vld [vmem:[#allocation13 + $0x68] sm:$0xff]  ;;  %2038 = vmatpush.msrb.mxu2 %v2015_v0  ;;  %v2212_v0 = vld [vmem:[#allocation20 + $0x50] sm:$0xff] }
 0x7fb   : > { %2954 = vtanh.f32 %v1854_v5  ;;  %2060 = vmatpush.msra.mxu3 %v2032_v58  ;;  %v2220_v58 = vld [vmem:[#allocation20 + $0x90] sm:$0xff] }
 0x7fc   : > { %v3989_v9 = vadd.f32 %v1861_v36, %v1859_v6  ;;  %v2028_v6 = vld [vmem:[#allocation13 + $0xd8] sm:$0xff]  ;;  %v2013_v36 = vld [vmem:[#allocation13 + $0x60] sm:$0xff]  ;;  %2039 = vmatpush.msrb.mxu2 %v2014_v55 }
 0x7fd   : > { %2061 = vmatpush.msra.mxu3 %v2031_v60  ;;  %v2001_v60 = vld [vmem:[#allocation13] sm:$0xff] }
 0x7fe   : > { %1867 = vadd.xlane.f32.xlu0 %v3989_v9  ;;  %2040 = vmatpush.msrb.mxu2 %v2013_v36  ;;  %v2206_v55 = vld [vmem:[#allocation20 + $0x20] sm:$0xff] }
 0x7ff   : > { %2062 = vmatpush.msra.mxu3 %v2030_v61  ;;  %v2218_v61 = vld [vmem:[#allocation20 + $0x80] sm:$0xff] }
 0x801   : > { %v2955_v12 = vpop.eup %2954  ;;  %2063 = vmatpush.msra.mxu3 %v2029_v3  ;;  %v2208_v3 = vld [vmem:[#allocation20 + $0x30] sm:$0xff] }
 0x802   : > { %v1862_v16 = vmul.f32 %v2955_v12, %v1810_v7  ;;  %v2012_v12 = vld [vmem:[#allocation13 + $0x58] sm:$0xff] }
 0x803   : > { %2064 = vmatpush.msra.mxu3 %v2028_v6  ;;  %2041 = vmatpush.msrb.mxu2 %v2012_v12  ;;  %v1945_v6 = vld [vmem:[%s4146_s22] sm:$0x3]  ;;  %v2127_v12 = vld [vmem:[#allocation19 + $0x150] sm:$0xff]  ;;  %s3386_s22 = sshra.s32 %s2437_s4, 4  ;;  %s3387_s22 = int_to_ptr.hbm [resolvable:$true] %s3386_s22 }
 0x804   : > { %v3993_v59 = vadd.f32 %v1862_v16, %v1860_v15  ;;  %v2026_v16 = vld [vmem:[#allocation13 + $0xc8] sm:$0xff]  ;;  %v1947_v36 = vperm.slane %v1945_v6, 0  ;;  %s3388_s26 = scalar_lea.hbm %s3387_s22, 16  ;;  %p3393_p12 = scmp.lt.s32.totalorder %s3387_s22, %s4149_s23 }
 0x805   : > { %2065 = vmatpush.msra.mxu3 %v2027_v11  ;;  %2042 = vmatpush.msrb.mxu2 %v2011_v18  ;;  %v2130_v11 = vld [vmem:[#allocation19 + $0x168] sm:$0xff]  ;;  %p3389_p1 = scmp.ne.s32.totalorder %s3387_s22, %s3388_s26 }
 0x806   : > { %1869 = vadd.xlane.f32.xlu1 %v3993_v59  ;;  %2133 = vmatpush.msrb.mxu0 %v2130_v11  ;;  %v2089_v11 = vld [vmem:[#allocation19 + $0x20] sm:$0xff] }
 0x807   : > { %2066 = vmatpush.msra.mxu3 %v2026_v16  ;;  %2043 = vmatpush.msrb.mxu2 %v2010_v28  ;;  %v2131_v16 = vld [vmem:[#allocation19 + $0x170] sm:$0xff]  ;;  %v2128_v28 = vld [vmem:[#allocation19 + $0x158] sm:$0xff]  ;;  %p3390_p3 = pnand %p3389_p1, %p3740_p4 }
 0x808   : > { %2134 = vmatpush.msrb.mxu0 %v2127_v12  ;;  %2156 = vmatpush.msra.mxu1 %v2131_v16  ;;  %v2090_v12 = vld [vmem:[#allocation19 + $0x28] sm:$0xff] }
 0x809   : > { %2067 = vmatpush.msra.mxu3 %v2025_v19  ;;  %v2132_v19 = vld [vmem:[#allocation19 + $0x178] sm:$0xff]  ;;  %v2086_v16 = vld [vmem:[#allocation19 + $0x8] sm:$0xff]  ;;  %p3391_p5 = pneg %p3390_p3 }
 0x80a   : > { %2157 = vmatpush.msra.mxu1 %v2128_v28  ;;  %v2215_v28 = vld [vmem:[#allocation20 + $0x68] sm:$0xff] }
 0x871   : > { %v1868_v22 = vpop.xlane.xlu0 %1867 }
 0x872   : > { %v1871_v23 = vmul.f32 %v1868_v22, %v3812_v14 }
 0x874   : > { %v3998_v24 = vsub.f32 %v3989_v9, %v1871_v23  ;;  %v2024_v23 = vld [vmem:[#allocation13 + $0xb8] sm:$0xff] }
 0x875   : > { %2068 = vmatpush.msra.mxu3 %v2024_v23  ;;  %v2121_v23 = vld [vmem:[#allocation19 + $0x120] sm:$0xff] }
 0x876   : > { %v1875_v2 = vmul.f32 %v3998_v24, %v3998_v24 }
 0x877   : > { %2069 = vmatpush.msra.mxu3 %v2023_v44  ;;  %v2118_v44 = vld [vmem:[#allocation19 + $0x108] sm:$0xff] }
 0x878   : > { %1877 = vadd.xlane.f32.xlu2 %v1875_v2  ;;  %v2009_v2 = vld [vmem:[#allocation13 + $0x40] sm:$0xff] }
 0x879   : > { %v1870_v25 = vpop.xlane.xlu1 %1869  ;;  %2044 = vmatpush.msrb.mxu2 %v2009_v2  ;;  %2070 = vmatpush.msra.mxu3 %v2022_v34  ;;  %v2129_v2 = vld [vmem:[#allocation19 + $0x160] sm:$0xff]  ;;  %v2112_v34 = vld [vmem:[#allocation19 + $0xd8] sm:$0xff] }
 0x87a   : > { %v1872_v26 = vmul.f32 %v1870_v25, %v3812_v14 }
 0x87b   : > { %2045 = vmatpush.msrb.mxu2 %v2008_v30  ;;  %2071 = vmatpush.msra.mxu3 %v2021_v39  ;;  %v2126_v30 = vld [vmem:[#allocation19 + $0x148] sm:$0xff]  ;;  %v2116_v39 = vld [vmem:[#allocation19 + $0xf8] sm:$0xff] }
 0x87c   : > { %v4004_v27 = vsub.f32 %v3993_v59, %v1872_v26 }
 0x87d   : > { %2046 = vmatpush.msrb.mxu2 %v2007_v29  ;;  %2072 = vmatpush.msra.mxu3 %v2020_v42  ;;  %v2120_v29 = vld [vmem:[#allocation19 + $0x118] sm:$0xff]  ;;  %v2117_v42 = vld [vmem:[#allocation19 + $0x100] sm:$0xff] }
 0x87e   : > { %v1876_v10 = vmul.f32 %v4004_v27, %v4004_v27 }
 0x87f   : > { %2047 = vmatpush.msrb.mxu2 %v2006_v21  ;;  %2073 = vmatpush.msra.mxu3 %v2019_v43  ;;  %v2106_v43 = vld [vmem:[#allocation19 + $0xa8] sm:$0xff] }
 0x880   : > { %1879 = vadd.xlane.f32.xlu0 %v1876_v10  ;;  %v2894_v10 = vld [vmem:[%s4142_s3 + $0x2] ss:$0 sm:$0xff] }
 0x881   : > { %2048 = vmatpush.msrb.mxu2 %v2005_v8  ;;  %2074 = vmatpush.msra.mxu3 %v2018_v48  ;;  %v2110_v48 = vld [vmem:[#allocation19 + $0xc8] sm:$0xff] }
 0x883   : > { %2049 = vmatpush.msrb.mxu2 %v2004_v45  ;;  %2075 = vmatpush.msra.mxu3 %v2017_v49  ;;  %v2113_v45 = vld [vmem:[#allocation19 + $0xe0] sm:$0xff]  ;;  %v2100_v49 = vld [vmem:[#allocation19 + $0x78] sm:$0xff] }
 0x885   : > { %2234 = vmatpush.msrb.mxu3 %v2232_v51  ;;  %v2108_v51 = vld [vmem:[#allocation19 + $0xb8] sm:$0xff] }
 0x887   : > { %2235 = vmatpush.msrb.mxu3 %v2230_v52  ;;  %v2097_v52 = vld [vmem:[#allocation19 + $0x60] sm:$0xff] }
 0x889   : > { %2236 = vmatpush.msrb.mxu3 %v2228_v53  ;;  %v2104_v53 = vld [vmem:[#allocation19 + $0x98] sm:$0xff] }
 0x88b   : > { %2237 = vmatpush.msrb.mxu3 %v2226_v35  ;;  %v2105_v35 = vld [vmem:[#allocation19 + $0xa0] sm:$0xff] }
 0x8eb   : > { %v1878_v54 = vpop.xlane.xlu2 %1877 }
 0x8ec   : > { %v1881_v56 = vmul.f32 %v1878_v54, %v3812_v14  ;;  %v2224_v54 = vld [vmem:[#allocation20 + $0xb0] sm:$0xff] }
 0x8ed   : > { %2238 = vmatpush.msrb.mxu3 %v2224_v54  ;;  %v2094_v54 = vld [vmem:[#allocation19 + $0x48] sm:$0xff] }
 0x8ee   : > { %v1883_v57 = vadd.f32 1e-05, %v1881_v56  ;;  %v2222_v56 = vld [vmem:[#allocation20 + $0xa0] sm:$0xff] }
 0x8ef   : > { %2239 = vmatpush.msrb.mxu3 %v2222_v56  ;;  %v2102_v56 = vld [vmem:[#allocation19 + $0x88] sm:$0xff] }
 0x8f0   : > { %2956 = vrsqrt.f32 %v1883_v57  ;;  %vm1891_vm14 = vweird.f32 %v1883_v57 }
 0x8f1   : > { %2240 = vmatpush.msrb.mxu3 %v2220_v58  ;;  %v2098_v58 = vld [vmem:[#allocation19 + $0x68] sm:$0xff] }
 0x8f3   : > { %v1880_v63 = vpop.xlane.xlu0 %1879  ;;  %2241 = vmatpush.msrb.mxu3 %v2218_v61  ;;  %v2088_v61 = vld [vmem:[#allocation19 + $0x18] sm:$0xff] }
 0x8f4   : > { %v1882_v1 = vmul.f32 %v1880_v63, %v3812_v14  ;;  %v2214_v63 = vld [vmem:[#allocation20 + $0x60] sm:$0xff] }
 0x8f5   : > { %2242 = vmatpush.msrb.mxu3 %v2216_v62  ;;  %v2085_v62 = vld [vmem:[#allocation19] sm:$0xff] }
 0x8f6   : > { %v2957_v4 = vpop.eup %2956  ;;  %v1884_v5 = vadd.f32 1e-05, %v1882_v1  ;;  %v2210_v1 = vld [vmem:[#allocation20 + $0x40] sm:$0xff] }
 0x8f7   : > { %v1886_v7 = vmul.f32 %v2957_v4, %v1883_v57  ;;  %vm1892_vm7 = vweird.f32 %v2957_v4  ;;  %v2002_v57 = vld [vmem:[#allocation13 + $0x8] sm:$0xff]  ;;  %2243 = vmatpush.msrb.mxu3 %v2214_v63  ;;  %v2233_v63 = vld [vmem:[#allocation20 + $0xf8] sm:$0xff] }
 0x8f8   : > { %2958 = vrsqrt.f32 %v1884_v5  ;;  %vm1893_vm15 = vmor %vm1891_vm14, %vm1892_vm7  ;;  %vm1901_vm1 = vweird.f32 %v1884_v5 }
 0x8f9   : > { %v1887_v15 = vmul.f32 %v2957_v4, %v1886_v7  ;;  %2244 = vmatpush.msrb.mxu3 %v2212_v0  ;;  %v1948_v7 = vperm.slane %v1945_v6, 1  ;;  %v2231_v0 = vld [vmem:[#allocation20 + $0xe8] sm:$0xff]  ;;  %v2092_v6 = vld [vmem:[#allocation19 + $0x38] sm:$0xff] }
 0x8fb   : > { %v1888_v14 = vmul.f32 0.5, %v1887_v15  ;;  %2245 = vmatpush.msrb.mxu3 %v2210_v1  ;;  %v2124_v15 = vld [vmem:[#allocation19 + $0x138] sm:$0xff] }
 0x8fc   : > { %2135 = vmatpush.msrb.mxu0 %v2124_v15  ;;  %v2229_v1 = vld [vmem:[#allocation20 + $0xd8] sm:$0xff] }
 0x8fd   : > { %v1889_v20 = vsub.f32 1.5, %v1888_v14  ;;  %2246 = vmatpush.msrb.mxu3 %v2208_v3  ;;  %v2227_v3 = vld [vmem:[#allocation20 + $0xc8] sm:$0xff]  ;;  %v2221_v15 = vld [vmem:[#allocation20 + $0x98] sm:$0xff] }
 0x8fe   : > { %v2959_v22 = vpop.eup %2958  ;;  %2136 = vmatpush.msrb.mxu0 %v2121_v23  ;;  %v2209_v23 = vld [vmem:[#allocation20 + $0x38] sm:$0xff] }
 0x8ff   : > { %v1890_v25 = vmul.f32 %v2957_v4, %v1889_v20  ;;  %v1896_v26 = vmul.f32 %v2959_v22, %v1884_v5  ;;  %vm1902_vm0 = vweird.f32 %v2959_v22  ;;  %2247 = vmatpush.msrb.mxu3 %v2206_v55  ;;  %v2202_v5 = vld [vmem:[#allocation20] sm:$0xff]  ;;  %v2095_v55 = vld [vmem:[#allocation19 + $0x50] sm:$0xff] }
 0x900   : > { %vm1903_vm2 = vmor %vm1901_vm1, %vm1902_vm0  ;;  %2137 = vmatpush.msrb.mxu0 %v2118_v44 }
 0x901   : > { %v1894_v17 = vsel %vm1893_vm15, %v2957_v4, %v1890_v25  ;;  %v1897_v31 = vmul.f32 %v2959_v22, %v1896_v26  ;;  %v2204_v4 = vld [vmem:[#allocation20 + $0x10] sm:$0xff]  ;;  %v2125_v25 = vld [vmem:[#allocation19 + $0x140] sm:$0xff] }
 0x902   : > { %v1905_v32 = vmul.f32 %v1894_v17, %v3998_v24  ;;  %2248 = vmatpush.msrb.mxu3 %v2204_v4  ;;  %2158 = vmatpush.msra.mxu1 %v2125_v25  ;;  %v2122_v17 = vld [vmem:[#allocation19 + $0x128] sm:$0xff]  ;;  %v2096_v4 = vld [vmem:[#allocation19 + $0x58] sm:$0xff] }
 0x903   : > { %v1898_v37 = vmul.f32 0.5, %v1897_v31  ;;  %v2115_v31 = vld [vmem:[#allocation19 + $0xf0] sm:$0xff]  ;;  %v2205_v25 = vld [vmem:[#allocation20 + $0x18] sm:$0xff] }
 0x904   : > { %v1908_v38 = vmul.f32 %v2894_v10, %v1905_v32  ;;  %2249 = vmatpush.msrb.mxu3 %v2202_v5  ;;  %v2123_v32 = vld [vmem:[#allocation19 + $0x130] sm:$0xff]  ;;  %2159 = vmatpush.msra.mxu1 %v2122_v17  ;;  %v2225_v5 = vld [vmem:[#allocation20 + $0xb8] sm:$0xff] }
 0x905   : > { %v1899_v40 = vsub.f32 1.5, %v1898_v37  ;;  %2138 = vmatpush.msrb.mxu0 %v2115_v31 }
 0x906   : > { %v1911_v41 = vadd.f32 %v2895_v33, %v1908_v38 }
 0x907   : > { %v1900_v24 = vmul.f32 %v2959_v22, %v1899_v40  ;;  %2139 = vmatpush.msrb.mxu0 %v2112_v34 }
 0x908   : > { %1967 = vmatmul.f32.vlgmr.msra.gmra.mxu0 %v1911_v41  ;;  %1990 = vmatmul.f32.vlgmr.msrb.gmra.mxu1 %v1911_v41  ;;  %v2109_v41 = vld [vmem:[#allocation19 + $0xc0] sm:$0xff] }
 0x909   : > { %v1904_v46 = vsel %vm1903_vm2, %v2959_v22, %v1900_v24  ;;  %2140 = vmatpush.msrb.mxu0 %v2109_v41  ;;  %v2380_v41 = vld [vmem:[#allocation22 + $0x60] sm:$0xff] }
 0x90a   : > { %v1906_v47 = vmul.f32 %v1904_v46, %v4004_v27  ;;  %v2003_v27 = vld [vmem:[#allocation13 + $0x10] sm:$0xff]  ;;  %v2114_v46 = vld [vmem:[#allocation19 + $0xe8] sm:$0xff] }
 0x90b   : > { %2050 = vmatpush.msrb.mxu2 %v2003_v27  ;;  %2141 = vmatpush.msrb.mxu0 %v2106_v43  ;;  %v2101_v27 = vld [vmem:[#allocation19 + $0x80] sm:$0xff] }
 0x90c   : > { %v1909_v13 = vmul.f32 %v2894_v10, %v1906_v47  ;;  %v2103_v47 = vld [vmem:[#allocation19 + $0x90] sm:$0xff]  ;;  %v2376_v43 = vld [vmem:[#allocation22 + $0x40] sm:$0xff] }
 0x90d   : > { %2051 = vmatpush.msrb.mxu2 %v2002_v57  ;;  %2142 = vmatpush.msrb.mxu0 %v2103_v47  ;;  %v2091_v57 = vld [vmem:[#allocation19 + $0x30] sm:$0xff]  ;;  %v2373_v47 = vld [vmem:[#allocation22 + $0x28] sm:$0xff] }
 0x90e   : > { %v1912_v50 = vadd.f32 %v2895_v33, %v1909_v13  ;;  %v2119_v33 = vld [vmem:[#allocation19 + $0x110] sm:$0xff] }
 0x90f   : > { %2052 = vmatpush.msrb.mxu2 %v2001_v60  ;;  %2160 = vmatpush.msra.mxu1 %v2119_v33  ;;  %v2111_v13 = vld [vmem:[#allocation19 + $0xd0] sm:$0xff] }
 0x910   : > { %1970 = vmatmul.f32.gmra.mxu0 %v1912_v50  ;;  %1993 = vmatmul.f32.gmra.mxu1 %v1912_v50  ;;  %v2107_v50 = vld [vmem:[#allocation19 + $0xb0] sm:$0xff] }
 0x911   : > { %2179 = vmatpush.msra.mxu2 %v2132_v19  ;;  %2161 = vmatpush.msra.mxu1 %v2116_v39  ;;  %v2099_v60 = vld [vmem:[#allocation19 + $0x70] sm:$0xff]  ;;  %v2217_v19 = vld [vmem:[#allocation20 + $0x78] sm:$0xff] }
 0x912   : > { %2143 = vmatpush.msrb.mxu0 %v2100_v49  ;;  %v2383_v39 = vld [vmem:[#allocation22 + $0x78] sm:$0xff]  ;;  %v2370_v49 = vld [vmem:[#allocation22 + $0x10] sm:$0xff] }
 0x913   : > { %2180 = vmatpush.msra.mxu2 %v2129_v2  ;;  %2162 = vmatpush.msra.mxu1 %v2113_v45  ;;  %v2207_v2 = vld [vmem:[#allocation20 + $0x28] sm:$0xff]  ;;  %v2375_v45 = vld [vmem:[#allocation22 + $0x38] sm:$0xff] }
 0x914   : > { %2144 = vmatpush.msrb.mxu0 %v2097_v52 }
 0x915   : > { %2181 = vmatpush.msra.mxu2 %v2126_v30  ;;  %2163 = vmatpush.msra.mxu1 %v2110_v48  ;;  %v2372_v48 = vld [vmem:[#allocation22 + $0x20] sm:$0xff] }
 0x916   : > { %2145 = vmatpush.msrb.mxu0 %v2094_v54 }
 0x917   : > { %2182 = vmatpush.msra.mxu2 %v2123_v32  ;;  %2164 = vmatpush.msra.mxu1 %v2107_v50 }
 0x918   : > { %2146 = vmatpush.msrb.mxu0 %v2091_v57 }
 0x919   : > { %2183 = vmatpush.msra.mxu2 %v2120_v29  ;;  %2165 = vmatpush.msra.mxu1 %v2104_v53  ;;  %v2368_v53 = vld [vmem:[#allocation22] sm:$0xff] }
 0x91a   : > { %2147 = vmatpush.msrb.mxu0 %v2088_v61 }
 0x91b   : > { %2184 = vmatpush.msra.mxu2 %v2117_v42  ;;  %2166 = vmatpush.msra.mxu1 %v2101_v27  ;;  %v2379_v42 = vld [vmem:[#allocation22 + $0x58] sm:$0xff] }
 0x91c   : > { %2148 = vmatpush.msrb.mxu0 %v2085_v62 }
 0x91d   : > { %2185 = vmatpush.msra.mxu2 %v2114_v46  ;;  %2167 = vmatpush.msra.mxu1 %v2098_v58  ;;  %v2374_v46 = vld [vmem:[#allocation22 + $0x30] sm:$0xff] }
 0x91e   : > { %2257 = vmatpush.msra.mxu0 %v2233_v63 }
 0x91f   : > { %2186 = vmatpush.msra.mxu2 %v2111_v13  ;;  %2168 = vmatpush.msra.mxu1 %v2095_v55  ;;  %v2371_v13 = vld [vmem:[#allocation22 + $0x18] sm:$0xff] }
 0x920   : > { %2258 = vmatpush.msra.mxu0 %v2231_v0 }
 0x921   : > { %2187 = vmatpush.msra.mxu2 %v2108_v51  ;;  %2169 = vmatpush.msra.mxu1 %v2092_v6  ;;  %v2369_v51 = vld [vmem:[#allocation22 + $0x8] sm:$0xff] }
 0x922   : > { %2259 = vmatpush.msra.mxu0 %v2229_v1 }
 0x923   : > { %2188 = vmatpush.msra.mxu2 %v2105_v35  ;;  %2170 = vmatpush.msra.mxu1 %v2089_v11 }
 0x924   : > { %2260 = vmatpush.msra.mxu0 %v2227_v3 }
 0x925   : > { %2189 = vmatpush.msra.mxu2 %v2102_v56  ;;  %2171 = vmatpush.msra.mxu1 %v2086_v16 }
 0x926   : > { %2261 = vmatpush.msra.mxu0 %v2225_v5 }
 0x927   : > { %2190 = vmatpush.msra.mxu2 %v2099_v60  ;;  %2384 = vmatpush.msrb.mxu1 %v2383_v39 }
 0x929   : > { %2191 = vmatpush.msra.mxu2 %v2096_v4 }
 0x985   : > { %v1968_v18 = vpop.f32.mrf.mxu0  ;;  %v1991_v14 = vpop.f32.mrf.mxu1 }
 0x986   : > { %v1969_v20 = vadd.f32 %v1968_v18, %v1947_v36  ;;  %v1992_v22 = vadd.f32 %v1991_v14, %v1948_v7  ;;  %v2087_v18 = vld [vmem:[#allocation19 + $0x10] sm:$0xff]  ;;  %v2219_v14 = vld [vmem:[#allocation20 + $0x88] sm:$0xff] }
 0x988   : > { %v1997_v26 = vmax.f32 %v1969_v20, 0.0  ;;  %v1998_v10 = vmax.f32 %v1992_v22, 0.0  ;;  %v2213_v20 = vld [vmem:[#allocation20 + $0x58] sm:$0xff]  ;;  %v2211_v22 = vld [vmem:[#allocation20 + $0x48] sm:$0xff] }
 0x98a   : > { %2053 = vmatmul.f32.vlgmr.msrb.gmra.mxu2 %v1997_v26  ;;  %2076 = vmatmul.f32.vlgmr.msra.gmra.mxu3 %v1998_v10  ;;  %v2203_v26 = vld [vmem:[#allocation20 + $0x8] sm:$0xff]  ;;  %v2896_v10 = vld [vmem:[%s4147_s17] ss:$0 sm:$0xff]  ;;  %s3392_s17 = scalar_lea.hbm %s4149_s23, 32 }
 0x98b   : > { %p3394_p7 = scmp.lt.s32.totalorder %s3392_s17, %s3388_s26 }
 0x98d   : > { %v1971_v37 = vpop.f32.mrf.mxu0  ;;  %v1994_v38 = vpop.f32.mrf.mxu1  ;;  %p3395_p8 = por %p3394_p7, %p3393_p12 }
 0x98e   : > { %v1972_v21 = vadd.f32 %v1971_v37, %v1947_v36  ;;  %v1995_v40 = vadd.f32 %v1994_v38, %v1948_v7  ;;  %v2093_v36 = vld [vmem:[#allocation19 + $0x40] sm:$0xff]  ;;  %v2223_v7 = vld [vmem:[#allocation20 + $0xa8] sm:$0xff] }
 0x98f   : > { %2192 = vmatpush.msra.mxu2 %v2093_v36  ;;  %2262 = vmatpush.msra.mxu0 %v2223_v7  ;;  %p3396_p9 = pnand %p3395_p8, %p3391_p5 }
 0x990   : > { %v1999_v8 = vmax.f32 %v1972_v21, 0.0  ;;  %v2000_v24 = vmax.f32 %v1995_v40, 0.0  ;;  %v2382_v21 = vld [vmem:[#allocation22 + $0x70] sm:$0xff]  ;;  %v2381_v40 = vld [vmem:[#allocation22 + $0x68] sm:$0xff] }
 0x991   : > { %2193 = vmatpush.msra.mxu2 %v2090_v12  ;;  %2263 = vmatpush.msra.mxu0 %v2221_v15 }
 0x992   : > { %2056 = vmatmul.f32.gmra.mxu2 %v1999_v8  ;;  %2079 = vmatmul.f32.gmra.mxu3 %v2000_v24  ;;  %v2378_v8 = vld [vmem:[#allocation22 + $0x50] sm:$0xff]  ;;  %v2377_v24 = vld [vmem:[#allocation22 + $0x48] sm:$0xff] }
 0x993   : > { %2194 = vmatpush.msra.mxu2 %v2087_v18  ;;  %2264 = vmatpush.msra.mxu0 %v2219_v14 }
 0x994   : > { %2385 = vmatpush.msrb.mxu1 %v2382_v21 }
 0x995   : > { %2265 = vmatpush.msra.mxu0 %v2217_v19 }
 0x996   : > { %2386 = vmatpush.msrb.mxu1 %v2381_v40 }
 0x997   : > { %2266 = vmatpush.msra.mxu0 %v2215_v28 }
 0x998   : > { %2387 = vmatpush.msrb.mxu1 %v2380_v41 }
 0x999   : > { %2267 = vmatpush.msra.mxu0 %v2213_v20 }
 0x99a   : > { %2250 = vmatmul.f32.vlgmr.msrb.gmra.mxu3 %v3989_v9  ;;  %2388 = vmatpush.msrb.mxu1 %v2379_v42 }
 0x99b   : > { %2268 = vmatpush.msra.mxu0 %v2211_v22 }
 0x99c   : > { %2389 = vmatpush.msrb.mxu1 %v2378_v8 }
 0x99d   : > { %2269 = vmatpush.msra.mxu0 %v2209_v23 }
 0x99e   : > { %2390 = vmatpush.msrb.mxu1 %v2377_v24 }
 0x99f   : > { %2270 = vmatpush.msra.mxu0 %v2207_v2 }
 0x9a0   : > { %2391 = vmatpush.msrb.mxu1 %v2376_v43 }
 0x9a1   : > { %2271 = vmatpush.msra.mxu0 %v2205_v25 }
 0x9a2   : > { %2253 = vmatmul.f32.gmra.mxu3 %v3993_v59  ;;  %2392 = vmatpush.msrb.mxu1 %v2375_v45 }
 0x9a3   : > { %2272 = vmatpush.msra.mxu0 %v2203_v26 }
 0x9a4   : > { %2393 = vmatpush.msrb.mxu1 %v2374_v46 }
 0x9a6   : > { %2394 = vmatpush.msrb.mxu1 %v2373_v47 }
 0x9a8   : > { %2395 = vmatpush.msrb.mxu1 %v2372_v48 }
 0x9aa   : > { %2396 = vmatpush.msrb.mxu1 %v2371_v13 }
 0x9ac   : > { %2397 = vmatpush.msrb.mxu1 %v2370_v49 }
 0x9ae   : > { %2398 = vmatpush.msrb.mxu1 %v2369_v51 }
 0x9b0   : > { %2399 = vmatpush.msrb.mxu1 %v2368_v53 }
 0xa0d   : > { %v2054_v44 = vpop.f32.mrf.mxu2  ;;  %v2077_v30 = vpop.f32.mrf.mxu3 }
 0xa0e   : > { %v2055_v17 = vadd.f32 %v2896_v10, %v2054_v44 }
 0xa10   : > { %v2078_v31 = vadd.f32 %v2077_v30, %v2055_v17  ;;  %v2897_v30 = vld [vmem:[%s4148_s13] ss:$0 sm:$0xff] }
 0xa12   : > { %v2083_v32 = vmax.f32 %v2078_v31, 0.0 }
 0xa14   : > { %2149 = vmatmul.f32.vlgmr.msrb.gmra.mxu0 %v2083_v32  ;;  %2172 = vmatmul.f32.vlgmr.msra.gmra.mxu1 %v2083_v32 }
 0xa15   : > { %2195 = vmatmul.f32.vlgmr.msra.gmra.mxu2 %v2083_v32  ;;  %v2057_v33 = vpop.f32.mrf.mxu2  ;;  %v2080_v29 = vpop.f32.mrf.mxu3 }
 0xa16   : > { %v2058_v34 = vadd.f32 %v2896_v10, %v2057_v33 }
 0xa18   : > { %v2081_v37 = vadd.f32 %v2080_v29, %v2058_v34 }
 0xa1a   : > { %v2084_v38 = vmax.f32 %v2081_v37, 0.0 }
 0xa1c   : > { %2152 = vmatmul.f32.gmra.mxu0 %v2084_v38  ;;  %2175 = vmatmul.f32.gmra.mxu1 %v2084_v38 }
 0xa1d   : > { %2198 = vmatmul.f32.gmra.mxu2 %v2084_v38  ;;  %v2251_v50 = vpop.f32.mrf.mxu3 }
 0xa24   : > { %2273 = vmatmul.f32.vlgmr.msra.gmra.mxu0 %v3989_v9 }
 0xa25   : > { %v2254_v27 = vpop.f32.mrf.mxu3 }
 0xa2c   : > { %2276 = vmatmul.f32.gmra.mxu0 %v3993_v59 }
 0xa91   : > { %v2150_v52 = vpop.f32.mrf.mxu0  ;;  %v2173_v10 = vpop.f32.mrf.mxu1 }
 0xa92   : > { %v2280_v35 = vadd.f32 %v2251_v50, %v2150_v52 }
 0xa94   : > { %v2685_v54 = vmul.f32 -1.442695, %v2280_v35 }
 0xa96   : > { %2960 = vpow2.f32 %v2685_v54 }
 0xa98   : > { %v2196_v13 = vpop.f32.mrf.mxu2 }
 0xa99   : > { %v2153_v56 = vpop.f32.mrf.mxu0  ;;  %v2176_v32 = vpop.f32.mrf.mxu1 }
 0xa9a   : > { %v2281_v57 = vadd.f32 %v2254_v27, %v2153_v56 }
 0xa9c   : > { %v2961_v58 = vpop.eup %2960  ;;  %v2686_v60 = vmul.f32 -1.442695, %v2281_v57 }
 0xa9d   : > { %v2288_v61 = vadd.f32 1.0, %v2961_v58 }
 0xa9e   : > { %2962 = vpow2.f32 %v2686_v60 }
 0xa9f   : > { %2964 = vrcp.f32 %v2288_v61  ;;  %v2301_v55 = vand.u32 2147483648, %v2288_v61  ;;  %v2299_v5 = vand.u32 2147483647, %v2288_v61  ;;  %vm2295_vm4 = vweird.f32 %v2288_v61 }
 0xaa0   : > { %v2199_v60 = vpop.f32.mrf.mxu2 }
 0xaa1   : > { %v2302_v7 = vor.u32 1.1754944e-38, %v2301_v55  ;;  %vm2300_vm6 = vcmp.eq.f32.partialorder %v2299_v5, 8.507059e+37  ;;  %v2274_v26 = vpop.f32.mrf.mxu0 }
 0xaa2   : > { %v2320_v44 = vadd.f32 %v2274_v26, %v2173_v10 }
 0xaa4   : > { %v2963_v62 = vpop.eup %2962  ;;  %v2326_v17 = vsub.f32 %v2320_v44, %v2897_v30 }
 0xaa5   : > { %v2965_v63 = vpop.eup %2964  ;;  %v2289_v0 = vadd.f32 1.0, %v2963_v62 }
 0xaa6   : > { %v2291_v1 = vmul.f32 %v2965_v63, %v2288_v61  ;;  %vm2296_vm3 = vweird.f32 %v2965_v63  ;;  %v2687_v33 = vmul.f32 -1.442695, %v2326_v17 }
 0xaa7   : > { %2966 = vrcp.f32 %v2289_v0  ;;  %vm2297_vm5 = vmor %vm2295_vm4, %vm2296_vm3  ;;  %v2316_v14 = vand.u32 2147483648, %v2289_v0  ;;  %v2314_v28 = vand.u32 2147483647, %v2289_v0  ;;  %vm2310_vm10 = vweird.f32 %v2289_v0 }
 0xaa8   : > { %v2292_v3 = vsub.f32 1.0, %v2291_v1  ;;  %2968 = vpow2.f32 %v2687_v33 }
 0xaa9   : > { %v2317_v22 = vor.u32 1.1754944e-38, %v2316_v14  ;;  %vm2315_vm12 = vcmp.eq.f32.partialorder %v2314_v28, 8.507059e+37  ;;  %v2277_v31 = vpop.f32.mrf.mxu0 }
 0xaaa   : > { %v2293_v4 = vmul.f32 %v2965_v63, %v2292_v3  ;;  %v2321_v34 = vadd.f32 %v2277_v31, %v2176_v32 }
 0xaac   : > { %v2294_v6 = vadd.f32 %v2965_v63, %v2293_v4  ;;  %v2327_v29 = vsub.f32 %v2321_v34, %v2897_v30 }
 0xaad   : > { %v2967_v36 = vpop.eup %2966 }
 0xaae   : > { %v2298_v11 = vsel %vm2297_vm5, %v2965_v63, %v2294_v6  ;;  %v2306_v12 = vmul.f32 %v2967_v36, %v2289_v0  ;;  %vm2311_vm9 = vweird.f32 %v2967_v36  ;;  %v2688_v37 = vmul.f32 -1.442695, %v2327_v29  ;;  %v2969_v38 = vpop.eup %2968 }
 0xaaf   : > { %v2303_v15 = vsel %vm2300_vm6, %v2302_v7, %v2298_v11  ;;  %vm2312_vm11 = vmor %vm2310_vm10, %vm2311_vm9  ;;  %v2334_v39 = vadd.f32 1.0, %v2969_v38 }
 0xab0   : > { %v2366_v16 = vmul.f32 %v2303_v15, %v3989_v9  ;;  %v2307_v18 = vsub.f32 1.0, %v2306_v12  ;;  %2970 = vpow2.f32 %v2688_v37 }
 0xab1   : > { %2972 = vrcp.f32 %v2334_v39  ;;  %v2347_v48 = vand.u32 2147483648, %v2334_v39  ;;  %vm2341_vm13 = vweird.f32 %v2334_v39  ;;  %v2345_v49 = vand.u32 2147483647, %v2334_v39 }
 0xab2   : > { %2400 = vmatmul.f32.vlgmr.msrb.gmra.mxu1 %v2366_v16  ;;  %v2308_v19 = vmul.f32 %v2967_v36, %v2307_v18 }
 0xab3   : > { %v2348_v53 = vor.u32 1.1754944e-38, %v2347_v48  ;;  %vm2346_vm14 = vcmp.eq.f32.partialorder %v2345_v49, 8.507059e+37 }
 0xab4   : > { %v2309_v20 = vadd.f32 %v2967_v36, %v2308_v19 }
 0xab6   : > { %v2313_v23 = vsel %vm2312_vm11, %v2967_v36, %v2309_v20  ;;  %v2971_v21 = vpop.eup %2970 }
 0xab7   : > { %v2318_v2 = vsel %vm2315_vm12, %v2317_v22, %v2313_v23  ;;  %v2335_v40 = vadd.f32 1.0, %v2971_v21  ;;  %v2973_v41 = vpop.eup %2972 }
 0xab8   : > { %v2367_v25 = vmul.f32 %v2318_v2, %v3993_v59  ;;  %v2337_v42 = vmul.f32 %v2973_v41, %v2334_v39  ;;  %vm2342_vm8 = vweird.f32 %v2973_v41 }
 0xab9   : > { %2974 = vrcp.f32 %v2335_v40  ;;  %vm2343_vm7 = vmor %vm2341_vm13, %vm2342_vm8  ;;  %v2362_v56 = vand.u32 2147483648, %v2335_v40  ;;  %vm2356_vm0 = vweird.f32 %v2335_v40  ;;  %v2360_v58 = vand.u32 2147483647, %v2335_v40 }
 0xaba   : > { %2403 = vmatmul.f32.gmra.mxu1 %v2367_v25  ;;  %v2338_v8 = vsub.f32 1.0, %v2337_v42 }
 0xabb   : > { %v2363_v0 = vor.u32 1.1754944e-38, %v2362_v56  ;;  %vm2361_vm2 = vcmp.eq.f32.partialorder %v2360_v58, 8.507059e+37 }
 0xabc   : > { %v2339_v45 = vmul.f32 %v2973_v41, %v2338_v8 }
 0xabe   : > { %v2340_v47 = vadd.f32 %v2973_v41, %v2339_v45 }
 0xabf   : > { %v2975_v24 = vpop.eup %2974 }
 0xac0   : > { %v2352_v43 = vmul.f32 %v2975_v24, %v2335_v40  ;;  %v2344_v50 = vsel %vm2343_vm7, %v2973_v41, %v2340_v47  ;;  %vm2357_vm15 = vweird.f32 %v2975_v24 }
 0xac1   : > { %v2349_v54 = vsel %vm2346_vm14, %v2348_v53, %v2344_v50  ;;  %vm2358_vm1 = vmor %vm2356_vm0, %vm2357_vm15 }
 0xac2   : > { %v2353_v46 = vsub.f32 1.0, %v2352_v43  ;;  %v2411_v57 = vsub.f32 1.0, %v2349_v54 }
 0xac4   : > { %v2354_v52 = vmul.f32 %v2975_v24, %v2353_v46  ;;  %v2413_v3 = vmul.f32 %v2411_v57, %v3989_v9 }
 0xac6   : > { %v2355_v27 = vadd.f32 %v2975_v24, %v2354_v52 }
 0xac8   : > { %v2359_v61 = vsel %vm2358_vm1, %v2975_v24, %v2355_v27 }
 0xac9   : > { %v2364_v4 = vsel %vm2361_vm2, %v2363_v0, %v2359_v61 }
 0xaca   : > { %v2412_v6 = vsub.f32 1.0, %v2364_v4 }
 0xacc   : > { %v2414_v9 = vmul.f32 %v2412_v6, %v3993_v59 }
 0xb2f   : > { %v2401_v51 = vpop.f32.mrf.mxu1 }
 0xb30   : > { %v2407_v35 = vadd.f32 %v2401_v51, %v2196_v13 }
 0xb32   : > { %2976 = vtanh.f32 %v2407_v35 }
 0xb37   : > { %v2404_v62 = vpop.f32.mrf.mxu1 }
 0xb38   : > { %v2977_v63 = vpop.eup %2976  ;;  %v2408_v1 = vadd.f32 %v2404_v62, %v2199_v60 }
 0xb39   : > { %v2415_v55 = vmul.f32 %v2977_v63, %v2349_v54 }
 0xb3a   : > { %2978 = vtanh.f32 %v2408_v1 }
 0xb3b   : > { %v2417_v5 = vadd.f32 %v2415_v55, %v2413_v3 }
 0xb3d   : > { %2419 = vst [vmem:[%s789_s11] sm:$0xff] %v2417_v5 }
 0xb40   : > { %v2979_v36 = vpop.eup %2978 }
 0xb41   : > { %v2416_v7 = vmul.f32 %v2979_v36, %v2364_v4 }
 0xb43   : > { %v2418_v11 = vadd.f32 %v2416_v7, %v2414_v9 }
 0xb45   : > { %2420 = vst [vmem:[%s789_s11 + $0x8] sm:$0xff] %v2418_v11 }
 0xb46   : > { %3399 = shalt.err (!%p3396_p9)
}
 0xb47   : > { %s3486_s18 = smov 128   ;;  %s3487_s13 = smov 8  }
 0xb48   : > { %2746 = dma.vmem_to_hbm [thread:$0]  (%p3740_p4), %s2435_s24, 256, %s2437_s4, %s2422_s21, %s3486_s18, %s3486_s18, %s3487_s13  }
 0xb49 PF: > { %s2451_s19 = sand.u32 1, %s3450_s27   ;;  %p4150_p10 = scmp.ge.s32.totalorder %s3462_s30, 2 }
 0xb4a   : > { %s2452_s1 = scalar_lea.sflag [#allocation4], %s2451_s19 }
 0xb4b   : > { %p2790_p13 = pnand %p4150_p10, %p3744_p6 }
 0xb4d   : > { %p2791_p11 = pneg %p2790_p13 }
 0xb4f   : > { %3445 = dma.done.wait (%p2791_p11), %s2452_s1, 256  }
 0xb50   : > { %3447 = vsyncadd (%p2791_p11), %s2452_s1, 4294967040  ;;  %p37_p0 = scmp.ge.s32.totalorder %s3714_s7, 4   ;;  %s4151_s27 = smov %s3454_s28 }
 0xb51   : > { %s4152_s28 = smov %s3458_s29  ;;  %s4153_s29 = smov %s3725_s5 }
 0xb52   : > { %s4154_s30 = smov %s3714_s7  ;;  %39 = sbr.rel (!%p37_p0) target bundleno = 28 (0x1c), region = 185 }
 0xb57   :  { %2458 = vsyncpa [#allocation3], 1 }
 0xb58   :  { %2460 = vsyncpa [#allocation3 + $0x1], 1 }
 0xb59   :  { %2461 = vsyncpa [#allocation6], 1 }
 0xb5a   :  { %2462 = vsyncpa [#allocation9], 1 }
 0xb5b   :  { %2463 = vsyncpa [#allocation12], 1 }
 0xb5c   :  { %2464 = vsyncpa [#allocation15], 1 }
 0xb5d   :  { %2465 = vsyncpa [#allocation18], 1 }
 0xb5e   :  { %2466 = vsyncpa [#allocation21], 1 }
 0xb5f   :  { %2467 = vsyncpa [#allocation4], 1 }
 0xb60   :  { %2469 = vsyncpa [#allocation4 + $0x1], 1 }

</bundles_post_ra>
